<compile_context>
chip_gen: v7x
topology: tpu7x:2x2x1
jax: 0.10.0
libtpu: 0.0.40
codegen_flags: <defaults>
</compile_context>

<pallas_src>
import functools

import jax
import jax.numpy as jnp
from jax.experimental import pallas as pl
from jax.experimental.pallas import tpu as pltpu

BN_EPS = 1e-5
LANES = 128
VMEM_LIMIT = 32 * 1024 * 1024   # explicit, safe on v5e / v6e / v7x


def _round_up(x, m):
    return (x + m - 1) // m * m


def _pick_batch_tile(n):
    """Largest batch tile (<=4) that divides N while keeping >=2 grid steps."""
    for b in (4, 3, 2, 1):
        if n % b == 0 and n // b >= 2:
            return b
    return 1


# --------------------------- in-kernel 3x3 conv ----------------------------- #
def _conv3x3_accum(read_tap, w_ref, m, Cp):
    """3x3 conv as 9 accumulated (M,Cp)x(Cp,Cp) bf16 MXU dots with f32 acc."""
    acc = jnp.zeros((m, Cp), jnp.float32)
    for kh in range(3):
        for kw in range(3):
            tap = read_tap(kh, kw)                              # (B, H, W, Cp) f32
            tap = tap.astype(jnp.bfloat16).reshape(m, Cp)       # bf16 copy only
            acc = acc + jnp.dot(tap, w_ref[kh * 3 + kw],
                                preferred_element_type=jnp.float32)
    return acc


# ------------------------------ Pallas kernels ------------------------------ #
def _conv1_stats_kernel(x_ref, w_ref, y_ref, s_ref, q_ref, pad_ref,
                        *, B, H, W, C, Cp):
    """conv1 on a batch tile + per-tile per-channel sum / sumsq for bn1."""
    # Halo + channel zero-padding built in VMEM (no padded copies of x in HBM).
    pad_ref[...] = jnp.zeros_like(pad_ref)
    pad_ref[:, 1:H + 1, 1:W + 1, :C] = x_ref[...]

    acc = _conv3x3_accum(
        lambda kh, kw: pad_ref[:, kh:kh + H, kw:kw + W, :],
        w_ref, B * H * W, Cp)

    y_bf = acc.astype(jnp.bfloat16)
    y_ref[...] = y_bf.reshape(B, H * W, Cp)
    yf = y_bf.astype(jnp.float32)            # stats of what will be normalized
    s_ref[0] = jnp.sum(yf, axis=0, keepdims=True)
    q_ref[0] = jnp.sum(yf * yf, axis=0, keepdims=True)


def _bnrelu_conv2_stats_kernel(y1_ref, sc_ref, sh_ref, w_ref,
                               y2_ref, s_ref, q_ref, pad_ref,
                               *, B, H, W, Cp):
    """Fused bn1 (pre-folded scale/shift) + relu + conv2 + bn2 partial stats."""
    a = jnp.maximum(
        y1_ref[...].astype(jnp.float32) * sc_ref[...] + sh_ref[...], 0.0)

    # Zero only the 1-wide halo ring; the interior is fully overwritten below.
    zrow = jnp.zeros((B, 1, W + 2, Cp), jnp.float32)
    zcol = jnp.zeros((B, H + 2, 1, Cp), jnp.float32)
    pad_ref[:, 0:1, :, :] = zrow
    pad_ref[:, H + 1:H + 2, :, :] = zrow
    pad_ref[:, :, 0:1, :] = zcol
    pad_ref[:, :, W + 1:W + 2, :] = zcol
    pad_ref[:, 1:H + 1, 1:W + 1, :] = a.reshape(B, H, W, Cp)

    acc = _conv3x3_accum(
        lambda kh, kw: pad_ref[:, kh:kh + H, kw:kw + W, :],
        w_ref, B * H * W, Cp)

    y_bf = acc.astype(jnp.bfloat16)
    y2_ref[...] = y_bf.reshape(B, H * W, Cp)
    yf = y_bf.astype(jnp.float32)
    s_ref[0] = jnp.sum(yf, axis=0, keepdims=True)
    q_ref[0] = jnp.sum(yf * yf, axis=0, keepdims=True)


def _bn_add_relu_kernel(y2_ref, x_ref, sc_ref, sh_ref, out_ref,
                        *, B, H, W, C, Cp):
    """Fused bn2 (pre-folded scale/shift) + residual add + relu + channel un-pad."""
    z = y2_ref[...].astype(jnp.float32) * sc_ref[...] + sh_ref[...]   # (B,HW,Cp)
    z = z.reshape(B, H, W, Cp)
    out_ref[...] = jnp.maximum(z[..., :C] + x_ref[...], 0.0)


# ---------------------------- pallas_call wrappers --------------------------- #
def _pass_conv1(x_nhwc, w, *, N, B, H, W, C, Cp):
    HW = H * W
    steps = N // B
    kernel = functools.partial(_conv1_stats_kernel, B=B, H=H, W=W, C=C, Cp=Cp)
    return pl.pallas_call(
        kernel,
        grid=(steps,),
        in_specs=[
            pl.BlockSpec((B, H, W, C), lambda n: (n, 0, 0, 0)),
            pl.BlockSpec((9, Cp, Cp), lambda n: (0, 0, 0)),
        ],
        out_specs=(
            pl.BlockSpec((B, HW, Cp), lambda n: (n, 0, 0)),
            pl.BlockSpec((1, 1, Cp), lambda n: (n, 0, 0)),
            pl.BlockSpec((1, 1, Cp), lambda n: (n, 0, 0)),
        ),
        out_shape=(
            jax.ShapeDtypeStruct((N, HW, Cp), jnp.bfloat16),
            jax.ShapeDtypeStruct((steps, 1, Cp), jnp.float32),
            jax.ShapeDtypeStruct((steps, 1, Cp), jnp.float32),
        ),
        scratch_shapes=[pltpu.VMEM((B, H + 2, W + 2, Cp), jnp.float32)],
        compiler_params=pltpu.CompilerParams(
            dimension_semantics=("parallel",),
            vmem_limit_bytes=VMEM_LIMIT),
    )(x_nhwc, w)


def _pass_bnrelu_conv2(y1, scale1, shift1, w, *, N, B, H, W, Cp):
    HW = H * W
    steps = N // B
    kernel = functools.partial(_bnrelu_conv2_stats_kernel, B=B, H=H, W=W, Cp=Cp)
    return pl.pallas_call(
        kernel,
        grid=(steps,),
        in_specs=[
            pl.BlockSpec((B, HW, Cp), lambda n: (n, 0, 0)),
            pl.BlockSpec((1, Cp), lambda n: (0, 0)),
            pl.BlockSpec((1, Cp), lambda n: (0, 0)),
            pl.BlockSpec((9, Cp, Cp), lambda n: (0, 0, 0)),
        ],
        out_specs=(
            pl.BlockSpec((B, HW, Cp), lambda n: (n, 0, 0)),
            pl.BlockSpec((1, 1, Cp), lambda n: (n, 0, 0)),
            pl.BlockSpec((1, 1, Cp), lambda n: (n, 0, 0)),
        ),
        out_shape=(
            jax.ShapeDtypeStruct((N, HW, Cp), jnp.bfloat16),
            jax.ShapeDtypeStruct((steps, 1, Cp), jnp.float32),
            jax.ShapeDtypeStruct((steps, 1, Cp), jnp.float32),
        ),
        scratch_shapes=[pltpu.VMEM((B, H + 2, W + 2, Cp), jnp.float32)],
        compiler_params=pltpu.CompilerParams(
            dimension_semantics=("parallel",),
            vmem_limit_bytes=VMEM_LIMIT),
    )(y1, scale1, shift1, w)


def _pass_bn_add_relu(y2, x_nhwc, scale2, shift2, *, N, B, H, W, C, Cp):
    HW = H * W
    steps = N // B
    kernel = functools.partial(_bn_add_relu_kernel, B=B, H=H, W=W, C=C, Cp=Cp)
    return pl.pallas_call(
        kernel,
        grid=(steps,),
        in_specs=[
            pl.BlockSpec((B, HW, Cp), lambda n: (n, 0, 0)),
            pl.BlockSpec((B, H, W, C), lambda n: (n, 0, 0, 0)),
            pl.BlockSpec((1, Cp), lambda n: (0, 0)),
            pl.BlockSpec((1, Cp), lambda n: (0, 0)),
        ],
        out_specs=pl.BlockSpec((B, H, W, C), lambda n: (n, 0, 0, 0)),
        out_shape=jax.ShapeDtypeStruct((N, H, W, C), jnp.float32),
        compiler_params=pltpu.CompilerParams(
            dimension_semantics=("parallel",),
            vmem_limit_bytes=VMEM_LIMIT),
    )(y2, x_nhwc, scale2, shift2)


# ------------------------------- JAX glue ------------------------------------ #
def _bn_scale_shift(ssum, sqsum, gamma, beta, C, Cp, count):
    """Fold training-mode BatchNorm into one per-channel scale/shift."""
    s = jnp.sum(ssum, axis=(0, 1))                      # (Cp,)
    q = jnp.sum(sqsum, axis=(0, 1))                     # (Cp,)
    mean = s / count
    var = jnp.maximum(q / count - mean * mean, 0.0)     # biased batch variance
    g = jnp.pad(gamma.astype(jnp.float32), (0, Cp - C), constant_values=1.0)
    b = jnp.pad(beta.astype(jnp.float32), (0, Cp - C))
    scale = g * jax.lax.rsqrt(var + BN_EPS)
    shift = b - mean * scale
    return scale.reshape(1, Cp), shift.reshape(1, Cp)


@jax.jit
def basic_block_forward(x_nchw, params):
    """BasicBlock.forward with stride=1, downsample=None (in_ch == out_ch)."""
    N, C, H, W = x_nchw.shape
    Cp = _round_up(C, LANES)
    HW = H * W
    count = N * HW
    B = _pick_batch_tile(N)

    # Only layout work in the wrapper: NCHW -> NHWC (required to make C the
    # lane axis).  No halo / channel padding is materialized in HBM.
    x_nhwc = jnp.transpose(x_nchw, (0, 2, 3, 1)).astype(jnp.float32)  # (N,H,W,C)

    def pack_w(w_oihw, cin, cout):
        # PyTorch OIHW -> (kh, kw, Cin, Cout) -> zero-pad channels -> (9, Cp, Cp)
        w = jnp.transpose(w_oihw, (2, 3, 1, 0)).astype(jnp.float32)
        w = jnp.pad(w, ((0, 0), (0, 0), (0, Cp - cin), (0, Cp - cout)))
        return w.reshape(9, Cp, Cp).astype(jnp.bfloat16)

    w1 = pack_w(params["conv1_w"], C, C)
    w2 = pack_w(params["conv2_w"], C, C)

    # pass A: conv1 + bn1 partial stats (halo/channel padding done in VMEM)
    y1, s1, q1 = _pass_conv1(x_nhwc, w1, N=N, B=B, H=H, W=W, C=C, Cp=Cp)
    scale1, shift1 = _bn_scale_shift(s1, q1, params["bn1_gamma"],
                                     params["bn1_beta"], C, Cp, count)

    # pass B: bn1 + relu fused into conv2, + bn2 partial stats
    y2, s2, q2 = _pass_bnrelu_conv2(y1, scale1, shift1, w2,
                                    N=N, B=B, H=H, W=W, Cp=Cp)
    scale2, shift2 = _bn_scale_shift(s2, q2, params["bn2_gamma"],
                                     params["bn2_beta"], C, Cp, count)

    # pass C: bn2 + residual + relu, un-padded (N,H,W,C) output
    out_nhwc = _pass_bn_add_relu(y2, x_nhwc, scale2, shift2,
                                 N=N, B=B, H=H, W=W, C=C, Cp=Cp)
    return jnp.transpose(out_nhwc, (0, 3, 1, 2))


def init_params(key, in_channels, out_channels):
    k1, k2 = jax.random.split(key, 2)
    bound1 = 1.0 / (in_channels * 9) ** 0.5      # ~ kaiming_uniform fan-in bound
    bound2 = 1.0 / (out_channels * 9) ** 0.5
    return {
        "conv1_w": jax.random.uniform(k1, (out_channels, in_channels, 3, 3),
                                      jnp.float32, -bound1, bound1),
        "conv2_w": jax.random.uniform(k2, (out_channels, out_channels, 3, 3),
                                      jnp.float32, -bound2, bound2),
        # PyTorch BatchNorm2d defaults: weight=1, bias=0
        "bn1_gamma": jnp.ones((out_channels,), jnp.float32),
        "bn1_beta": jnp.zeros((out_channels,), jnp.float32),
        "bn2_gamma": jnp.ones((out_channels,), jnp.float32),
        "bn2_beta": jnp.zeros((out_channels,), jnp.float32),
    }


# --------------------------- pure-JAX reference ------------------------------ #
def reference_forward(x_nchw, params):
    def conv(x, w):
        return jax.lax.conv_general_dilated(
            x, w, (1, 1), ((1, 1), (1, 1)),
            dimension_numbers=("NCHW", "OIHW", "NCHW"))

    def bn(y, gamma, beta):
        mean = jnp.mean(y, axis=(0, 2, 3), keepdims=True)
        var = jnp.mean(jnp.square(y - mean), axis=(0, 2, 3), keepdims=True)
        return ((y - mean) * jax.lax.rsqrt(var + BN_EPS)
                * gamma[None, :, None, None] + beta[None, :, None, None])

    out = jnp.maximum(bn(conv(x_nchw, params["conv1_w"]),
                         params["bn1_gamma"], params["bn1_beta"]), 0.0)
    out = bn(conv(out, params["conv2_w"]), params["bn2_gamma"], params["bn2_beta"])
    return jnp.maximum(x_nchw + out, 0.0)


if __name__ == "__main__":
    key = jax.random.PRNGKey(0)
    kx, kp = jax.random.split(key)

    N, C, H, W = 2, 4, 16, 16            # small NCHW input, in_ch == out_ch, stride=1
    x = jax.random.normal(kx, (N, C, H, W), jnp.float32)
    params = init_params(kp, C, C)

    out = jax.block_until_ready(basic_block_forward(x, params))
    ref = jax.block_until_ready(reference_forward(x, params))

    assert out.shape == ref.shape == (N, C, H, W)
    # bf16 MXU matmuls + bf16 inter-pass activations -> compare against the f32
    # reference with bf16-level tolerance.
    assert jnp.allclose(out, ref, atol=4e-2, rtol=4e-2), (
        f"max abs err = {float(jnp.max(jnp.abs(out - ref)))}")

    print("KERNEL_OK")
</pallas_src>

<mosaic_0001>
module attributes {stable_mosaic.version = 11 : i64} {
  func.func @_bn_add_relu_kernel(%arg0: i32, %arg1: memref<1x256x128xbf16, #tpu.memory_space<vmem>>, %arg2: memref<1x16x16x4xf32, #tpu.memory_space<vmem>>, %arg3: memref<1x128xf32, #tpu.memory_space<vmem>>, %arg4: memref<1x128xf32, #tpu.memory_space<vmem>>, %arg5: memref<1x16x16x4xf32, #tpu.memory_space<vmem>>) attributes {dimension_semantics = [#tpu.dimension_semantics<parallel>], iteration_bounds = array<i64: 2>, scalar_prefetch = 0 : i64, scratch_operands = 0 : i64, tpu.core_type = #tpu.core_type<tc>, window_params = [{transform_indices = @transform_0, window_bounds = array<i64: 1, 256, 128>}, {transform_indices = @transform_1, window_bounds = array<i64: 1, 16, 16, 4>}, {pipeline_mode = #tpu.pipeline_mode<synchronous>, transform_indices = @transform_2, window_bounds = array<i64: 1, 128>}, {pipeline_mode = #tpu.pipeline_mode<synchronous>, transform_indices = @transform_3, window_bounds = array<i64: 1, 128>}, {transform_indices = @transform_4, window_bounds = array<i64: 1, 16, 16, 4>}]} {
    %c0 = arith.constant 0 : index
    %c0_0 = arith.constant 0 : index
    %c0_1 = arith.constant 0 : index
    %0 = vector.load %arg1[%c0, %c0_0, %c0_1] : memref<1x256x128xbf16, #tpu.memory_space<vmem>>, vector<1x256x128xbf16>
    %1 = arith.extf %0 : vector<1x256x128xbf16> to vector<1x256x128xf32>
    %c0_2 = arith.constant 0 : index
    %c0_3 = arith.constant 0 : index
    %2 = vector.load %arg3[%c0_2, %c0_3] : memref<1x128xf32, #tpu.memory_space<vmem>>, vector<1x128xf32>
    %3 = vector.shape_cast %2 : vector<1x128xf32> to vector<1x1x128xf32>
    %4 = vector.broadcast %3 : vector<1x1x128xf32> to vector<1x256x128xf32>
    %5 = arith.mulf %1, %4 : vector<1x256x128xf32>
    %c0_4 = arith.constant 0 : index
    %c0_5 = arith.constant 0 : index
    %6 = vector.load %arg4[%c0_4, %c0_5] : memref<1x128xf32, #tpu.memory_space<vmem>>, vector<1x128xf32>
    %7 = vector.shape_cast %6 : vector<1x128xf32> to vector<1x1x128xf32>
    %8 = vector.broadcast %7 : vector<1x1x128xf32> to vector<1x256x128xf32>
    %9 = arith.addf %5, %8 : vector<1x256x128xf32>
    %10 = vector.shape_cast %9 : vector<1x256x128xf32> to vector<1x16x16x128xf32>
    %11 = vector.extract_strided_slice %10 {offsets = [0, 0, 0, 0], sizes = [1, 16, 16, 4], strides = [1, 1, 1, 1]} : vector<1x16x16x128xf32> to vector<1x16x16x4xf32>
    %c0_6 = arith.constant 0 : index
    %c0_7 = arith.constant 0 : index
    %c0_8 = arith.constant 0 : index
    %c0_9 = arith.constant 0 : index
    %12 = vector.load %arg2[%c0_6, %c0_7, %c0_8, %c0_9] : memref<1x16x16x4xf32, #tpu.memory_space<vmem>>, vector<1x16x16x4xf32>
    %13 = arith.addf %11, %12 : vector<1x16x16x4xf32>
    %cst = arith.constant 0.000000e+00 : f32
    %14 = vector.broadcast %cst : f32 to vector<1x16x16x4xf32>
    %15 = arith.maximumf %13, %14 : vector<1x16x16x4xf32>
    %c0_10 = arith.constant 0 : index
    %c0_11 = arith.constant 0 : index
    %c0_12 = arith.constant 0 : index
    %c0_13 = arith.constant 0 : index
    %16 = vector.load %arg5[%c0_10, %c0_11, %c0_12, %c0_13] : memref<1x16x16x4xf32, #tpu.memory_space<vmem>>, vector<1x16x16x4xf32>
    tpu.vector_store %arg5[%c0_10, %c0_11, %c0_12, %c0_13], %15 {strides = array<i32>} : memref<1x16x16x4xf32, #tpu.memory_space<vmem>>, vector<1x16x16x4xf32>,
    return
  }
  func.func @transform_0(%arg0: i32) -> (i32, i32, i32) {
    %c0_i32 = arith.constant 0 : i32
    %c0_i32_0 = arith.constant 0 : i32
    %c0_i32_1 = arith.constant 0 : i32
    return %arg0, %c0_i32, %c0_i32_0 : i32, i32, i32
  }
  func.func @transform_1(%arg0: i32) -> (i32, i32, i32, i32) {
    %c0_i32 = arith.constant 0 : i32
    %c0_i32_0 = arith.constant 0 : i32
    %c0_i32_1 = arith.constant 0 : i32
    %c0_i32_2 = arith.constant 0 : i32
    return %arg0, %c0_i32, %c0_i32_0, %c0_i32_1 : i32, i32, i32, i32
  }
  func.func @transform_2(%arg0: i32) -> (i32, i32) {
    %c0_i32 = arith.constant 0 : i32
    %c0_i32_0 = arith.constant 0 : i32
    %c0_i32_1 = arith.constant 0 : i32
    return %c0_i32, %c0_i32_0 : i32, i32
  }
  func.func @transform_3(%arg0: i32) -> (i32, i32) {
    %c0_i32 = arith.constant 0 : i32
    %c0_i32_0 = arith.constant 0 : i32
    %c0_i32_1 = arith.constant 0 : i32
    return %c0_i32, %c0_i32_0 : i32, i32
  }
  func.func @transform_4(%arg0: i32) -> (i32, i32, i32, i32) {
    %c0_i32 = arith.constant 0 : i32
    %c0_i32_0 = arith.constant 0 : i32
    %c0_i32_1 = arith.constant 0 : i32
    %c0_i32_2 = arith.constant 0 : i32
    return %arg0, %c0_i32, %c0_i32_0, %c0_i32_1 : i32, i32, i32, i32
  }
}

module attributes {stable_mosaic.version = 11 : i64} {
  func.func @_bnrelu_conv2_stats_kernel(%arg0: i32, %arg1: memref<1x256x128xbf16, #tpu.memory_space<vmem>>, %arg2: memref<1x128xf32, #tpu.memory_space<vmem>>, %arg3: memref<1x128xf32, #tpu.memory_space<vmem>>, %arg4: memref<9x128x128xbf16, #tpu.memory_space<vmem>>, %arg5: memref<1x256x128xbf16, #tpu.memory_space<vmem>>, %arg6: memref<1x1x128xf32, #tpu.memory_space<vmem>>, %arg7: memref<1x1x128xf32, #tpu.memory_space<vmem>>, %arg8: memref<1x18x18x128xf32, #tpu.memory_space<vmem>>) attributes {dimension_semantics = [#tpu.dimension_semantics<parallel>], iteration_bounds = array<i64: 2>, scalar_prefetch = 0 : i64, scratch_operands = 1 : i64, tpu.core_type = #tpu.core_type<tc>, window_params = [{transform_indices = @transform_0, window_bounds = array<i64: 1, 256, 128>}, {pipeline_mode = #tpu.pipeline_mode<synchronous>, transform_indices = @transform_1, window_bounds = array<i64: 1, 128>}, {pipeline_mode = #tpu.pipeline_mode<synchronous>, transform_indices = @transform_2, window_bounds = array<i64: 1, 128>}, {pipeline_mode = #tpu.pipeline_mode<synchronous>, transform_indices = @transform_3, window_bounds = array<i64: 9, 128, 128>}, {transform_indices = @transform_4, window_bounds = array<i64: 1, 256, 128>}, {transform_indices = @transform_5, window_bounds = array<i64: 1, 1, 128>}, {transform_indices = @transform_6, window_bounds = array<i64: 1, 1, 128>}]} {
    %c0 = arith.constant 0 : index
    %c0_0 = arith.constant 0 : index
    %c0_1 = arith.constant 0 : index
    %0 = vector.load %arg1[%c0, %c0_0, %c0_1] : memref<1x256x128xbf16, #tpu.memory_space<vmem>>, vector<1x256x128xbf16>
    %1 = arith.extf %0 : vector<1x256x128xbf16> to vector<1x256x128xf32>
    %c0_2 = arith.constant 0 : index
    %c0_3 = arith.constant 0 : index
    %2 = vector.load %arg2[%c0_2, %c0_3] : memref<1x128xf32, #tpu.memory_space<vmem>>, vector<1x128xf32>
    %3 = vector.shape_cast %2 : vector<1x128xf32> to vector<1x1x128xf32>
    %4 = vector.broadcast %3 : vector<1x1x128xf32> to vector<1x256x128xf32>
    %5 = arith.mulf %1, %4 : vector<1x256x128xf32>
    %c0_4 = arith.constant 0 : index
    %c0_5 = arith.constant 0 : index
    %6 = vector.load %arg3[%c0_4, %c0_5] : memref<1x128xf32, #tpu.memory_space<vmem>>, vector<1x128xf32>
    %7 = vector.shape_cast %6 : vector<1x128xf32> to vector<1x1x128xf32>
    %8 = vector.broadcast %7 : vector<1x1x128xf32> to vector<1x256x128xf32>
    %9 = arith.addf %5, %8 : vector<1x256x128xf32>
    %cst = arith.constant 0.000000e+00 : f32
    %10 = vector.broadcast %cst : f32 to vector<1x256x128xf32>
    %11 = arith.maximumf %9, %10 : vector<1x256x128xf32>
    %cst_6 = arith.constant 0.000000e+00 : f32
    %12 = vector.broadcast %cst_6 : f32 to vector<1x1x18x128xf32>
    %cst_7 = arith.constant 0.000000e+00 : f32
    %13 = vector.broadcast %cst_7 : f32 to vector<1x18x1x128xf32>
    %c0_8 = arith.constant 0 : index
    %c0_9 = arith.constant 0 : index
    %c0_10 = arith.constant 0 : index
    %c0_11 = arith.constant 0 : index
    %14 = vector.load %arg8[%c0_8, %c0_9, %c0_10, %c0_11] : memref<1x18x18x128xf32, #tpu.memory_space<vmem>>, vector<1x1x18x128xf32>
    tpu.vector_store %arg8[%c0_8, %c0_9, %c0_10, %c0_11], %12 {strides = array<i32>} : memref<1x18x18x128xf32, #tpu.memory_space<vmem>>, vector<1x1x18x128xf32>,
    %c0_12 = arith.constant 0 : index
    %c17 = arith.constant 17 : index
    %c0_13 = arith.constant 0 : index
    %c0_14 = arith.constant 0 : index
    %15 = vector.load %arg8[%c0_12, %c17, %c0_13, %c0_14] : memref<1x18x18x128xf32, #tpu.memory_space<vmem>>, vector<1x1x18x128xf32>
    tpu.vector_store %arg8[%c0_12, %c17, %c0_13, %c0_14], %12 {strides = array<i32>} : memref<1x18x18x128xf32, #tpu.memory_space<vmem>>, vector<1x1x18x128xf32>,
    %c0_15 = arith.constant 0 : index
    %c0_16 = arith.constant 0 : index
    %c0_17 = arith.constant 0 : index
    %c0_18 = arith.constant 0 : index
    %16 = vector.load %arg8[%c0_15, %c0_16, %c0_17, %c0_18] : memref<1x18x18x128xf32, #tpu.memory_space<vmem>>, vector<1x18x1x128xf32>
    tpu.vector_store %arg8[%c0_15, %c0_16, %c0_17, %c0_18], %13 {strides = array<i32>} : memref<1x18x18x128xf32, #tpu.memory_space<vmem>>, vector<1x18x1x128xf32>,
    %c0_19 = arith.constant 0 : index
    %c0_20 = arith.constant 0 : index
    %c17_21 = arith.constant 17 : index
    %c0_22 = arith.constant 0 : index
    %17 = vector.load %arg8[%c0_19, %c0_20, %c17_21, %c0_22] : memref<1x18x18x128xf32, #tpu.memory_space<vmem>>, vector<1x18x1x128xf32>
    tpu.vector_store %arg8[%c0_19, %c0_20, %c17_21, %c0_22], %13 {strides = array<i32>} : memref<1x18x18x128xf32, #tpu.memory_space<vmem>>, vector<1x18x1x128xf32>,
    %18 = vector.shape_cast %11 : vector<1x256x128xf32> to vector<1x16x16x128xf32>
    %c0_23 = arith.constant 0 : index
    %c1 = arith.constant 1 : index
    %c1_24 = arith.constant 1 : index
    %c0_25 = arith.constant 0 : index
    %19 = vector.load %arg8[%c0_23, %c1, %c1_24, %c0_25] : memref<1x18x18x128xf32, #tpu.memory_space<vmem>>, vector<1x16x16x128xf32>
    tpu.vector_store %arg8[%c0_23, %c1, %c1_24, %c0_25], %18 {strides = array<i32>} : memref<1x18x18x128xf32, #tpu.memory_space<vmem>>, vector<1x16x16x128xf32>,
    %cst_26 = arith.constant 0.000000e+00 : f32
    %20 = vector.broadcast %cst_26 : f32 to vector<256x128xf32>
    %c0_27 = arith.constant 0 : index
    %c0_28 = arith.constant 0 : index
    %c0_29 = arith.constant 0 : index
    %c0_30 = arith.constant 0 : index
    %21 = vector.load %arg8[%c0_27, %c0_28, %c0_29, %c0_30] : memref<1x18x18x128xf32, #tpu.memory_space<vmem>>, vector<1x16x16x128xf32>
    %22 = arith.truncf %21 : vector<1x16x16x128xf32> to vector<1x16x16x128xbf16>
    %23 = vector.shape_cast %22 : vector<1x16x16x128xbf16> to vector<256x128xbf16>
    %c0_31 = arith.constant 0 : index
    %c0_32 = arith.constant 0 : index
    %c0_33 = arith.constant 0 : index
    %24 = vector.load %arg4[%c0_31, %c0_32, %c0_33] : memref<9x128x128xbf16, #tpu.memory_space<vmem>>, vector<1x128x128xbf16>
    %25 = vector.shape_cast %24 : vector<1x128x128xbf16> to vector<128x128xbf16>
    %cst_34 = arith.constant dense<0.000000e+00> : vector<256x128xf32>
    %26 = tpu.matmul %23, %25, %cst_34 {dimension_numbers = #tpu.dot_dimension_numbers<[1], [0], [0], [1], [0, 0, 1, 1], [], []>} : vector<256x128xbf16>, vector<128x128xbf16>, vector<256x128xf32> -> vector<256x128xf32>
    %27 = arith.addf %20, %26 : vector<256x128xf32>
    %c0_35 = arith.constant 0 : index
    %c0_36 = arith.constant 0 : index
    %c1_37 = arith.constant 1 : index
    %c0_38 = arith.constant 0 : index
    %28 = vector.load %arg8[%c0_35, %c0_36, %c1_37, %c0_38] : memref<1x18x18x128xf32, #tpu.memory_space<vmem>>, vector<1x16x16x128xf32>
    %29 = arith.truncf %28 : vector<1x16x16x128xf32> to vector<1x16x16x128xbf16>
    %30 = vector.shape_cast %29 : vector<1x16x16x128xbf16> to vector<256x128xbf16>
    %c1_39 = arith.constant 1 : index
    %c0_40 = arith.constant 0 : index
    %c0_41 = arith.constant 0 : index
    %31 = vector.load %arg4[%c1_39, %c0_40, %c0_41] : memref<9x128x128xbf16, #tpu.memory_space<vmem>>, vector<1x128x128xbf16>
    %32 = vector.shape_cast %31 : vector<1x128x128xbf16> to vector<128x128xbf16>
    %cst_42 = arith.constant dense<0.000000e+00> : vector<256x128xf32>
    %33 = tpu.matmul %30, %32, %cst_42 {dimension_numbers = #tpu.dot_dimension_numbers<[1], [0], [0], [1], [0, 0, 1, 1], [], []>} : vector<256x128xbf16>, vector<128x128xbf16>, vector<256x128xf32> -> vector<256x128xf32>
    %34 = arith.addf %27, %33 : vector<256x128xf32>
    %c0_43 = arith.constant 0 : index
    %c0_44 = arith.constant 0 : index
    %c2 = arith.constant 2 : index
    %c0_45 = arith.constant 0 : index
    %35 = vector.load %arg8[%c0_43, %c0_44, %c2, %c0_45] : memref<1x18x18x128xf32, #tpu.memory_space<vmem>>, vector<1x16x16x128xf32>
    %36 = arith.truncf %35 : vector<1x16x16x128xf32> to vector<1x16x16x128xbf16>
    %37 = vector.shape_cast %36 : vector<1x16x16x128xbf16> to vector<256x128xbf16>
    %c2_46 = arith.constant 2 : index
    %c0_47 = arith.constant 0 : index
    %c0_48 = arith.constant 0 : index
    %38 = vector.load %arg4[%c2_46, %c0_47, %c0_48] : memref<9x128x128xbf16, #tpu.memory_space<vmem>>, vector<1x128x128xbf16>
    %39 = vector.shape_cast %38 : vector<1x128x128xbf16> to vector<128x128xbf16>
    %cst_49 = arith.constant dense<0.000000e+00> : vector<256x128xf32>
    %40 = tpu.matmul %37, %39, %cst_49 {dimension_numbers = #tpu.dot_dimension_numbers<[1], [0], [0], [1], [0, 0, 1, 1], [], []>} : vector<256x128xbf16>, vector<128x128xbf16>, vector<256x128xf32> -> vector<256x128xf32>
    %41 = arith.addf %34, %40 : vector<256x128xf32>
    %c0_50 = arith.constant 0 : index
    %c1_51 = arith.constant 1 : index
    %c0_52 = arith.constant 0 : index
    %c0_53 = arith.constant 0 : index
    %42 = vector.load %arg8[%c0_50, %c1_51, %c0_52, %c0_53] : memref<1x18x18x128xf32, #tpu.memory_space<vmem>>, vector<1x16x16x128xf32>
    %43 = arith.truncf %42 : vector<1x16x16x128xf32> to vector<1x16x16x128xbf16>
    %44 = vector.shape_cast %43 : vector<1x16x16x128xbf16> to vector<256x128xbf16>
    %c3 = arith.constant 3 : index
    %c0_54 = arith.constant 0 : index
    %c0_55 = arith.constant 0 : index
    %45 = vector.load %arg4[%c3, %c0_54, %c0_55] : memref<9x128x128xbf16, #tpu.memory_space<vmem>>, vector<1x128x128xbf16>
    %46 = vector.shape_cast %45 : vector<1x128x128xbf16> to vector<128x128xbf16>
    %cst_56 = arith.constant dense<0.000000e+00> : vector<256x128xf32>
    %47 = tpu.matmul %44, %46, %cst_56 {dimension_numbers = #tpu.dot_dimension_numbers<[1], [0], [0], [1], [0, 0, 1, 1], [], []>} : vector<256x128xbf16>, vector<128x128xbf16>, vector<256x128xf32> -> vector<256x128xf32>
    %48 = arith.addf %41, %47 : vector<256x128xf32>
    %c0_57 = arith.constant 0 : index
    %c1_58 = arith.constant 1 : index
    %c1_59 = arith.constant 1 : index
    %c0_60 = arith.constant 0 : index
    %49 = vector.load %arg8[%c0_57, %c1_58, %c1_59, %c0_60] : memref<1x18x18x128xf32, #tpu.memory_space<vmem>>, vector<1x16x16x128xf32>
    %50 = arith.truncf %49 : vector<1x16x16x128xf32> to vector<1x16x16x128xbf16>
    %51 = vector.shape_cast %50 : vector<1x16x16x128xbf16> to vector<256x128xbf16>
    %c4 = arith.constant 4 : index
    %c0_61 = arith.constant 0 : index
    %c0_62 = arith.constant 0 : index
    %52 = vector.load %arg4[%c4, %c0_61, %c0_62] : memref<9x128x128xbf16, #tpu.memory_space<vmem>>, vector<1x128x128xbf16>
    %53 = vector.shape_cast %52 : vector<1x128x128xbf16> to vector<128x128xbf16>
    %cst_63 = arith.constant dense<0.000000e+00> : vector<256x128xf32>
    %54 = tpu.matmul %51, %53, %cst_63 {dimension_numbers = #tpu.dot_dimension_numbers<[1], [0], [0], [1], [0, 0, 1, 1], [], []>} : vector<256x128xbf16>, vector<128x128xbf16>, vector<256x128xf32> -> vector<256x128xf32>
    %55 = arith.addf %48, %54 : vector<256x128xf32>
    %c0_64 = arith.constant 0 : index
    %c1_65 = arith.constant 1 : index
    %c2_66 = arith.constant 2 : index
    %c0_67 = arith.constant 0 : index
    %56 = vector.load %arg8[%c0_64, %c1_65, %c2_66, %c0_67] : memref<1x18x18x128xf32, #tpu.memory_space<vmem>>, vector<1x16x16x128xf32>
    %57 = arith.truncf %56 : vector<1x16x16x128xf32> to vector<1x16x16x128xbf16>
    %58 = vector.shape_cast %57 : vector<1x16x16x128xbf16> to vector<256x128xbf16>
    %c5 = arith.constant 5 : index
    %c0_68 = arith.constant 0 : index
    %c0_69 = arith.constant 0 : index
    %59 = vector.load %arg4[%c5, %c0_68, %c0_69] : memref<9x128x128xbf16, #tpu.memory_space<vmem>>, vector<1x128x128xbf16>
    %60 = vector.shape_cast %59 : vector<1x128x128xbf16> to vector<128x128xbf16>
    %cst_70 = arith.constant dense<0.000000e+00> : vector<256x128xf32>
    %61 = tpu.matmul %58, %60, %cst_70 {dimension_numbers = #tpu.dot_dimension_numbers<[1], [0], [0], [1], [0, 0, 1, 1], [], []>} : vector<256x128xbf16>, vector<128x128xbf16>, vector<256x128xf32> -> vector<256x128xf32>
    %62 = arith.addf %55, %61 : vector<256x128xf32>
    %c0_71 = arith.constant 0 : index
    %c2_72 = arith.constant 2 : index
    %c0_73 = arith.constant 0 : index
    %c0_74 = arith.constant 0 : index
    %63 = vector.load %arg8[%c0_71, %c2_72, %c0_73, %c0_74] : memref<1x18x18x128xf32, #tpu.memory_space<vmem>>, vector<1x16x16x128xf32>
    %64 = arith.truncf %63 : vector<1x16x16x128xf32> to vector<1x16x16x128xbf16>
    %65 = vector.shape_cast %64 : vector<1x16x16x128xbf16> to vector<256x128xbf16>
    %c6 = arith.constant 6 : index
    %c0_75 = arith.constant 0 : index
    %c0_76 = arith.constant 0 : index
    %66 = vector.load %arg4[%c6, %c0_75, %c0_76] : memref<9x128x128xbf16, #tpu.memory_space<vmem>>, vector<1x128x128xbf16>
    %67 = vector.shape_cast %66 : vector<1x128x128xbf16> to vector<128x128xbf16>
    %cst_77 = arith.constant dense<0.000000e+00> : vector<256x128xf32>
    %68 = tpu.matmul %65, %67, %cst_77 {dimension_numbers = #tpu.dot_dimension_numbers<[1], [0], [0], [1], [0, 0, 1, 1], [], []>} : vector<256x128xbf16>, vector<128x128xbf16>, vector<256x128xf32> -> vector<256x128xf32>
    %69 = arith.addf %62, %68 : vector<256x128xf32>
    %c0_78 = arith.constant 0 : index
    %c2_79 = arith.constant 2 : index
    %c1_80 = arith.constant 1 : index
    %c0_81 = arith.constant 0 : index
    %70 = vector.load %arg8[%c0_78, %c2_79, %c1_80, %c0_81] : memref<1x18x18x128xf32, #tpu.memory_space<vmem>>, vector<1x16x16x128xf32>
    %71 = arith.truncf %70 : vector<1x16x16x128xf32> to vector<1x16x16x128xbf16>
    %72 = vector.shape_cast %71 : vector<1x16x16x128xbf16> to vector<256x128xbf16>
    %c7 = arith.constant 7 : index
    %c0_82 = arith.constant 0 : index
    %c0_83 = arith.constant 0 : index
    %73 = vector.load %arg4[%c7, %c0_82, %c0_83] : memref<9x128x128xbf16, #tpu.memory_space<vmem>>, vector<1x128x128xbf16>
    %74 = vector.shape_cast %73 : vector<1x128x128xbf16> to vector<128x128xbf16>
    %cst_84 = arith.constant dense<0.000000e+00> : vector<256x128xf32>
    %75 = tpu.matmul %72, %74, %cst_84 {dimension_numbers = #tpu.dot_dimension_numbers<[1], [0], [0], [1], [0, 0, 1, 1], [], []>} : vector<256x128xbf16>, vector<128x128xbf16>, vector<256x128xf32> -> vector<256x128xf32>
    %76 = arith.addf %69, %75 : vector<256x128xf32>
    %c0_85 = arith.constant 0 : index
    %c2_86 = arith.constant 2 : index
    %c2_87 = arith.constant 2 : index
    %c0_88 = arith.constant 0 : index
    %77 = vector.load %arg8[%c0_85, %c2_86, %c2_87, %c0_88] : memref<1x18x18x128xf32, #tpu.memory_space<vmem>>, vector<1x16x16x128xf32>
    %78 = arith.truncf %77 : vector<1x16x16x128xf32> to vector<1x16x16x128xbf16>
    %79 = vector.shape_cast %78 : vector<1x16x16x128xbf16> to vector<256x128xbf16>
    %c8 = arith.constant 8 : index
    %c0_89 = arith.constant 0 : index
    %c0_90 = arith.constant 0 : index
    %80 = vector.load %arg4[%c8, %c0_89, %c0_90] : memref<9x128x128xbf16, #tpu.memory_space<vmem>>, vector<1x128x128xbf16>
    %81 = vector.shape_cast %80 : vector<1x128x128xbf16> to vector<128x128xbf16>
    %cst_91 = arith.constant dense<0.000000e+00> : vector<256x128xf32>
    %82 = tpu.matmul %79, %81, %cst_91 {dimension_numbers = #tpu.dot_dimension_numbers<[1], [0], [0], [1], [0, 0, 1, 1], [], []>} : vector<256x128xbf16>, vector<128x128xbf16>, vector<256x128xf32> -> vector<256x128xf32>
    %83 = arith.addf %76, %82 : vector<256x128xf32>
    %84 = arith.truncf %83 : vector<256x128xf32> to vector<256x128xbf16>
    %85 = vector.shape_cast %84 : vector<256x128xbf16> to vector<1x256x128xbf16>
    %c0_92 = arith.constant 0 : index
    %c0_93 = arith.constant 0 : index
    %c0_94 = arith.constant 0 : index
    %86 = vector.load %arg5[%c0_92, %c0_93, %c0_94] : memref<1x256x128xbf16, #tpu.memory_space<vmem>>, vector<1x256x128xbf16>
    tpu.vector_store %arg5[%c0_92, %c0_93, %c0_94], %85 {strides = array<i32>} : memref<1x256x128xbf16, #tpu.memory_space<vmem>>, vector<1x256x128xbf16>,
    %87 = arith.extf %84 : vector<256x128xbf16> to vector<256x128xf32>
    %cst_95 = arith.constant dense<0.000000e+00> : vector<128xf32>
    %88 = vector.multi_reduction <add>, %87, %cst_95 [0] : vector<256x128xf32> to vector<128xf32>
    %89 = vector.shape_cast %88 : vector<128xf32> to vector<1x128xf32>
    %c0_96 = arith.constant 0 : index
    %c0_97 = arith.constant 0 : index
    %c0_98 = arith.constant 0 : index
    %90 = vector.load %arg6[%c0_96, %c0_97, %c0_98] : memref<1x1x128xf32, #tpu.memory_space<vmem>>, vector<1x1x128xf32>
    %91 = vector.shape_cast %90 : vector<1x1x128xf32> to vector<1x128xf32>
    %92 = vector.shape_cast %89 : vector<1x128xf32> to vector<1x1x128xf32>
    tpu.vector_store %arg6[%c0_96, %c0_97, %c0_98], %92 {strides = array<i32>} : memref<1x1x128xf32, #tpu.memory_space<vmem>>, vector<1x1x128xf32>,
    %93 = arith.mulf %87, %87 : vector<256x128xf32>
    %cst_99 = arith.constant dense<0.000000e+00> : vector<128xf32>
    %94 = vector.multi_reduction <add>, %93, %cst_99 [0] : vector<256x128xf32> to vector<128xf32>
    %95 = vector.shape_cast %94 : vector<128xf32> to vector<1x128xf32>
    %c0_100 = arith.constant 0 : index
    %c0_101 = arith.constant 0 : index
    %c0_102 = arith.constant 0 : index
    %96 = vector.load %arg7[%c0_100, %c0_101, %c0_102] : memref<1x1x128xf32, #tpu.memory_space<vmem>>, vector<1x1x128xf32>
    %97 = vector.shape_cast %96 : vector<1x1x128xf32> to vector<1x128xf32>
    %98 = vector.shape_cast %95 : vector<1x128xf32> to vector<1x1x128xf32>
    tpu.vector_store %arg7[%c0_100, %c0_101, %c0_102], %98 {strides = array<i32>} : memref<1x1x128xf32, #tpu.memory_space<vmem>>, vector<1x1x128xf32>,
    return
  }
  func.func @transform_0(%arg0: i32) -> (i32, i32, i32) {
    %c0_i32 = arith.constant 0 : i32
    %c0_i32_0 = arith.constant 0 : i32
    %c0_i32_1 = arith.constant 0 : i32
    return %arg0, %c0_i32, %c0_i32_0 : i32, i32, i32
  }
  func.func @transform_1(%arg0: i32) -> (i32, i32) {
    %c0_i32 = arith.constant 0 : i32
    %c0_i32_0 = arith.constant 0 : i32
    %c0_i32_1 = arith.constant 0 : i32
    return %c0_i32, %c0_i32_0 : i32, i32
  }
  func.func @transform_2(%arg0: i32) -> (i32, i32) {
    %c0_i32 = arith.constant 0 : i32
    %c0_i32_0 = arith.constant 0 : i32
    %c0_i32_1 = arith.constant 0 : i32
    return %c0_i32, %c0_i32_0 : i32, i32
  }
  func.func @transform_3(%arg0: i32) -> (i32, i32, i32) {
    %c0_i32 = arith.constant 0 : i32
    %c0_i32_0 = arith.constant 0 : i32
    %c0_i32_1 = arith.constant 0 : i32
    %c0_i32_2 = arith.constant 0 : i32
    return %c0_i32, %c0_i32_0, %c0_i32_1 : i32, i32, i32
  }
  func.func @transform_4(%arg0: i32) -> (i32, i32, i32) {
    %c0_i32 = arith.constant 0 : i32
    %c0_i32_0 = arith.constant 0 : i32
    %c0_i32_1 = arith.constant 0 : i32
    return %arg0, %c0_i32, %c0_i32_0 : i32, i32, i32
  }
  func.func @transform_5(%arg0: i32) -> (i32, i32, i32) {
    %c0_i32 = arith.constant 0 : i32
    %c0_i32_0 = arith.constant 0 : i32
    %c0_i32_1 = arith.constant 0 : i32
    return %arg0, %c0_i32, %c0_i32_0 : i32, i32, i32
  }
  func.func @transform_6(%arg0: i32) -> (i32, i32, i32) {
    %c0_i32 = arith.constant 0 : i32
    %c0_i32_0 = arith.constant 0 : i32
    %c0_i32_1 = arith.constant 0 : i32
    return %arg0, %c0_i32, %c0_i32_0 : i32, i32, i32
  }
}

module attributes {stable_mosaic.version = 11 : i64} {
  func.func @_conv1_stats_kernel(%arg0: i32, %arg1: memref<1x16x16x4xf32, #tpu.memory_space<vmem>>, %arg2: memref<9x128x128xbf16, #tpu.memory_space<vmem>>, %arg3: memref<1x256x128xbf16, #tpu.memory_space<vmem>>, %arg4: memref<1x1x128xf32, #tpu.memory_space<vmem>>, %arg5: memref<1x1x128xf32, #tpu.memory_space<vmem>>, %arg6: memref<1x18x18x128xf32, #tpu.memory_space<vmem>>) attributes {dimension_semantics = [#tpu.dimension_semantics<parallel>], iteration_bounds = array<i64: 2>, scalar_prefetch = 0 : i64, scratch_operands = 1 : i64, tpu.core_type = #tpu.core_type<tc>, window_params = [{transform_indices = @transform_0, window_bounds = array<i64: 1, 16, 16, 4>}, {pipeline_mode = #tpu.pipeline_mode<synchronous>, transform_indices = @transform_1, window_bounds = array<i64: 9, 128, 128>}, {transform_indices = @transform_2, window_bounds = array<i64: 1, 256, 128>}, {transform_indices = @transform_3, window_bounds = array<i64: 1, 1, 128>}, {transform_indices = @transform_4, window_bounds = array<i64: 1, 1, 128>}]} {
    %cst = arith.constant 0.000000e+00 : f32
    %0 = vector.broadcast %cst : f32 to vector<1x18x18x128xf32>
    %c0 = arith.constant 0 : index
    %c0_0 = arith.constant 0 : index
    %c0_1 = arith.constant 0 : index
    %c0_2 = arith.constant 0 : index
    %1 = vector.load %arg6[%c0, %c0_0, %c0_1, %c0_2] : memref<1x18x18x128xf32, #tpu.memory_space<vmem>>, vector<1x18x18x128xf32>
    tpu.vector_store %arg6[%c0, %c0_0, %c0_1, %c0_2], %0 {strides = array<i32>} : memref<1x18x18x128xf32, #tpu.memory_space<vmem>>, vector<1x18x18x128xf32>,
    %c0_3 = arith.constant 0 : index
    %c0_4 = arith.constant 0 : index
    %c0_5 = arith.constant 0 : index
    %c0_6 = arith.constant 0 : index
    %2 = vector.load %arg1[%c0_3, %c0_4, %c0_5, %c0_6] : memref<1x16x16x4xf32, #tpu.memory_space<vmem>>, vector<1x16x16x4xf32>
    %c0_7 = arith.constant 0 : index
    %c1 = arith.constant 1 : index
    %c1_8 = arith.constant 1 : index
    %c0_9 = arith.constant 0 : index
    %3 = vector.load %arg6[%c0_7, %c1, %c1_8, %c0_9] : memref<1x18x18x128xf32, #tpu.memory_space<vmem>>, vector<1x16x16x4xf32>
    tpu.vector_store %arg6[%c0_7, %c1, %c1_8, %c0_9], %2 {strides = array<i32>} : memref<1x18x18x128xf32, #tpu.memory_space<vmem>>, vector<1x16x16x4xf32>,
    %cst_10 = arith.constant 0.000000e+00 : f32
    %4 = vector.broadcast %cst_10 : f32 to vector<256x128xf32>
    %c0_11 = arith.constant 0 : index
    %c0_12 = arith.constant 0 : index
    %c0_13 = arith.constant 0 : index
    %c0_14 = arith.constant 0 : index
    %5 = vector.load %arg6[%c0_11, %c0_12, %c0_13, %c0_14] : memref<1x18x18x128xf32, #tpu.memory_space<vmem>>, vector<1x16x16x128xf32>
    %6 = arith.truncf %5 : vector<1x16x16x128xf32> to vector<1x16x16x128xbf16>
    %7 = vector.shape_cast %6 : vector<1x16x16x128xbf16> to vector<256x128xbf16>
    %c0_15 = arith.constant 0 : index
    %c0_16 = arith.constant 0 : index
    %c0_17 = arith.constant 0 : index
    %8 = vector.load %arg2[%c0_15, %c0_16, %c0_17] : memref<9x128x128xbf16, #tpu.memory_space<vmem>>, vector<1x128x128xbf16>
    %9 = vector.shape_cast %8 : vector<1x128x128xbf16> to vector<128x128xbf16>
    %cst_18 = arith.constant dense<0.000000e+00> : vector<256x128xf32>
    %10 = tpu.matmul %7, %9, %cst_18 {dimension_numbers = #tpu.dot_dimension_numbers<[1], [0], [0], [1], [0, 0, 1, 1], [], []>} : vector<256x128xbf16>, vector<128x128xbf16>, vector<256x128xf32> -> vector<256x128xf32>
    %11 = arith.addf %4, %10 : vector<256x128xf32>
    %c0_19 = arith.constant 0 : index
    %c0_20 = arith.constant 0 : index
    %c1_21 = arith.constant 1 : index
    %c0_22 = arith.constant 0 : index
    %12 = vector.load %arg6[%c0_19, %c0_20, %c1_21, %c0_22] : memref<1x18x18x128xf32, #tpu.memory_space<vmem>>, vector<1x16x16x128xf32>
    %13 = arith.truncf %12 : vector<1x16x16x128xf32> to vector<1x16x16x128xbf16>
    %14 = vector.shape_cast %13 : vector<1x16x16x128xbf16> to vector<256x128xbf16>
    %c1_23 = arith.constant 1 : index
    %c0_24 = arith.constant 0 : index
    %c0_25 = arith.constant 0 : index
    %15 = vector.load %arg2[%c1_23, %c0_24, %c0_25] : memref<9x128x128xbf16, #tpu.memory_space<vmem>>, vector<1x128x128xbf16>
    %16 = vector.shape_cast %15 : vector<1x128x128xbf16> to vector<128x128xbf16>
    %cst_26 = arith.constant dense<0.000000e+00> : vector<256x128xf32>
    %17 = tpu.matmul %14, %16, %cst_26 {dimension_numbers = #tpu.dot_dimension_numbers<[1], [0], [0], [1], [0, 0, 1, 1], [], []>} : vector<256x128xbf16>, vector<128x128xbf16>, vector<256x128xf32> -> vector<256x128xf32>
    %18 = arith.addf %11, %17 : vector<256x128xf32>
    %c0_27 = arith.constant 0 : index
    %c0_28 = arith.constant 0 : index
    %c2 = arith.constant 2 : index
    %c0_29 = arith.constant 0 : index
    %19 = vector.load %arg6[%c0_27, %c0_28, %c2, %c0_29] : memref<1x18x18x128xf32, #tpu.memory_space<vmem>>, vector<1x16x16x128xf32>
    %20 = arith.truncf %19 : vector<1x16x16x128xf32> to vector<1x16x16x128xbf16>
    %21 = vector.shape_cast %20 : vector<1x16x16x128xbf16> to vector<256x128xbf16>
    %c2_30 = arith.constant 2 : index
    %c0_31 = arith.constant 0 : index
    %c0_32 = arith.constant 0 : index
    %22 = vector.load %arg2[%c2_30, %c0_31, %c0_32] : memref<9x128x128xbf16, #tpu.memory_space<vmem>>, vector<1x128x128xbf16>
    %23 = vector.shape_cast %22 : vector<1x128x128xbf16> to vector<128x128xbf16>
    %cst_33 = arith.constant dense<0.000000e+00> : vector<256x128xf32>
    %24 = tpu.matmul %21, %23, %cst_33 {dimension_numbers = #tpu.dot_dimension_numbers<[1], [0], [0], [1], [0, 0, 1, 1], [], []>} : vector<256x128xbf16>, vector<128x128xbf16>, vector<256x128xf32> -> vector<256x128xf32>
    %25 = arith.addf %18, %24 : vector<256x128xf32>
    %c0_34 = arith.constant 0 : index
    %c1_35 = arith.constant 1 : index
    %c0_36 = arith.constant 0 : index
    %c0_37 = arith.constant 0 : index
    %26 = vector.load %arg6[%c0_34, %c1_35, %c0_36, %c0_37] : memref<1x18x18x128xf32, #tpu.memory_space<vmem>>, vector<1x16x16x128xf32>
    %27 = arith.truncf %26 : vector<1x16x16x128xf32> to vector<1x16x16x128xbf16>
    %28 = vector.shape_cast %27 : vector<1x16x16x128xbf16> to vector<256x128xbf16>
    %c3 = arith.constant 3 : index
    %c0_38 = arith.constant 0 : index
    %c0_39 = arith.constant 0 : index
    %29 = vector.load %arg2[%c3, %c0_38, %c0_39] : memref<9x128x128xbf16, #tpu.memory_space<vmem>>, vector<1x128x128xbf16>
    %30 = vector.shape_cast %29 : vector<1x128x128xbf16> to vector<128x128xbf16>
    %cst_40 = arith.constant dense<0.000000e+00> : vector<256x128xf32>
    %31 = tpu.matmul %28, %30, %cst_40 {dimension_numbers = #tpu.dot_dimension_numbers<[1], [0], [0], [1], [0, 0, 1, 1], [], []>} : vector<256x128xbf16>, vector<128x128xbf16>, vector<256x128xf32> -> vector<256x128xf32>
    %32 = arith.addf %25, %31 : vector<256x128xf32>
    %c0_41 = arith.constant 0 : index
    %c1_42 = arith.constant 1 : index
    %c1_43 = arith.constant 1 : index
    %c0_44 = arith.constant 0 : index
    %33 = vector.load %arg6[%c0_41, %c1_42, %c1_43, %c0_44] : memref<1x18x18x128xf32, #tpu.memory_space<vmem>>, vector<1x16x16x128xf32>
    %34 = arith.truncf %33 : vector<1x16x16x128xf32> to vector<1x16x16x128xbf16>
    %35 = vector.shape_cast %34 : vector<1x16x16x128xbf16> to vector<256x128xbf16>
    %c4 = arith.constant 4 : index
    %c0_45 = arith.constant 0 : index
    %c0_46 = arith.constant 0 : index
    %36 = vector.load %arg2[%c4, %c0_45, %c0_46] : memref<9x128x128xbf16, #tpu.memory_space<vmem>>, vector<1x128x128xbf16>
    %37 = vector.shape_cast %36 : vector<1x128x128xbf16> to vector<128x128xbf16>
    %cst_47 = arith.constant dense<0.000000e+00> : vector<256x128xf32>
    %38 = tpu.matmul %35, %37, %cst_47 {dimension_numbers = #tpu.dot_dimension_numbers<[1], [0], [0], [1], [0, 0, 1, 1], [], []>} : vector<256x128xbf16>, vector<128x128xbf16>, vector<256x128xf32> -> vector<256x128xf32>
    %39 = arith.addf %32, %38 : vector<256x128xf32>
    %c0_48 = arith.constant 0 : index
    %c1_49 = arith.constant 1 : index
    %c2_50 = arith.constant 2 : index
    %c0_51 = arith.constant 0 : index
    %40 = vector.load %arg6[%c0_48, %c1_49, %c2_50, %c0_51] : memref<1x18x18x128xf32, #tpu.memory_space<vmem>>, vector<1x16x16x128xf32>
    %41 = arith.truncf %40 : vector<1x16x16x128xf32> to vector<1x16x16x128xbf16>
    %42 = vector.shape_cast %41 : vector<1x16x16x128xbf16> to vector<256x128xbf16>
    %c5 = arith.constant 5 : index
    %c0_52 = arith.constant 0 : index
    %c0_53 = arith.constant 0 : index
    %43 = vector.load %arg2[%c5, %c0_52, %c0_53] : memref<9x128x128xbf16, #tpu.memory_space<vmem>>, vector<1x128x128xbf16>
    %44 = vector.shape_cast %43 : vector<1x128x128xbf16> to vector<128x128xbf16>
    %cst_54 = arith.constant dense<0.000000e+00> : vector<256x128xf32>
    %45 = tpu.matmul %42, %44, %cst_54 {dimension_numbers = #tpu.dot_dimension_numbers<[1], [0], [0], [1], [0, 0, 1, 1], [], []>} : vector<256x128xbf16>, vector<128x128xbf16>, vector<256x128xf32> -> vector<256x128xf32>
    %46 = arith.addf %39, %45 : vector<256x128xf32>
    %c0_55 = arith.constant 0 : index
    %c2_56 = arith.constant 2 : index
    %c0_57 = arith.constant 0 : index
    %c0_58 = arith.constant 0 : index
    %47 = vector.load %arg6[%c0_55, %c2_56, %c0_57, %c0_58] : memref<1x18x18x128xf32, #tpu.memory_space<vmem>>, vector<1x16x16x128xf32>
    %48 = arith.truncf %47 : vector<1x16x16x128xf32> to vector<1x16x16x128xbf16>
    %49 = vector.shape_cast %48 : vector<1x16x16x128xbf16> to vector<256x128xbf16>
    %c6 = arith.constant 6 : index
    %c0_59 = arith.constant 0 : index
    %c0_60 = arith.constant 0 : index
    %50 = vector.load %arg2[%c6, %c0_59, %c0_60] : memref<9x128x128xbf16, #tpu.memory_space<vmem>>, vector<1x128x128xbf16>
    %51 = vector.shape_cast %50 : vector<1x128x128xbf16> to vector<128x128xbf16>
    %cst_61 = arith.constant dense<0.000000e+00> : vector<256x128xf32>
    %52 = tpu.matmul %49, %51, %cst_61 {dimension_numbers = #tpu.dot_dimension_numbers<[1], [0], [0], [1], [0, 0, 1, 1], [], []>} : vector<256x128xbf16>, vector<128x128xbf16>, vector<256x128xf32> -> vector<256x128xf32>
    %53 = arith.addf %46, %52 : vector<256x128xf32>
    %c0_62 = arith.constant 0 : index
    %c2_63 = arith.constant 2 : index
    %c1_64 = arith.constant 1 : index
    %c0_65 = arith.constant 0 : index
    %54 = vector.load %arg6[%c0_62, %c2_63, %c1_64, %c0_65] : memref<1x18x18x128xf32, #tpu.memory_space<vmem>>, vector<1x16x16x128xf32>
    %55 = arith.truncf %54 : vector<1x16x16x128xf32> to vector<1x16x16x128xbf16>
    %56 = vector.shape_cast %55 : vector<1x16x16x128xbf16> to vector<256x128xbf16>
    %c7 = arith.constant 7 : index
    %c0_66 = arith.constant 0 : index
    %c0_67 = arith.constant 0 : index
    %57 = vector.load %arg2[%c7, %c0_66, %c0_67] : memref<9x128x128xbf16, #tpu.memory_space<vmem>>, vector<1x128x128xbf16>
    %58 = vector.shape_cast %57 : vector<1x128x128xbf16> to vector<128x128xbf16>
    %cst_68 = arith.constant dense<0.000000e+00> : vector<256x128xf32>
    %59 = tpu.matmul %56, %58, %cst_68 {dimension_numbers = #tpu.dot_dimension_numbers<[1], [0], [0], [1], [0, 0, 1, 1], [], []>} : vector<256x128xbf16>, vector<128x128xbf16>, vector<256x128xf32> -> vector<256x128xf32>
    %60 = arith.addf %53, %59 : vector<256x128xf32>
    %c0_69 = arith.constant 0 : index
    %c2_70 = arith.constant 2 : index
    %c2_71 = arith.constant 2 : index
    %c0_72 = arith.constant 0 : index
    %61 = vector.load %arg6[%c0_69, %c2_70, %c2_71, %c0_72] : memref<1x18x18x128xf32, #tpu.memory_space<vmem>>, vector<1x16x16x128xf32>
    %62 = arith.truncf %61 : vector<1x16x16x128xf32> to vector<1x16x16x128xbf16>
    %63 = vector.shape_cast %62 : vector<1x16x16x128xbf16> to vector<256x128xbf16>
    %c8 = arith.constant 8 : index
    %c0_73 = arith.constant 0 : index
    %c0_74 = arith.constant 0 : index
    %64 = vector.load %arg2[%c8, %c0_73, %c0_74] : memref<9x128x128xbf16, #tpu.memory_space<vmem>>, vector<1x128x128xbf16>
    %65 = vector.shape_cast %64 : vector<1x128x128xbf16> to vector<128x128xbf16>
    %cst_75 = arith.constant dense<0.000000e+00> : vector<256x128xf32>
    %66 = tpu.matmul %63, %65, %cst_75 {dimension_numbers = #tpu.dot_dimension_numbers<[1], [0], [0], [1], [0, 0, 1, 1], [], []>} : vector<256x128xbf16>, vector<128x128xbf16>, vector<256x128xf32> -> vector<256x128xf32>
    %67 = arith.addf %60, %66 : vector<256x128xf32>
    %68 = arith.truncf %67 : vector<256x128xf32> to vector<256x128xbf16>
    %69 = vector.shape_cast %68 : vector<256x128xbf16> to vector<1x256x128xbf16>
    %c0_76 = arith.constant 0 : index
    %c0_77 = arith.constant 0 : index
    %c0_78 = arith.constant 0 : index
    %70 = vector.load %arg3[%c0_76, %c0_77, %c0_78] : memref<1x256x128xbf16, #tpu.memory_space<vmem>>, vector<1x256x128xbf16>
    tpu.vector_store %arg3[%c0_76, %c0_77, %c0_78], %69 {strides = array<i32>} : memref<1x256x128xbf16, #tpu.memory_space<vmem>>, vector<1x256x128xbf16>,
    %71 = arith.extf %68 : vector<256x128xbf16> to vector<256x128xf32>
    %cst_79 = arith.constant dense<0.000000e+00> : vector<128xf32>
    %72 = vector.multi_reduction <add>, %71, %cst_79 [0] : vector<256x128xf32> to vector<128xf32>
    %73 = vector.shape_cast %72 : vector<128xf32> to vector<1x128xf32>
    %c0_80 = arith.constant 0 : index
    %c0_81 = arith.constant 0 : index
    %c0_82 = arith.constant 0 : index
    %74 = vector.load %arg4[%c0_80, %c0_81, %c0_82] : memref<1x1x128xf32, #tpu.memory_space<vmem>>, vector<1x1x128xf32>
    %75 = vector.shape_cast %74 : vector<1x1x128xf32> to vector<1x128xf32>
    %76 = vector.shape_cast %73 : vector<1x128xf32> to vector<1x1x128xf32>
    tpu.vector_store %arg4[%c0_80, %c0_81, %c0_82], %76 {strides = array<i32>} : memref<1x1x128xf32, #tpu.memory_space<vmem>>, vector<1x1x128xf32>,
    %77 = arith.mulf %71, %71 : vector<256x128xf32>
    %cst_83 = arith.constant dense<0.000000e+00> : vector<128xf32>
    %78 = vector.multi_reduction <add>, %77, %cst_83 [0] : vector<256x128xf32> to vector<128xf32>
    %79 = vector.shape_cast %78 : vector<128xf32> to vector<1x128xf32>
    %c0_84 = arith.constant 0 : index
    %c0_85 = arith.constant 0 : index
    %c0_86 = arith.constant 0 : index
    %80 = vector.load %arg5[%c0_84, %c0_85, %c0_86] : memref<1x1x128xf32, #tpu.memory_space<vmem>>, vector<1x1x128xf32>
    %81 = vector.shape_cast %80 : vector<1x1x128xf32> to vector<1x128xf32>
    %82 = vector.shape_cast %79 : vector<1x128xf32> to vector<1x1x128xf32>
    tpu.vector_store %arg5[%c0_84, %c0_85, %c0_86], %82 {strides = array<i32>} : memref<1x1x128xf32, #tpu.memory_space<vmem>>, vector<1x1x128xf32>,
    return
  }
  func.func @transform_0(%arg0: i32) -> (i32, i32, i32, i32) {
    %c0_i32 = arith.constant 0 : i32
    %c0_i32_0 = arith.constant 0 : i32
    %c0_i32_1 = arith.constant 0 : i32
    %c0_i32_2 = arith.constant 0 : i32
    return %arg0, %c0_i32, %c0_i32_0, %c0_i32_1 : i32, i32, i32, i32
  }
  func.func @transform_1(%arg0: i32) -> (i32, i32, i32) {
    %c0_i32 = arith.constant 0 : i32
    %c0_i32_0 = arith.constant 0 : i32
    %c0_i32_1 = arith.constant 0 : i32
    %c0_i32_2 = arith.constant 0 : i32
    return %c0_i32, %c0_i32_0, %c0_i32_1 : i32, i32, i32
  }
  func.func @transform_2(%arg0: i32) -> (i32, i32, i32) {
    %c0_i32 = arith.constant 0 : i32
    %c0_i32_0 = arith.constant 0 : i32
    %c0_i32_1 = arith.constant 0 : i32
    return %arg0, %c0_i32, %c0_i32_0 : i32, i32, i32
  }
  func.func @transform_3(%arg0: i32) -> (i32, i32, i32) {
    %c0_i32 = arith.constant 0 : i32
    %c0_i32_0 = arith.constant 0 : i32
    %c0_i32_1 = arith.constant 0 : i32
    return %arg0, %c0_i32, %c0_i32_0 : i32, i32, i32
  }
  func.func @transform_4(%arg0: i32) -> (i32, i32, i32) {
    %c0_i32 = arith.constant 0 : i32
    %c0_i32_0 = arith.constant 0 : i32
    %c0_i32_1 = arith.constant 0 : i32
    return %arg0, %c0_i32, %c0_i32_0 : i32, i32, i32
  }
}

</mosaic_0001>

<bundles_post_ra>
// kernel: basic_block_forward.5
= control target key start
LH: loop header
LB: loop body
LE: loop exit
PB: predicated region body
PF: predicated region fallthrough
CT: control target
= control target key end

     0   :  { %s694_s15 = smov 0   ;;  %s914_s0 = inlined_call_operand.vmem [shape: bf16[2,256,128], index: 0, kind: input, shape index: {}]   ;;  %s915_s1 = inlined_call_operand.vmem [shape: f32[2,16,16,4], index: 1, kind: input, shape index: {}]   ;;  %s916_s2 = inlined_call_operand.vmem [shape: f32[1,128], index: 2, kind: input, shape index: {}]   ;;  %s917_s3 = inlined_call_operand.vmem [shape: f32[1,128], index: 3, kind: input, shape index: {}]   ;;  %s918_s4 = inlined_call_operand.vmem [shape: f32[2,16,16,4], index: 4, kind: output, shape index: {}]  }
   0x1 LB: > { %s556_s16 = sadd.s32 4294967295, %s667_s15   ;;  %p560_p0 = scmp.ge.s32.totalorder %s667_s15, 1  ;;  %s667_s15 = sphi %s694_s15, %s14_s15  }
   0x2   : > { %p172_p1 = scmp.lt.s32.totalorder %s667_s15, 3 }
   0x4   : > { %p173_p2 = pnand %p560_p0, %p172_p1 }
   0x5   : > { %p203_p3 = scmp.lt.s32.totalorder (!%p173_p2), %s556_s16, 1  ;;  %v715_v1 = vld [vmem:[%s916_s2] ss:$0 sm:$0xff] (!%p173_p2)  ;;  %vm456_vm0 = vcmask (!%p173_p2), 31744  }
   0x6   : > { %176 = sbr.rel (%p173_p2) target bundleno = 60 (0x3c), region = 36  ;;  %v728_v5 = vld [vmem:[%s917_s3] ss:$0 sm:$0xff] (!%p173_p2) }
   0xd   : > { %s920_s16 = smov (!%p203_p3, %s556_s16), 1 }
   0xe   : > { %s571_s17 = sshll.u32 %s920_s16, 7  ;;  %s572_s18 = sshll.u32 %s920_s16, 8 }
   0xf   : > { %s709_s21 = scalar_lea.vmem %s914_s0, %s571_s17  ;;  %s722_s26 = scalar_lea.vmem %s915_s1, %s572_s18 }
  0x10   : > { %v575_v0 = vld [vmem:[%s709_s21] sm:$0xff]   ;;  %v638_v4 = vld [vmem:[%s709_s21 + $0x8] sm:$0xff]   ;;  %v639_v8 = vld [vmem:[%s709_s21 + $0x10] sm:$0xff]   ;;  %s759_s5 = scalar_lea.vmem %s918_s4, %s572_s18 }
  0x11   : > { %v576_v2 = vunpack.c.l.bf16 %v575_v0  ;;  %v577_v3 = vunpack.c.h.bf16 %v575_v0  ;;  %v580_v6 = vunpack.c.l.bf16 %v638_v4  ;;  %v581_v7 = vunpack.c.h.bf16 %v638_v4  ;;  %v640_v13 = vld [vmem:[%s709_s21 + $0x18] sm:$0xff]   ;;  %v360_v14 = vld [vmem:[%s722_s26] sm:$0xff]  ;;  %v361_v15 = vld [vmem:[%s722_s26 + $0x8] sm:$0xff] }
  0x12   : > { %v584_v11 = vunpack.c.l.bf16 %v639_v8  ;;  %v585_v12 = vunpack.c.h.bf16 %v639_v8  ;;  %v588_v18 = vunpack.c.l.bf16 %v640_v13  ;;  %v589_v19 = vunpack.c.h.bf16 %v640_v13  ;;  %v362_v22 = vld [vmem:[%s722_s26 + $0x10] sm:$0xff]  ;;  %v363_v23 = vld [vmem:[%s722_s26 + $0x18] sm:$0xff]  ;;  %v364_v28 = vld [vmem:[%s722_s26 + $0x20] sm:$0xff] }
  0x13   : > { %v289_v9 = vmul.f32 %v576_v2, %v715_v1  ;;  %v290_v10 = vmul.f32 %v577_v3, %v715_v1  ;;  %v291_v16 = vmul.f32 %v580_v6, %v715_v1  ;;  %v292_v17 = vmul.f32 %v581_v7, %v715_v1  ;;  %v365_v29 = vld [vmem:[%s722_s26 + $0x28] sm:$0xff]  ;;  %v366_v36 = vld [vmem:[%s722_s26 + $0x30] sm:$0xff]  ;;  %v367_v37 = vld [vmem:[%s722_s26 + $0x38] sm:$0xff] }
  0x14   : > { %v293_v24 = vmul.f32 %v584_v11, %v715_v1  ;;  %v294_v25 = vmul.f32 %v585_v12, %v715_v1  ;;  %v295_v30 = vmul.f32 %v588_v18, %v715_v1  ;;  %v296_v31 = vmul.f32 %v589_v19, %v715_v1  ;;  %v641_v42 = vld [vmem:[%s709_s21 + $0x20] sm:$0xff]   ;;  %v642_v47 = vld [vmem:[%s709_s21 + $0x28] sm:$0xff]   ;;  %v643_v52 = vld [vmem:[%s709_s21 + $0x30] sm:$0xff]  }
  0x15   : > { %v328_v20 = vadd.f32 %v728_v5, %v289_v9  ;;  %v329_v21 = vadd.f32 %v728_v5, %v290_v10  ;;  %v330_v26 = vadd.f32 %v728_v5, %v291_v16  ;;  %v331_v27 = vadd.f32 %v728_v5, %v292_v17  ;;  %v644_v57 = vld [vmem:[%s709_s21 + $0x38] sm:$0xff]   ;;  %v368_v3 = vld [vmem:[%s722_s26 + $0x40] sm:$0xff]  ;;  %v369_v4 = vld [vmem:[%s722_s26 + $0x48] sm:$0xff] }
  0x16   : > { %v332_v34 = vadd.f32 %v728_v5, %v293_v24  ;;  %v333_v35 = vadd.f32 %v728_v5, %v294_v25  ;;  %v334_v40 = vadd.f32 %v728_v5, %v295_v30  ;;  %v335_v41 = vadd.f32 %v728_v5, %v296_v31  ;;  %v370_v12 = vld [vmem:[%s722_s26 + $0x50] sm:$0xff]  ;;  %v371_v13 = vld [vmem:[%s722_s26 + $0x58] sm:$0xff]  ;;  %v372_v18 = vld [vmem:[%s722_s26 + $0x60] sm:$0xff] }
  0x17   : > { %v392_v32 = vadd.f32 %v360_v14, %v328_v20  ;;  %v393_v33 = vadd.f32 %v361_v15, %v329_v21  ;;  %v394_v38 = vadd.f32 %v362_v22, %v330_v26  ;;  %v395_v39 = vadd.f32 %v363_v23, %v331_v27  ;;  %v373_v19 = vld [vmem:[%s722_s26 + $0x68] sm:$0xff]  ;;  %v374_v26 = vld [vmem:[%s722_s26 + $0x70] sm:$0xff]  ;;  %v375_v27 = vld [vmem:[%s722_s26 + $0x78] sm:$0xff] }
  0x18   : > { %v396_v45 = vadd.f32 %v364_v28, %v332_v34  ;;  %v397_v46 = vadd.f32 %v365_v29, %v333_v35  ;;  %v398_v50 = vadd.f32 %v366_v36, %v334_v40  ;;  %v399_v51 = vadd.f32 %v367_v37, %v335_v41  ;;  %v646_v37 = vld [vmem:[%s709_s21 + $0x48] sm:$0xff]  }
  0x19   : > { %v424_v43 = vmax.f32 %v392_v32, 0.0  ;;  %v425_v44 = vmax.f32 %v393_v33, 0.0  ;;  %v426_v48 = vmax.f32 %v394_v38, 0.0  ;;  %v427_v49 = vmax.f32 %v395_v39, 0.0  ;;  %v645_v32 = vld [vmem:[%s709_s21 + $0x40] sm:$0xff]  }
  0x1a   : > { %v428_v53 = vmax.f32 %v396_v45, 0.0  ;;  %v429_v54 = vmax.f32 %v397_v46, 0.0  ;;  %v592_v55 = vunpack.c.l.bf16 %v641_v42  ;;  %v593_v56 = vunpack.c.h.bf16 %v641_v42  ;;  %v647_v42 = vld [vmem:[%s709_s21 + $0x50] sm:$0xff]  }
  0x1b   : > { %457 = vst.msk [vmem:[%s759_s5] sm:$0xff] %vm456_vm0, %v424_v43  ;;  %458 = vst.msk [vmem:[%s759_s5 + $0x8] sm:$0xff] %vm456_vm0, %v425_v44  ;;  %v430_v58 = vmax.f32 %v398_v50, 0.0  ;;  %v431_v59 = vmax.f32 %v399_v51, 0.0  ;;  %v596_v60 = vunpack.c.l.bf16 %v642_v47  ;;  %v597_v61 = vunpack.c.h.bf16 %v642_v47  ;;  %v648_v47 = vld [vmem:[%s709_s21 + $0x58] sm:$0xff]  }
  0x1c   : > { %459 = vst.msk [vmem:[%s759_s5 + $0x10] sm:$0xff] %vm456_vm0, %v426_v48  ;;  %460 = vst.msk [vmem:[%s759_s5 + $0x18] sm:$0xff] %vm456_vm0, %v427_v49  ;;  %v297_v62 = vmul.f32 %v592_v55, %v715_v1  ;;  %v298_v63 = vmul.f32 %v593_v56, %v715_v1  ;;  %v600_v0 = vunpack.c.l.bf16 %v643_v52  ;;  %v601_v2 = vunpack.c.h.bf16 %v643_v52  ;;  %v376_v56 = vld [vmem:[%s722_s26 + $0x80] sm:$0xff] }
  0x1d   : > { %461 = vst.msk [vmem:[%s759_s5 + $0x20] sm:$0xff] %vm456_vm0, %v428_v53  ;;  %462 = vst.msk [vmem:[%s759_s5 + $0x28] sm:$0xff] %vm456_vm0, %v429_v54  ;;  %v299_v6 = vmul.f32 %v596_v60, %v715_v1  ;;  %v300_v7 = vmul.f32 %v597_v61, %v715_v1  ;;  %v604_v8 = vunpack.c.l.bf16 %v644_v57  ;;  %v605_v9 = vunpack.c.h.bf16 %v644_v57  ;;  %v377_v57 = vld [vmem:[%s722_s26 + $0x88] sm:$0xff] }
  0x1e   : > { %463 = vst.msk [vmem:[%s759_s5 + $0x30] sm:$0xff] %vm456_vm0, %v430_v58  ;;  %464 = vst.msk [vmem:[%s759_s5 + $0x38] sm:$0xff] %vm456_vm0, %v431_v59  ;;  %v336_v10 = vadd.f32 %v728_v5, %v297_v62  ;;  %v337_v11 = vadd.f32 %v728_v5, %v298_v63  ;;  %v301_v14 = vmul.f32 %v600_v0, %v715_v1  ;;  %v608_v45 = vunpack.c.l.bf16 %v645_v32  ;;  %v378_v0 = vld [vmem:[%s722_s26 + $0x90] sm:$0xff] }
  0x1f   : > { %v302_v15 = vmul.f32 %v601_v2, %v715_v1  ;;  %v338_v16 = vadd.f32 %v728_v5, %v299_v6  ;;  %v339_v17 = vadd.f32 %v728_v5, %v300_v7  ;;  %v303_v20 = vmul.f32 %v604_v8, %v715_v1  ;;  %v379_v2 = vld [vmem:[%s722_s26 + $0x98] sm:$0xff]  ;;  %v380_v8 = vld [vmem:[%s722_s26 + $0xa0] sm:$0xff] }
  0x20   : > { %v304_v21 = vmul.f32 %v605_v9, %v715_v1  ;;  %v400_v22 = vadd.f32 %v368_v3, %v336_v10  ;;  %v401_v23 = vadd.f32 %v369_v4, %v337_v11  ;;  %v340_v24 = vadd.f32 %v728_v5, %v301_v14  ;;  %v381_v9 = vld [vmem:[%s722_s26 + $0xa8] sm:$0xff] }
  0x21   : > { %v341_v25 = vadd.f32 %v728_v5, %v302_v15  ;;  %v402_v28 = vadd.f32 %v370_v12, %v338_v16  ;;  %v403_v29 = vadd.f32 %v371_v13, %v339_v17  ;;  %v342_v30 = vadd.f32 %v728_v5, %v303_v20  ;;  %v382_v16 = vld [vmem:[%s722_s26 + $0xb0] sm:$0xff]  ;;  %v383_v17 = vld [vmem:[%s722_s26 + $0xb8] sm:$0xff] }
  0x22   : > { %v343_v31 = vadd.f32 %v728_v5, %v304_v21  ;;  %v432_v33 = vmax.f32 %v400_v22, 0.0  ;;  %v433_v34 = vmax.f32 %v401_v23, 0.0  ;;  %v404_v35 = vadd.f32 %v372_v18, %v340_v24  ;;  %v649_v22 = vld [vmem:[%s709_s21 + $0x60] sm:$0xff]  }
  0x23   : > { %v405_v36 = vadd.f32 %v373_v19, %v341_v25  ;;  %v434_v38 = vmax.f32 %v402_v28, 0.0  ;;  %v435_v39 = vmax.f32 %v403_v29, 0.0  ;;  %v406_v40 = vadd.f32 %v374_v26, %v342_v30 }
  0x24   : > { %v407_v41 = vadd.f32 %v375_v27, %v343_v31  ;;  %465 = vst.msk [vmem:[%s759_s5 + $0x40] sm:$0xff] %vm456_vm0, %v432_v33  ;;  %466 = vst.msk [vmem:[%s759_s5 + $0x48] sm:$0xff] %vm456_vm0, %v433_v34  ;;  %v436_v43 = vmax.f32 %v404_v35, 0.0  ;;  %v609_v46 = vunpack.c.h.bf16 %v645_v32  ;;  %v612_v50 = vunpack.c.l.bf16 %v646_v37  ;;  %v650_v27 = vld [vmem:[%s709_s21 + $0x68] sm:$0xff]   ;;  %v651_v32 = vld [vmem:[%s709_s21 + $0x70] sm:$0xff]  }
  0x25   : > { %v437_v44 = vmax.f32 %v405_v36, 0.0  ;;  %467 = vst.msk [vmem:[%s759_s5 + $0x50] sm:$0xff] %vm456_vm0, %v434_v38  ;;  %468 = vst.msk [vmem:[%s759_s5 + $0x58] sm:$0xff] %vm456_vm0, %v435_v39  ;;  %v438_v48 = vmax.f32 %v406_v40, 0.0  ;;  %v613_v51 = vunpack.c.h.bf16 %v646_v37  ;;  %v305_v52 = vmul.f32 %v608_v45, %v715_v1  ;;  %v652_v37 = vld [vmem:[%s709_s21 + $0x78] sm:$0xff]  }
  0x26   : > { %v439_v49 = vmax.f32 %v407_v41, 0.0  ;;  %469 = vst.msk [vmem:[%s759_s5 + $0x60] sm:$0xff] %vm456_vm0, %v436_v43  ;;  %v306_v53 = vmul.f32 %v609_v46, %v715_v1  ;;  %v616_v54 = vunpack.c.l.bf16 %v647_v42  ;;  %v617_v55 = vunpack.c.h.bf16 %v647_v42  ;;  %v384_v46 = vld [vmem:[%s722_s26 + $0xc0] sm:$0xff] }
  0x27   : > { %470 = vst.msk [vmem:[%s759_s5 + $0x68] sm:$0xff] %vm456_vm0, %v437_v44  ;;  %471 = vst.msk [vmem:[%s759_s5 + $0x70] sm:$0xff] %vm456_vm0, %v438_v48  ;;  %v307_v58 = vmul.f32 %v612_v50, %v715_v1  ;;  %v308_v59 = vmul.f32 %v613_v51, %v715_v1  ;;  %v620_v60 = vunpack.c.l.bf16 %v648_v47  ;;  %v621_v61 = vunpack.c.h.bf16 %v648_v47  ;;  %v385_v47 = vld [vmem:[%s722_s26 + $0xc8] sm:$0xff] }
  0x28   : > { %472 = vst.msk [vmem:[%s759_s5 + $0x78] sm:$0xff] %vm456_vm0, %v439_v49  ;;  %v344_v62 = vadd.f32 %v728_v5, %v305_v52  ;;  %v345_v63 = vadd.f32 %v728_v5, %v306_v53  ;;  %v309_v3 = vmul.f32 %v616_v54, %v715_v1  ;;  %v310_v4 = vmul.f32 %v617_v55, %v715_v1  ;;  %v386_v54 = vld [vmem:[%s722_s26 + $0xd0] sm:$0xff]  ;;  %v387_v55 = vld [vmem:[%s722_s26 + $0xd8] sm:$0xff] }
  0x29   : > { %v346_v6 = vadd.f32 %v728_v5, %v307_v58  ;;  %v347_v7 = vadd.f32 %v728_v5, %v308_v59  ;;  %v311_v10 = vmul.f32 %v620_v60, %v715_v1  ;;  %v312_v11 = vmul.f32 %v621_v61, %v715_v1  ;;  %v388_v60 = vld [vmem:[%s722_s26 + $0xe0] sm:$0xff]  ;;  %v389_v61 = vld [vmem:[%s722_s26 + $0xe8] sm:$0xff] }
  0x2a   : > { %v408_v12 = vadd.f32 %v376_v56, %v344_v62  ;;  %v409_v13 = vadd.f32 %v377_v57, %v345_v63  ;;  %v348_v14 = vadd.f32 %v728_v5, %v309_v3  ;;  %v349_v15 = vadd.f32 %v728_v5, %v310_v4 }
  0x2b   : > { %v410_v18 = vadd.f32 %v378_v0, %v346_v6  ;;  %v411_v19 = vadd.f32 %v379_v2, %v347_v7  ;;  %v350_v20 = vadd.f32 %v728_v5, %v311_v10  ;;  %v351_v21 = vadd.f32 %v728_v5, %v312_v11  ;;  %v390_v6 = vld [vmem:[%s722_s26 + $0xf0] sm:$0xff]  ;;  %v391_v7 = vld [vmem:[%s722_s26 + $0xf8] sm:$0xff] }
  0x2c   : > { %v440_v23 = vmax.f32 %v408_v12, 0.0  ;;  %v441_v24 = vmax.f32 %v409_v13, 0.0  ;;  %v412_v25 = vadd.f32 %v380_v8, %v348_v14  ;;  %v413_v26 = vadd.f32 %v381_v9, %v349_v15 }
  0x2d   : > { %v442_v28 = vmax.f32 %v410_v18, 0.0  ;;  %v443_v29 = vmax.f32 %v411_v19, 0.0  ;;  %v414_v30 = vadd.f32 %v382_v16, %v350_v20  ;;  %v415_v31 = vadd.f32 %v383_v17, %v351_v21 }
  0x2e   : > { %473 = vst.msk [vmem:[%s759_s5 + $0x80] sm:$0xff] %vm456_vm0, %v440_v23  ;;  %474 = vst.msk [vmem:[%s759_s5 + $0x88] sm:$0xff] %vm456_vm0, %v441_v24  ;;  %v444_v33 = vmax.f32 %v412_v25, 0.0  ;;  %v445_v34 = vmax.f32 %v413_v26, 0.0  ;;  %v624_v35 = vunpack.c.l.bf16 %v649_v22  ;;  %v625_v36 = vunpack.c.h.bf16 %v649_v22 }
  0x2f   : > { %475 = vst.msk [vmem:[%s759_s5 + $0x90] sm:$0xff] %vm456_vm0, %v442_v28  ;;  %476 = vst.msk [vmem:[%s759_s5 + $0x98] sm:$0xff] %vm456_vm0, %v443_v29  ;;  %v446_v38 = vmax.f32 %v414_v30, 0.0  ;;  %v447_v39 = vmax.f32 %v415_v31, 0.0  ;;  %v628_v40 = vunpack.c.l.bf16 %v650_v27  ;;  %v629_v41 = vunpack.c.h.bf16 %v650_v27 }
  0x30   : > { %477 = vst.msk [vmem:[%s759_s5 + $0xa0] sm:$0xff] %vm456_vm0, %v444_v33  ;;  %478 = vst.msk [vmem:[%s759_s5 + $0xa8] sm:$0xff] %vm456_vm0, %v445_v34  ;;  %v313_v42 = vmul.f32 %v624_v35, %v715_v1  ;;  %v314_v43 = vmul.f32 %v625_v36, %v715_v1  ;;  %v632_v44 = vunpack.c.l.bf16 %v651_v32  ;;  %v633_v45 = vunpack.c.h.bf16 %v651_v32 }
  0x31   : > { %479 = vst.msk [vmem:[%s759_s5 + $0xb0] sm:$0xff] %vm456_vm0, %v446_v38  ;;  %480 = vst.msk [vmem:[%s759_s5 + $0xb8] sm:$0xff] %vm456_vm0, %v447_v39  ;;  %v315_v48 = vmul.f32 %v628_v40, %v715_v1  ;;  %v316_v49 = vmul.f32 %v629_v41, %v715_v1  ;;  %v636_v50 = vunpack.c.l.bf16 %v652_v37  ;;  %v637_v51 = vunpack.c.h.bf16 %v652_v37 }
  0x32   : > { %v352_v52 = vadd.f32 %v728_v5, %v313_v42  ;;  %v353_v53 = vadd.f32 %v728_v5, %v314_v43  ;;  %v317_v56 = vmul.f32 %v632_v44, %v715_v1  ;;  %v318_v57 = vmul.f32 %v633_v45, %v715_v1 }
  0x33   : > { %v354_v58 = vadd.f32 %v728_v5, %v315_v48  ;;  %v355_v59 = vadd.f32 %v728_v5, %v316_v49  ;;  %v319_v62 = vmul.f32 %v636_v50, %v715_v1  ;;  %v320_v63 = vmul.f32 %v637_v51, %v715_v1 }
  0x34   : > { %v416_v0 = vadd.f32 %v384_v46, %v352_v52  ;;  %v417_v2 = vadd.f32 %v385_v47, %v353_v53  ;;  %v356_v3 = vadd.f32 %v728_v5, %v317_v56  ;;  %v357_v4 = vadd.f32 %v728_v5, %v318_v57 }
  0x35   : > { %v418_v8 = vadd.f32 %v386_v54, %v354_v58  ;;  %v419_v9 = vadd.f32 %v387_v55, %v355_v59  ;;  %v358_v10 = vadd.f32 %v728_v5, %v319_v62  ;;  %v359_v11 = vadd.f32 %v728_v5, %v320_v63 }
  0x36   : > { %v448_v12 = vmax.f32 %v416_v0, 0.0  ;;  %v449_v1 = vmax.f32 %v417_v2, 0.0  ;;  %v420_v13 = vadd.f32 %v388_v60, %v356_v3  ;;  %v421_v14 = vadd.f32 %v389_v61, %v357_v4 }
  0x37   : > { %v450_v15 = vmax.f32 %v418_v8, 0.0  ;;  %v451_v16 = vmax.f32 %v419_v9, 0.0  ;;  %v422_v17 = vadd.f32 %v390_v6, %v358_v10  ;;  %v423_v18 = vadd.f32 %v391_v7, %v359_v11 }
  0x38   : > { %481 = vst.msk [vmem:[%s759_s5 + $0xc0] sm:$0xff] %vm456_vm0, %v448_v12  ;;  %482 = vst.msk [vmem:[%s759_s5 + $0xc8] sm:$0xff] %vm456_vm0, %v449_v1  ;;  %v452_v19 = vmax.f32 %v420_v13, 0.0  ;;  %v453_v20 = vmax.f32 %v421_v14, 0.0 }
  0x39   : > { %483 = vst.msk [vmem:[%s759_s5 + $0xd0] sm:$0xff] %vm456_vm0, %v450_v15  ;;  %484 = vst.msk [vmem:[%s759_s5 + $0xd8] sm:$0xff] %vm456_vm0, %v451_v16  ;;  %v454_v5 = vmax.f32 %v422_v17, 0.0  ;;  %v455_v21 = vmax.f32 %v423_v18, 0.0 }
  0x3a   : > { %485 = vst.msk [vmem:[%s759_s5 + $0xe0] sm:$0xff] %vm456_vm0, %v452_v19  ;;  %486 = vst.msk [vmem:[%s759_s5 + $0xe8] sm:$0xff] %vm456_vm0, %v453_v20 }
  0x3b   : > { %487 = vst.msk [vmem:[%s759_s5 + $0xf0] sm:$0xff] %vm456_vm0, %v454_v5  ;;  %488 = vst.msk [vmem:[%s759_s5 + $0xf8] sm:$0xff] %vm456_vm0, %v455_v21 }
  0x3c PF: > { %s14_s15 = sadd.s32 1, %s667_s15  }
  0x3d   : > { %p11_p4 = scmp.ge.s32.totalorder %s14_s15, 4  }
  0x3f   :  { %13 = sbr.rel (!%p11_p4) target bundleno = 1 (0x1), region = 69 }

// kernel: basic_block_forward.4
= control target key start
LH: loop header
LB: loop body
LE: loop exit
PB: predicated region body
PF: predicated region fallthrough
CT: control target
= control target key end

     0   :  { %s5122_s21 = smov 0   ;;  %s5872_s0 = inlined_call_operand.vmem [shape: bf16[2,256,128], index: 0, kind: input, shape index: {}]   ;;  %s5873_s1 = inlined_call_operand.vmem [shape: f32[1,128], index: 1, kind: input, shape index: {}]   ;;  %s5874_s2 = inlined_call_operand.vmem [shape: f32[1,128], index: 2, kind: input, shape index: {}]   ;;  %s5875_s3 = inlined_call_operand.vmem [shape: bf16[9,128,128], index: 3, kind: input, shape index: {}]   ;;  %s5876_s4 = inlined_call_operand.vmem [shape: bf16[2,256,128], index: 4, kind: output, shape index: {0}]   ;;  %s5877_s5 = inlined_call_operand.vmem [shape: f32[2,1,128], index: 5, kind: output, shape index: {1}]   ;;  %s5878_s6 = inlined_call_operand.vmem [shape: f32[2,1,128], index: 6, kind: output, shape index: {2}]  }
   0x1 LB: > { %s3615_s22 = sadd.s32 4294967295, %s5084_s21   ;;  %p3619_p0 = scmp.ge.s32.totalorder %s5084_s21, 1  ;;  %s5084_s21 = sphi %s5122_s21, %s17_s21  }
   0x2   : > { %p217_p1 = scmp.lt.s32.totalorder %s5084_s21, 3 }
   0x4   : > { %p218_p2 = pnand %p3619_p0, %p217_p1 }
   0x5   : > { %v4997_v0 = vld [vmem:[%s5875_s3 + $0x40] sm:$0xff] (!%p218_p2)   ;;  %v5086_v2 = vmov (!%p218_p2), 0.0   ;;  %v4999_v3 = vld [vmem:[%s5875_s3 + $0x48] sm:$0xff] (!%p218_p2)   ;;  %p253_p3 = scmp.lt.s32.totalorder (!%p218_p2), %s3615_s22, 1  ;;  %v5001_v5 = vld [vmem:[%s5875_s3 + $0x50] sm:$0xff] (!%p218_p2)  }
   0x6   : > { %221 = sbr.rel (%p218_p2) target bundleno = 563 (0x233), region = 36  ;;  %v4998_v1 = vld [vmem:[%s5875_s3 + $0x100] sm:$0xff] (!%p218_p2)   ;;  %444 = vst [vmem:[#allocation2] sm:$0xff] (!%p218_p2), %v5086_v2  ;;  %445 = vst [vmem:[#allocation2 + $0x8] sm:$0xff] (!%p218_p2), %v5086_v2  ;;  %4284 = vmatprep.subr.bf16.mxu1 (!%p218_p2), %v4997_v0  ;;  %v5000_v4 = vld [vmem:[%s5875_s3 + $0x108] sm:$0xff] (!%p218_p2)  }
   0x7   : > { %446 = vst [vmem:[#allocation2 + $0x10] sm:$0x3] (!%p218_p2), %v5086_v2  ;;  %448 = vst [vmem:[#allocation2 + $0x198] sm:$0xff] (!%p218_p2), %v5086_v2  ;;  %4476 = vmatprep.subr.bf16.mxu0 (!%p218_p2), %v4998_v1  ;;  %4285 = vmatpush3.bf16.msra.mxu1 (!%p218_p2), %v4997_v0  ;;  %v5002_v6 = vld [vmem:[%s5875_s3 + $0x110] sm:$0xff] (!%p218_p2)   ;;  %v5003_v7 = vld [vmem:[%s5875_s3 + $0x58] sm:$0xff] (!%p218_p2)  }
   0x8   : > { %449 = vst [vmem:[#allocation2 + $0x1a0] sm:$0xff] (!%p218_p2), %v5086_v2  ;;  %450 = vst [vmem:[#allocation2 + $0x1a8] sm:$0x3] (!%p218_p2), %v5086_v2  ;;  %4477 = vmatpush3.bf16.msra.mxu0 (!%p218_p2), %v4998_v1  ;;  %4286 = vmatprep.subr.bf16.mxu1 (!%p218_p2), %v4999_v3  ;;  %v5004_v8 = vld [vmem:[%s5875_s3 + $0x118] sm:$0xff] (!%p218_p2)   ;;  %v5005_v9 = vld [vmem:[%s5875_s3 + $0x60] sm:$0xff] (!%p218_p2)  }
   0x9   : > { %452 = vst [vmem:[#allocation2 + $0x18] sm:$0x1] (!%p218_p2), %v5086_v2  ;;  %453 = vst [vmem:[#allocation2 + $0x30] sm:$0x1] (!%p218_p2), %v5086_v2  ;;  %4478 = vmatprep.subr.bf16.mxu0 (!%p218_p2), %v5000_v4  ;;  %v5006_v10 = vld [vmem:[%s5875_s3 + $0x120] sm:$0xff] (!%p218_p2)   ;;  %v5007_v11 = vld [vmem:[%s5875_s3 + $0x68] sm:$0xff] (!%p218_p2)  }
   0xa   : > { %454 = vst [vmem:[#allocation2 + $0x48] sm:$0x1] (!%p218_p2), %v5086_v2  ;;  %455 = vst [vmem:[#allocation2 + $0x60] sm:$0x1] (!%p218_p2), %v5086_v2  ;;  %v5008_v15 = vld [vmem:[%s5875_s3 + $0x128] sm:$0xff] (!%p218_p2)   ;;  %v5009_v22 = vld [vmem:[%s5875_s3 + $0x70] sm:$0xff] (!%p218_p2)  }
   0xb   : > { %456 = vst [vmem:[#allocation2 + $0x78] sm:$0x1] (!%p218_p2), %v5086_v2  ;;  %457 = vst [vmem:[#allocation2 + $0x90] sm:$0x1] (!%p218_p2), %v5086_v2  ;;  %4287 = vmatpush3.bf16.msra.mxu1 (!%p218_p2), %v4999_v3  ;;  %v5184_v19 = vld [vmem:[%s5873_s1] ss:$0 sm:$0xff] (!%p218_p2) }
   0xc   : > { %458 = vst [vmem:[#allocation2 + $0xa8] sm:$0x1] (!%p218_p2), %v5086_v2  ;;  %459 = vst [vmem:[#allocation2 + $0xc0] sm:$0x1] (!%p218_p2), %v5086_v2  ;;  %4479 = vmatpush3.bf16.msra.mxu0 (!%p218_p2), %v5000_v4  ;;  %4288 = vmatprep.subr.bf16.mxu1 (!%p218_p2), %v5001_v5  ;;  %v5189_v20 = vld [vmem:[%s5874_s2] ss:$0 sm:$0xff] (!%p218_p2) }
   0xd   : > { %460 = vst [vmem:[#allocation2 + $0xd8] sm:$0x1] %v5086_v2  ;;  %461 = vst [vmem:[#allocation2 + $0xf0] sm:$0x1] %v5086_v2  ;;  %s5880_s22 = smov (!%p253_p3, %s3615_s22), 1  ;;  %4480 = vmatprep.subr.bf16.mxu0 %v5002_v6  ;;  %v584_v12 = vld [vmem:[#allocation2 + $0x1] sm:$0xff] }
   0xe   : > { %462 = vst [vmem:[#allocation2 + $0x108] sm:$0x1] %v5086_v2  ;;  %463 = vst [vmem:[#allocation2 + $0x120] sm:$0x1] %v5086_v2  ;;  %s3860_s15 = sshll.u32 %s5880_s22, 7  ;;  %v585_v13 = vld [vmem:[#allocation2 + $0x9] sm:$0xff]  ;;  %s265_s28 = scalar_lea.vmem %s5877_s5, %s5880_s22 }
   0xf   : > { %464 = vst [vmem:[#allocation2 + $0x138] sm:$0x1] %v5086_v2  ;;  %465 = vst [vmem:[#allocation2 + $0x150] sm:$0x1] %v5086_v2  ;;  %4289 = vmatpush3.bf16.msra.mxu1 %v5001_v5  ;;  %s5172_s24 = scalar_lea.vmem %s5872_s0, %s3860_s15  ;;  %v616_v16 = vpack.c.bf16 %v585_v13, %v584_v12  ;;  %v5010_v27 = vld [vmem:[%s5875_s3 + $0x130] sm:$0xff]   ;;  %v5011_v36 = vld [vmem:[%s5875_s3 + $0x78] sm:$0xff]   ;;  %s5839_s26 = scalar_lea.vmem %s5876_s4, %s3860_s15 }
  0x10   : > { %466 = vst [vmem:[#allocation2 + $0x168] sm:$0x1] %v5086_v2  ;;  %467 = vst [vmem:[#allocation2 + $0x180] sm:$0x1] %v5086_v2  ;;  %4481 = vmatpush3.bf16.msra.mxu0 %v5002_v6  ;;  %4290 = vmatprep.subr.bf16.mxu1 %v5003_v7  ;;  %v3895_v14 = vld [vmem:[%s5172_s24] sm:$0xff]   ;;  %v4038_v21 = vld [vmem:[%s5172_s24 + $0x8] sm:$0xff]   ;;  %s268_s7 = scalar_lea.vmem %s5878_s6, %s5880_s22 }
  0x11   : > { %470 = vst [vmem:[#allocation2 + $0x29] sm:$0x1] %v5086_v2  ;;  %471 = vst [vmem:[#allocation2 + $0x41] sm:$0x1] %v5086_v2  ;;  %4482 = vmatprep.subr.bf16.mxu0 %v5004_v8  ;;  %v3896_v17 = vunpack.c.l.bf16 %v3895_v14  ;;  %v3897_v18 = vunpack.c.h.bf16 %v3895_v14  ;;  %4300 = vmatprep.mubr.bf16.mxu1 %v616_v16  ;;  %v3900_v25 = vunpack.c.l.bf16 %v4038_v21  ;;  %v3901_v26 = vunpack.c.h.bf16 %v4038_v21  ;;  %v4039_v32 = vld [vmem:[%s5172_s24 + $0x10] sm:$0xff]   ;;  %v4040_v35 = vld [vmem:[%s5172_s24 + $0x18] sm:$0xff]  }
  0x12   : > { %472 = vst [vmem:[#allocation2 + $0x59] sm:$0x1] %v5086_v2  ;;  %473 = vst [vmem:[#allocation2 + $0x71] sm:$0x1] %v5086_v2  ;;  %v3904_v33 = vunpack.c.l.bf16 %v4039_v32  ;;  %v3905_v34 = vunpack.c.h.bf16 %v4039_v32  ;;  %v5012_v37 = vld [vmem:[%s5875_s3 + $0x138] sm:$0xff]   ;;  %v3908_v44 = vunpack.c.l.bf16 %v4040_v35  ;;  %v3909_v45 = vunpack.c.h.bf16 %v4040_v35  ;;  %v4041_v46 = vld [vmem:[%s5172_s24 + $0x20] sm:$0xff]  }
  0x13   : > { %474 = vst [vmem:[#allocation2 + $0x89] sm:$0x1] %v5086_v2  ;;  %475 = vst [vmem:[#allocation2 + $0xa1] sm:$0x1] %v5086_v2  ;;  %4291 = vmatpush3.bf16.msra.mxu1 %v5003_v7  ;;  %v341_v23 = vmul.f32 %v3896_v17, %v5184_v19  ;;  %v342_v24 = vmul.f32 %v3897_v18, %v5184_v19  ;;  %v343_v30 = vmul.f32 %v3900_v25, %v5184_v19  ;;  %v4042_v55 = vld [vmem:[%s5172_s24 + $0x28] sm:$0xff]   ;;  %v5013_v59 = vld [vmem:[%s5875_s3] sm:$0xff]  }
  0x14   : > { %476 = vst [vmem:[#allocation2 + $0xb9] sm:$0x1] %v5086_v2  ;;  %477 = vst [vmem:[#allocation2 + $0xd1] sm:$0x1] %v5086_v2  ;;  %4483 = vmatpush3.bf16.msra.mxu0 %v5004_v8  ;;  %4292 = vmatprep.subr.bf16.mxu1 %v5005_v9  ;;  %v344_v31 = vmul.f32 %v3901_v26, %v5184_v19  ;;  %v345_v42 = vmul.f32 %v3904_v33, %v5184_v19  ;;  %v3912_v50 = vunpack.c.l.bf16 %v4041_v46  ;;  %v4043_v0 = vld [vmem:[%s5172_s24 + $0x30] sm:$0xff]   ;;  %v5014_v1 = vld [vmem:[%s5875_s3 + $0x140] sm:$0xff]  }
  0x15   : > { %478 = vst [vmem:[#allocation2 + $0xe9] sm:$0x1] %v5086_v2  ;;  %479 = vst [vmem:[#allocation2 + $0x101] sm:$0x1] %v5086_v2  ;;  %4484 = vmatprep.subr.bf16.mxu0 %v5006_v10  ;;  %v380_v28 = vadd.f32 %v5189_v20, %v341_v23  ;;  %v381_v29 = vadd.f32 %v5189_v20, %v342_v24  ;;  %v382_v40 = vadd.f32 %v5189_v20, %v343_v30  ;;  %v5015_v21 = vld [vmem:[%s5875_s3 + $0x148] sm:$0xff]   ;;  %v4045_v26 = vld [vmem:[%s5172_s24 + $0x40] sm:$0xff]  }
  0x16   : > { %480 = vst [vmem:[#allocation2 + $0x119] sm:$0x1] %v5086_v2  ;;  %481 = vst [vmem:[#allocation2 + $0x131] sm:$0x1] %v5086_v2  ;;  %v383_v41 = vadd.f32 %v5189_v20, %v344_v31  ;;  %v346_v43 = vmul.f32 %v3905_v34, %v5184_v19  ;;  %v384_v51 = vadd.f32 %v5189_v20, %v345_v42  ;;  %v3913_v56 = vunpack.c.h.bf16 %v4041_v46  ;;  %v5019_v34 = vld [vmem:[%s5875_s3 + $0x10] sm:$0xff]  }
  0x17   : > { %482 = vst [vmem:[#allocation2 + $0x149] sm:$0x1] %v5086_v2  ;;  %483 = vst [vmem:[#allocation2 + $0x161] sm:$0x1] %v5086_v2  ;;  %4293 = vmatpush3.bf16.msra.mxu1 %v5005_v9  ;;  %v412_v38 = vmax.f32 %v380_v28, 0.0  ;;  %v413_v39 = vmax.f32 %v381_v29, 0.0  ;;  %v347_v53 = vmul.f32 %v3908_v44, %v5184_v19  ;;  %v348_v54 = vmul.f32 %v3909_v45, %v5184_v19 }
  0x18   : > { %484 = vst [vmem:[#allocation2 + $0x179] sm:$0x1] %v5086_v2  ;;  %485 = vst [vmem:[#allocation2 + $0x191] sm:$0x1] %v5086_v2  ;;  %4485 = vmatpush3.bf16.msra.mxu0 %v5006_v10  ;;  %4294 = vmatprep.subr.bf16.mxu1 %v5007_v11  ;;  %v414_v48 = vmax.f32 %v382_v40, 0.0  ;;  %v415_v49 = vmax.f32 %v383_v41, 0.0  ;;  %v385_v52 = vadd.f32 %v5189_v20, %v346_v43  ;;  %v3916_v58 = vunpack.c.l.bf16 %v4042_v55 }
  0x19   : > { %469 = vst [vmem:[#allocation2 + $0x11] sm:$0x1] %v5086_v2  ;;  %451 = vst [vmem:[#allocation2] sm:$0x1] %v5086_v2  ;;  %4486 = vmatprep.subr.bf16.mxu0 %v5008_v15  ;;  %v1711_v47 = vpack.c.bf16 %v413_v39, %v412_v38  ;;  %v349_v57 = vmul.f32 %v3912_v50, %v5184_v19  ;;  %v416_v60 = vmax.f32 %v384_v51, 0.0  ;;  %v3917_v4 = vunpack.c.h.bf16 %v4042_v55  ;;  %v4044_v10 = vld [vmem:[%s5172_s24 + $0x38] sm:$0xff]  }
  0x1a   : > { %468 = vst [vmem:[#allocation2 + $0x198] sm:$0x1] %v5086_v2  ;;  %486 = vst [vmem:[#allocation2 + $0x1a9] sm:$0x1] %v5086_v2  ;;  %v417_v61 = vmax.f32 %v385_v52, 0.0  ;;  %v5227_v62 = vadd.f32 %v5189_v20, %v347_v53  ;;  %v5230_v63 = vadd.f32 %v5189_v20, %v348_v54  ;;  %v350_v2 = vmul.f32 %v3913_v56, %v5184_v19  ;;  %v5017_v40 = vld [vmem:[%s5875_s3 + $0x150] sm:$0xff]  }
  0x1b   : > { %4295 = vmatpush3.bf16.msra.mxu1 %v5007_v11  ;;  %488 = vst [vmem:[#allocation2 + $0x19] sm:$0xff] %v412_v38  ;;  %489 = vst [vmem:[#allocation2 + $0x21] sm:$0xff] %v413_v39  ;;  %4492 = vmatprep.mubr.bf16.mxu0 %v1711_v47  ;;  %v5238_v3 = vadd.f32 %v5189_v20, %v349_v57  ;;  %v351_v5 = vmul.f32 %v3916_v58, %v5184_v19  ;;  %v3920_v9 = vunpack.c.l.bf16 %v4043_v0  ;;  %v4046_v39 = vld [vmem:[%s5172_s24 + $0x48] sm:$0xff]   ;;  %v4047_v44 = vld [vmem:[%s5172_s24 + $0x50] sm:$0xff]  }
  0x1c   : > { %4487 = vmatpush3.bf16.msra.mxu0 %v5008_v15  ;;  %4296 = vmatprep.subr.bf16.mxu1 %v5009_v22  ;;  %490 = vst [vmem:[#allocation2 + $0x31] sm:$0xff] %v414_v48  ;;  %491 = vst [vmem:[#allocation2 + $0x39] sm:$0xff] %v415_v49  ;;  %v1712_v6 = vpack.c.bf16 %v415_v49, %v414_v48  ;;  %v418_v7 = vmax.f32 %v5227_v62, 0.0  ;;  %v419_v8 = vmax.f32 %v5230_v63, 0.0  ;;  %v3921_v16 = vunpack.c.h.bf16 %v4043_v0  ;;  %v5018_v53 = vld [vmem:[%s5875_s3 + $0x158] sm:$0xff]  }
  0x1d   : > { %4488 = vmatprep.subr.bf16.mxu0 %v5010_v27  ;;  %492 = vst [vmem:[#allocation2 + $0x49] sm:$0xff] %v416_v60  ;;  %493 = vst [vmem:[#allocation2 + $0x51] sm:$0xff] %v417_v61  ;;  %v389_v11 = vadd.f32 %v5189_v20, %v350_v2  ;;  %v420_v12 = vmax.f32 %v5238_v3, 0.0  ;;  %v352_v13 = vmul.f32 %v3917_v4, %v5184_v19  ;;  %v3924_v18 = vunpack.c.l.bf16 %v4044_v10  ;;  %v4048_v57 = vld [vmem:[%s5172_s24 + $0x58] sm:$0xff]  }
  0x1e   : > { %v5248_v14 = vadd.f32 %v5189_v20, %v351_v5  ;;  %v5250_v15 = vpack.c.bf16 %v417_v61, %v416_v60  ;;  %494 = vst [vmem:[#allocation2 + $0x61] sm:$0xff] %v418_v7  ;;  %495 = vst [vmem:[#allocation2 + $0x69] sm:$0xff] %v419_v8  ;;  %v353_v17 = vmul.f32 %v3920_v9, %v5184_v19  ;;  %v3925_v25 = vunpack.c.h.bf16 %v4044_v10  ;;  %v4049_v61 = vld [vmem:[%s5172_s24 + $0x60] sm:$0xff]   ;;  %v5022_v62 = vld [vmem:[%s5875_s3 + $0x18] sm:$0xff]  }
  0x1f   : > { %4297 = vmatpush3.bf16.msra.mxu1 %v5009_v22  ;;  %v421_v22 = vmax.f32 %v389_v11, 0.0  ;;  %496 = vst [vmem:[#allocation2 + $0x79] sm:$0xff] %v420_v12  ;;  %v5257_v23 = vadd.f32 %v5189_v20, %v352_v13  ;;  %v354_v28 = vmul.f32 %v3921_v16, %v5184_v19  ;;  %v355_v30 = vmul.f32 %v3924_v18, %v5184_v19  ;;  %v4050_v13 = vld [vmem:[%s5172_s24 + $0x68] sm:$0xff]  }
  0x20   : > { %4489 = vmatpush3.bf16.msra.mxu0 %v5010_v27  ;;  %4298 = vmatprep.subr.bf16.mxu1 %v5011_v36  ;;  %v422_v24 = vmax.f32 %v5248_v14, 0.0  ;;  %v5016_v27 = vld [vmem:[%s5875_s3 + $0x8] sm:$0xff]   ;;  %v5266_v29 = vadd.f32 %v5189_v20, %v353_v17  ;;  %v356_v32 = vmul.f32 %v3925_v25, %v5184_v19  ;;  %v3928_v33 = vunpack.c.l.bf16 %v4045_v26 }
  0x21   : > { %4490 = vmatprep.subr.bf16.mxu0 %v5012_v37  ;;  %497 = vst [vmem:[#allocation2 + $0x81] sm:$0xff] %v421_v22  ;;  %v423_v31 = vmax.f32 %v5257_v23, 0.0  ;;  %v5277_v35 = vadd.f32 %v5189_v20, %v354_v28  ;;  %v3929_v38 = vunpack.c.h.bf16 %v4045_v26  ;;  %v3932_v43 = vunpack.c.l.bf16 %v4046_v39  ;;  %v5021_v14 = vld [vmem:[%s5875_s3 + $0x168] sm:$0xff]  }
  0x22   : > { %498 = vst [vmem:[#allocation2 + $0x91] sm:$0xff] %v422_v24  ;;  %v5291_v41 = vadd.f32 %v5189_v20, %v356_v32  ;;  %v357_v42 = vmul.f32 %v3928_v33, %v5184_v19  ;;  %v1714_v45 = vpack.c.bf16 %v419_v8, %v418_v7  ;;  %v3933_v51 = vunpack.c.h.bf16 %v4046_v39 }
  0x23   : > { %4299 = vmatpush3.bf16.msra.mxu1 %v5011_v36  ;;  %v424_v36 = vmax.f32 %v5266_v29, 0.0  ;;  %499 = vst [vmem:[#allocation2 + $0x99] sm:$0xff] %v423_v31  ;;  %v425_v46 = vmax.f32 %v5277_v35, 0.0  ;;  %v358_v48 = vmul.f32 %v3929_v38, %v5184_v19  ;;  %v359_v52 = vmul.f32 %v3932_v43, %v5184_v19  ;;  %v5023_v43 = vld [vmem:[%s5875_s3 + $0x170] sm:$0xff]  }
  0x24   : > { %4491 = vmatpush3.bf16.msra.mxu0 %v5012_v37  ;;  %4332 = vmatprep.subr.bf16.mxu1 %v5013_v59  ;;  %v5281_v37 = vadd.f32 %v5189_v20, %v355_v30  ;;  %v427_v49 = vmax.f32 %v5291_v41, 0.0  ;;  %v5302_v50 = vadd.f32 %v5189_v20, %v357_v42  ;;  %v1715_v54 = vpack.c.bf16 %v421_v22, %v420_v12  ;;  %v4051_v30 = vld [vmem:[%s5172_s24 + $0x70] sm:$0xff]  }
  0x25   : > { %4524 = vmatprep.subr.bf16.mxu0 %v5014_v1  ;;  %500 = vst [vmem:[#allocation2 + $0xa9] sm:$0xff] %v424_v36  ;;  %501 = vst [vmem:[#allocation2 + $0xb1] sm:$0xff] %v425_v46  ;;  %v5311_v55 = vadd.f32 %v5189_v20, %v358_v48  ;;  %v3936_v56 = vunpack.c.l.bf16 %v4047_v44  ;;  %v5319_v60 = vadd.f32 %v5189_v20, %v359_v52  ;;  %v3937_v0 = vunpack.c.h.bf16 %v4047_v44  ;;  %v1985_v44 = vld [vmem:[#allocation2 + $0x1a] sm:$0xff]  ;;  %v1986_v48 = vld [vmem:[#allocation2 + $0x22] sm:$0xff] }
  0x26   : > { %4301 = vmatmul.mubr.bf16.vlgmr.msra.gmra.mrb[0].mxu1 %v1711_v47  ;;  %v426_v47 = vmax.f32 %v5281_v37, 0.0  ;;  %503 = vst [vmem:[#allocation2 + $0xc9] sm:$0xff] %v427_v49  ;;  %v428_v58 = vmax.f32 %v5302_v50, 0.0  ;;  %v3940_v4 = vunpack.c.l.bf16 %v4048_v57  ;;  %v3941_v5 = vunpack.c.h.bf16 %v4048_v57  ;;  %v5024_v37 = vld [vmem:[%s5875_s3 + $0x178] sm:$0xff]  }
  0x27   : > { %4493 = vmatmul.mubr.bf16.vlgmr.msra.gmra.mrb[0].mxu0 %v1712_v6  ;;  %4333 = vmatpush3.bf16.msra.mxu1 %v5013_v59  ;;  %v360_v59 = vmul.f32 %v3933_v51, %v5184_v19  ;;  %v429_v63 = vmax.f32 %v5311_v55, 0.0  ;;  %v430_v3 = vmax.f32 %v5319_v60, 0.0  ;;  %v362_v7 = vmul.f32 %v3937_v0, %v5184_v19 }
  0x28   : > { %4525 = vmatpush3.bf16.msra.mxu0 %v5014_v1  ;;  %4304 = vmatprep.mubr.bf16.mxu1 %v1712_v6  ;;  %502 = vst [vmem:[#allocation2 + $0xc1] sm:$0xff] %v426_v47  ;;  %v361_v1 = vmul.f32 %v3936_v56, %v5184_v19  ;;  %504 = vst [vmem:[#allocation2 + $0xd9] sm:$0xff] %v428_v58  ;;  %v5020_v6 = vld [vmem:[%s5875_s3 + $0x160] sm:$0xff]   ;;  %v3944_v9 = vunpack.c.l.bf16 %v4049_v61  ;;  %v363_v11 = vmul.f32 %v3940_v4, %v5184_v19 }
  0x29   : > { %4526 = vmatprep.subr.bf16.mxu0 %v5015_v21  ;;  %4496 = vmatprep.mubr.bf16.mxu0 %v5250_v15  ;;  %v5331_v2 = vadd.f32 %v5189_v20, %v360_v59  ;;  %505 = vst [vmem:[#allocation2 + $0xe1] sm:$0xff] %v429_v63  ;;  %506 = vst [vmem:[#allocation2 + $0xf1] sm:$0xff] %v430_v3  ;;  %v364_v12 = vmul.f32 %v3941_v5, %v5184_v19  ;;  %v3945_v18 = vunpack.c.h.bf16 %v4049_v61  ;;  %v1988_v4 = vld [vmem:[#allocation2 + $0x3a] sm:$0xff] }
  0x2a   : > { %4334 = vmatprep.subr.bf16.mxu1 %v5016_v27  ;;  %v5341_v8 = vadd.f32 %v5189_v20, %v361_v1  ;;  %v5353_v16 = vadd.f32 %v5189_v20, %v362_v7  ;;  %v1716_v22 = vpack.c.bf16 %v423_v31, %v422_v24  ;;  %v1717_v25 = vpack.c.bf16 %v425_v46, %v424_v36  ;;  %v1987_v1 = vld [vmem:[#allocation2 + $0x32] sm:$0xff]  ;;  %v5026_v5 = vld [vmem:[%s5875_s3 + $0x180] sm:$0xff]  }
  0x2b   : > { %4335 = vmatpush3.bf16.msra.mxu1 %v5016_v27  ;;  %v431_v10 = vmax.f32 %v5331_v2, 0.0  ;;  %v5366_v26 = vadd.f32 %v5189_v20, %v363_v11  ;;  %v5369_v27 = vadd.f32 %v5189_v20, %v364_v12  ;;  %v366_v24 = vmul.f32 %v3945_v18, %v5184_v19  ;;  %v1990_v7 = vld [vmem:[#allocation2 + $0x52] sm:$0xff]  ;;  %v5459_v11 = vld [vmem:[%s5875_s3 + $0x80] sm:$0xff]  }
  0x2c   : > { %4527 = vmatpush3.bf16.msra.mxu0 %v5015_v21  ;;  %4336 = vmatprep.subr.bf16.mxu1 %v5019_v34  ;;  %v432_v17 = vmax.f32 %v5341_v8, 0.0  ;;  %v365_v21 = vmul.f32 %v3944_v9, %v5184_v19  ;;  %v433_v23 = vmax.f32 %v5353_v16, 0.0  ;;  %v3948_v29 = vunpack.c.l.bf16 %v4050_v13  ;;  %v1991_v2 = vld [vmem:[#allocation2 + $0x62] sm:$0xff]  ;;  %v5032_v8 = vld [vmem:[%s5875_s3 + $0x198] sm:$0xff]  }
  0x2d   : > { %4528 = vmatprep.subr.bf16.mxu0 %v5017_v40  ;;  %507 = vst [vmem:[#allocation2 + $0xf9] sm:$0xff] %v431_v10  ;;  %v434_v31 = vmax.f32 %v5366_v26, 0.0  ;;  %v435_v32 = vmax.f32 %v5369_v27, 0.0  ;;  %v3949_v33 = vunpack.c.h.bf16 %v4050_v13  ;;  %v5390_v35 = vadd.f32 %v5189_v20, %v366_v24  ;;  %v1995_v16 = vld [vmem:[#allocation2 + $0x92] sm:$0xff]  ;;  %v1997_v26 = vld [vmem:[#allocation2 + $0xaa] sm:$0xff] }
  0x2e   : > { %4305 = vmatmul.mubr.bf16.gmra.mrb[4].mxu1 %v5250_v15  ;;  %v5025_v15 = vld [vmem:[%s5875_s3 + $0x20] sm:$0xff]   ;;  %508 = vst [vmem:[#allocation2 + $0x109] sm:$0xff] %v432_v17  ;;  %v5379_v28 = vadd.f32 %v5189_v20, %v365_v21  ;;  %509 = vst [vmem:[#allocation2 + $0x111] sm:$0xff] %v433_v23  ;;  %v367_v38 = vmul.f32 %v3948_v29, %v5184_v19  ;;  %v3953_v42 = vunpack.c.h.bf16 %v4051_v30  ;;  %v1998_v27 = vld [vmem:[#allocation2 + $0xb2] sm:$0xff] }
  0x2f   : > { %4497 = vmatmul.mubr.bf16.gmra.mrb[4].mxu0 %v1714_v45  ;;  %4308 = vmatprep.mubr.bf16.mxu1 %v1714_v45  ;;  %510 = vst [vmem:[#allocation2 + $0x121] sm:$0xff] %v434_v31  ;;  %511 = vst [vmem:[#allocation2 + $0x129] sm:$0xff] %v435_v32  ;;  %v368_v39 = vmul.f32 %v3949_v33, %v5184_v19  ;;  %v437_v45 = vmax.f32 %v5390_v35, 0.0  ;;  %v1718_v57 = vpack.c.bf16 %v427_v49, %v426_v47  ;;  %v5031_v49 = vld [vmem:[%s5875_s3 + $0x38] sm:$0xff]   ;;  %v520_v35 = vld [vmem:[#allocation2] sm:$0xff] }
  0x30   : > { %4529 = vmatpush3.bf16.msra.mxu0 %v5017_v40  ;;  %4500 = vmatprep.mubr.bf16.mxu0 %v1715_v54  ;;  %v436_v36 = vmax.f32 %v5379_v28, 0.0  ;;  %v3952_v40 = vunpack.c.l.bf16 %v4051_v30  ;;  %v5406_v46 = vadd.f32 %v5189_v20, %v367_v38  ;;  %v5430_v0 = vpack.c.bf16 %v1986_v48, %v1985_v44  ;;  %v1999_v28 = vld [vmem:[#allocation2 + $0xc2] sm:$0xff] }
  0x31   : > { %4530 = vmatprep.subr.bf16.mxu0 %v5018_v53  ;;  %4337 = vmatpush3.bf16.msra.mxu1 %v5019_v34  ;;  %v5027_v34 = vld [vmem:[%s5875_s3 + $0x28] sm:$0xff]   ;;  %v5409_v51 = vadd.f32 %v5189_v20, %v368_v39  ;;  %513 = vst [vmem:[#allocation2 + $0x141] sm:$0xff] %v437_v45  ;;  %v625_v9 = vpack.c.bf16 %v429_v63, %v428_v58 }
  0x32   : > { %4338 = vmatprep.subr.bf16.mxu1 %v5022_v62  ;;  %512 = vst [vmem:[#allocation2 + $0x139] sm:$0xff] %v436_v36  ;;  %v369_v52 = vmul.f32 %v3952_v40, %v5184_v19  ;;  %v438_v56 = vmax.f32 %v5406_v46, 0.0  ;;  %v5461_v12 = vpack.c.bf16 %v1988_v4, %v1987_v1  ;;  %v626_v13 = vpack.c.bf16 %v431_v10, %v430_v3  ;;  %v5028_v58 = vld [vmem:[%s5875_s3 + $0x188] sm:$0xff]   ;;  %v1993_v10 = vld [vmem:[#allocation2 + $0x7a] sm:$0xff] }
  0x33   : > { %v439_v59 = vmax.f32 %v5409_v51, 0.0  ;;  %v1992_v3 = vld [vmem:[#allocation2 + $0x6a] sm:$0xff]  ;;  %v5523_v38 = vpack.c.bf16 %v1998_v27, %v1997_v26  ;;  %v5041_v27 = vld [vmem:[%s5875_s3 + $0xa0] sm:$0xff]  }
  0x34   : > { %4531 = vmatpush3.bf16.msra.mxu0 %v5018_v53  ;;  %v370_v53 = vmul.f32 %v3953_v42, %v5184_v19  ;;  %v5425_v61 = vadd.f32 %v5189_v20, %v369_v52  ;;  %514 = vst [vmem:[#allocation2 + $0x151] sm:$0xff] %v438_v56  ;;  %v5493_v30 = vpack.c.bf16 %v1992_v3, %v1991_v2  ;;  %v5036_v39 = vld [vmem:[%s5875_s3 + $0x1a8] sm:$0xff]   ;;  %v5040_v52 = vld [vmem:[%s5875_s3 + $0x1b8] sm:$0xff]  }
  0x35   : > { %4532 = vmatprep.subr.bf16.mxu0 %v5020_v6  ;;  %4339 = vmatpush3.bf16.msra.mxu1 %v5022_v62  ;;  %515 = vst [vmem:[#allocation2 + $0x159] sm:$0xff] %v439_v59  ;;  %v2000_v40 = vld [vmem:[#allocation2 + $0xca] sm:$0xff]  ;;  %v2002_v42 = vld [vmem:[#allocation2 + $0xe2] sm:$0xff] }
  0x36   : > { %4309 = vmatmul.mubr.bf16.gmra.mrb[8].mxu1 %v1715_v54  ;;  %4340 = vmatprep.subr.bf16.mxu1 %v5025_v15  ;;  %v5029_v54 = vld [vmem:[%s5875_s3 + $0x30] sm:$0xff]   ;;  %v5428_v62 = vadd.f32 %v5189_v20, %v370_v53  ;;  %v440_v41 = vmax.f32 %v5425_v61, 0.0  ;;  %v5541_v46 = vld [vmem:[#allocation2 + $0x8] sm:$0xff]  ;;  %v522_v53 = vld [vmem:[#allocation2 + $0x18] sm:$0xff] }
  0x37   : > { %4501 = vmatmul.mubr.bf16.gmra.mrb[8].mxu0 %v1716_v22  ;;  %4312 = vmatprep.mubr.bf16.mxu1 %v1716_v22  ;;  %v552_v48 = vpack.c.bf16 %v5541_v46, %v520_v35  ;;  %v2004_v61 = vld [vmem:[#allocation2 + $0xfa] sm:$0xff]  ;;  %v535_v35 = vld [vmem:[#allocation2 + $0xb0] sm:$0xff] }
  0x38   : > { %4533 = vmatpush3.bf16.msra.mxu0 %v5020_v6  ;;  %4504 = vmatprep.mubr.bf16.mxu0 %v1717_v25  ;;  %v441_v47 = vmax.f32 %v5428_v62, 0.0  ;;  %516 = vst [vmem:[#allocation2 + $0x169] sm:$0xff] %v440_v41  ;;  %v1989_v6 = vld [vmem:[#allocation2 + $0x4a] sm:$0xff] }
  0x39   : > { %4534 = vmatprep.subr.bf16.mxu0 %v5021_v14  ;;  %4341 = vmatpush3.bf16.msra.mxu1 %v5025_v15  ;;  %v4052_v15 = vld [vmem:[%s5172_s24 + $0x78] sm:$0xff]   ;;  %v5468_v18 = vpack.c.bf16 %v1990_v7, %v1989_v6  ;;  %v2005_v62 = vld [vmem:[#allocation2 + $0x10a] sm:$0xff] }
  0x3a   : > { %4342 = vmatprep.subr.bf16.mxu1 %v5027_v34  ;;  %517 = vst [vmem:[#allocation2 + $0x171] sm:$0xff] %v441_v47  ;;  %v3956_v50 = vunpack.c.l.bf16 %v4052_v15  ;;  %v3957_v55 = vunpack.c.h.bf16 %v4052_v15  ;;  %v5537_v44 = vpack.c.bf16 %v441_v47, %v440_v41  ;;  %v5555_v41 = vld [vmem:[%s5875_s3 + $0x1c0] sm:$0xff]   ;;  %v5035_v6 = vld [vmem:[%s5875_s3 + $0x88] sm:$0xff]   ;;  %v527_v7 = vld [vmem:[#allocation2 + $0x50] sm:$0xff] }
  0x3b   : > { %v2007_v15 = vld [vmem:[#allocation2 + $0x122] sm:$0xff] }
  0x3c   : > { %4535 = vmatpush3.bf16.msra.mxu0 %v5021_v14  ;;  %v371_v60 = vmul.f32 %v3956_v50, %v5184_v19  ;;  %v372_v63 = vmul.f32 %v3957_v55, %v5184_v19  ;;  %v5030_v19 = vld [vmem:[%s5875_s3 + $0x190] sm:$0xff]   ;;  %v627_v14 = vpack.c.bf16 %v433_v23, %v432_v17  ;;  %v1996_v17 = vld [vmem:[#allocation2 + $0x9a] sm:$0xff] }
  0x3d   : > { %4536 = vmatprep.subr.bf16.mxu0 %v5023_v43  ;;  %4343 = vmatpush3.bf16.msra.mxu1 %v5027_v34  ;;  %v5034_v23 = vld [vmem:[%s5875_s3 + $0x1a0] sm:$0xff]   ;;  %v630_v34 = vpack.c.bf16 %v439_v59, %v438_v56  ;;  %v2003_v56 = vld [vmem:[#allocation2 + $0xf2] sm:$0xff]  ;;  %v2008_v50 = vld [vmem:[#allocation2 + $0x12a] sm:$0xff] }
  0x3e   : > { %4313 = vmatmul.mubr.bf16.gmra.mrb[12].mxu1 %v1717_v25  ;;  %4344 = vmatprep.subr.bf16.mxu1 %v5029_v54  ;;  %v5479_v21 = vadd.f32 %v5189_v20, %v371_v60  ;;  %v5482_v22 = vadd.f32 %v5189_v20, %v372_v63  ;;  %v1994_v25 = vld [vmem:[#allocation2 + $0x82] sm:$0xff]  ;;  %v628_v20 = vpack.c.bf16 %v435_v32, %v434_v31  ;;  %v525_v59 = vld [vmem:[#allocation2 + $0x38] sm:$0xff]  ;;  %v5037_v55 = vld [vmem:[%s5875_s3 + $0x90] sm:$0xff]  }
  0x3f   : > { %4505 = vmatmul.mubr.bf16.gmra.mrb[12].mxu0 %v1718_v57  ;;  %4316 = vmatprep.mubr.bf16.mxu1 %v1718_v57  ;;  %v5499_v33 = vpack.c.bf16 %v1994_v25, %v1993_v10  ;;  %v629_v31 = vpack.c.bf16 %v437_v45, %v436_v36  ;;  %v5517_v32 = vpack.c.bf16 %v1996_v17, %v1995_v16  ;;  %v2001_v36 = vld [vmem:[#allocation2 + $0xda] sm:$0xff]  ;;  %v524_v57 = vld [vmem:[#allocation2 + $0x30] sm:$0xff]  ;;  %v2010_v60 = vld [vmem:[#allocation2 + $0x142] sm:$0xff] }
  0x40   : > { %4537 = vmatpush3.bf16.msra.mxu0 %v5023_v43  ;;  %4540 = vmatprep.mubr.bf16.mxu0 %v5430_v0  ;;  %v442_v24 = vmax.f32 %v5479_v21, 0.0  ;;  %v443_v29 = vmax.f32 %v5482_v22, 0.0  ;;  %v5038_v43 = vld [vmem:[%s5875_s3 + $0x1b0] sm:$0xff]   ;;  %v5539_v45 = vpack.c.bf16 %v2000_v40, %v1999_v28  ;;  %v5544_v51 = vpack.c.bf16 %v2002_v42, %v2001_v36  ;;  %v530_v10 = vld [vmem:[#allocation2 + $0x78] sm:$0xff]  ;;  %v531_v25 = vld [vmem:[#allocation2 + $0x80] sm:$0xff] }
  0x41   : > { %4538 = vmatprep.subr.bf16.mxu0 %v5024_v37  ;;  %4345 = vmatpush3.bf16.msra.mxu1 %v5029_v54  ;;  %v523_v54 = vld [vmem:[#allocation2 + $0x20] sm:$0xff]  ;;  %v5561_v1 = vpack.c.bf16 %v525_v59, %v524_v57  ;;  %v5579_v2 = vpack.c.bf16 %v2008_v50, %v2007_v15  ;;  %v533_v16 = vld [vmem:[#allocation2 + $0x98] sm:$0xff]  ;;  %v2013_v17 = vld [vmem:[#allocation2 + $0x16a] sm:$0xff] }
  0x42   : > { %4346 = vmatprep.subr.bf16.mxu1 %v5031_v49  ;;  %518 = vst [vmem:[#allocation2 + $0x181] sm:$0xff] %v442_v24  ;;  %519 = vst [vmem:[#allocation2 + $0x189] sm:$0xff] %v443_v29  ;;  %v5557_v47 = vpack.c.bf16 %v523_v54, %v522_v53  ;;  %v2014_v26 = vld [vmem:[#allocation2 + $0x172] sm:$0xff]  ;;  %v5043_v28 = vld [vmem:[%s5875_s3 + $0xa8] sm:$0xff]   ;;  %v5613_v42 = vpack.c.bf16 %v443_v29, %v442_v24 }
  0x43   : > { %v534_v40 = vld [vmem:[#allocation2 + $0xa8] sm:$0xff]  ;;  %v536_v36 = vld [vmem:[#allocation2 + $0xc0] sm:$0xff]  ;;  %v5045_v53 = vld [vmem:[%s5875_s3 + $0xb0] sm:$0xff]  }
  0x44   : > { %4539 = vmatpush3.bf16.msra.mxu0 %v5024_v37  ;;  %v2006_v37 = vld [vmem:[#allocation2 + $0x112] sm:$0xff]  ;;  %v5619_v54 = vpack.c.bf16 %v535_v35, %v534_v40  ;;  %v539_v24 = vld [vmem:[#allocation2 + $0xe0] sm:$0xff] }
  0x45   : > { %4572 = vmatprep.subr.bf16.mxu0 %v5026_v5  ;;  %4347 = vmatpush3.bf16.msra.mxu1 %v5031_v49  ;;  %v5559_v49 = vpack.c.bf16 %v2004_v61, %v2003_v56  ;;  %v5563_v4 = vpack.c.bf16 %v2006_v37, %v2005_v62  ;;  %v5047_v21 = vld [vmem:[%s5875_s3 + $0xb8] sm:$0xff]   ;;  %v540_v29 = vld [vmem:[#allocation2 + $0xf0] sm:$0xff]  ;;  %v5632_v61 = vld [vmem:[%s5875_s3 + $0xc0] sm:$0xff]  }
  0x46   : > { %4317 = vmatmul.mubr.bf16.gmra.mrb[16].mxu1 %v625_v9  ;;  %4380 = vmatprep.subr.bf16.mxu1 %v5459_v11  ;;  %v528_v9 = vld [vmem:[#allocation2 + $0x60] sm:$0xff]  ;;  %v538_v22 = vld [vmem:[#allocation2 + $0xd8] sm:$0xff]  ;;  %v5046_v15 = vld [vmem:[%s5875_s3 + $0x1d0] sm:$0xff]  }
  0x47   : > { %4541 = vmatmul.mubr.bf16.vlgmr.msra.gmra.mrb[0].mxu0 %v5461_v12  ;;  %4320 = vmatprep.mubr.bf16.mxu1 %v626_v13  ;;  %v529_v13 = vld [vmem:[#allocation2 + $0x68] sm:$0xff]  ;;  %v541_v59 = vld [vmem:[#allocation2 + $0xf8] sm:$0xff]  ;;  %v5634_v62 = vpack.c.bf16 %v539_v24, %v538_v22 }
  0x48   : > { %4573 = vmatpush3.bf16.msra.mxu0 %v5026_v5  ;;  %4544 = vmatprep.mubr.bf16.mxu0 %v5468_v18  ;;  %v526_v5 = vld [vmem:[#allocation2 + $0x48] sm:$0xff]  ;;  %v5581_v3 = vpack.c.bf16 %v529_v13, %v528_v9  ;;  %v5636_v37 = vpack.c.bf16 %v541_v59, %v540_v29  ;;  %v544_v9 = vld [vmem:[#allocation2 + $0x120] sm:$0xff]  ;;  %v2598_v22 = vld [vmem:[#allocation2 + $0x31] sm:$0xff] }
  0x49   : > { %4574 = vmatprep.subr.bf16.mxu0 %v5028_v58  ;;  %v5577_v63 = vpack.c.bf16 %v527_v7, %v526_v5  ;;  %v5044_v5 = vld [vmem:[%s5875_s3 + $0x1c8] sm:$0xff]   ;;  %v543_v7 = vld [vmem:[#allocation2 + $0x110] sm:$0xff]  ;;  %v2599_v24 = vld [vmem:[#allocation2 + $0x39] sm:$0xff] }
  0x4a   : > { %v545_v13 = vld [vmem:[#allocation2 + $0x128] sm:$0xff]  ;;  %v5061_v29 = vld [vmem:[%s5875_s3 + $0xf0] sm:$0xff]  }
  0x4c   : > { %4575 = vmatpush3.bf16.msra.mxu0 %v5028_v58  ;;  %v2009_v58 = vld [vmem:[#allocation2 + $0x13a] sm:$0xff] }
  0x4d   : > { %4576 = vmatprep.subr.bf16.mxu0 %v5030_v19 }
  0x4e   : > { %4321 = vmatmul.mubr.bf16.gmra.mrb[20].mxu1 %v627_v14  ;;  %v2011_v14 = vld [vmem:[#allocation2 + $0x152] sm:$0xff] }
  0x4f   : > { %4545 = vmatmul.mubr.bf16.gmra.mrb[4].mxu0 %v5493_v30  ;;  %4324 = vmatprep.mubr.bf16.mxu1 %v628_v20  ;;  %v2012_v20 = vld [vmem:[#allocation2 + $0x15a] sm:$0xff] }
  0x50   : > { %4548 = vmatprep.mubr.bf16.mxu0 %v5499_v33  ;;  %4577 = vmatpush3.bf16.msra.mxu0 %v5030_v19  ;;  %v5039_v19 = vld [vmem:[%s5875_s3 + $0x98] sm:$0xff]  }
  0x51   : > { %4578 = vmatprep.subr.bf16.mxu0 %v5032_v8 }
  0x54   : > { %4579 = vmatpush3.bf16.msra.mxu0 %v5032_v8  ;;  %v532_v8 = vld [vmem:[#allocation2 + $0x90] sm:$0xff] }
  0x55   : > { %4580 = vmatprep.subr.bf16.mxu0 %v5034_v23 }
  0x56   : > { %4325 = vmatmul.mubr.bf16.gmra.mrb[24].mxu1 %v629_v31  ;;  %v5597_v31 = vpack.c.bf16 %v2012_v20, %v2011_v14 }
  0x57   : > { %4549 = vmatmul.mubr.bf16.gmra.mrb[8].mxu0 %v5517_v32  ;;  %4328 = vmatprep.mubr.bf16.mxu1 %v630_v34  ;;  %v5599_v34 = vpack.c.bf16 %v533_v16, %v532_v8  ;;  %v5052_v8 = vld [vmem:[%s5875_s3 + $0x1e8] sm:$0xff]  }
  0x58   : > { %4552 = vmatprep.mubr.bf16.mxu0 %v5523_v38  ;;  %4581 = vmatpush3.bf16.msra.mxu0 %v5034_v23  ;;  %v5595_v23 = vpack.c.bf16 %v531_v25, %v530_v10  ;;  %v548_v10 = vld [vmem:[#allocation2 + $0x150] sm:$0xff]  ;;  %v549_v25 = vld [vmem:[#allocation2 + $0x158] sm:$0xff]  ;;  %v550_v16 = vld [vmem:[#allocation2 + $0x168] sm:$0xff] }
  0x59   : > { %4582 = vmatprep.subr.bf16.mxu0 %v5036_v39  ;;  %v5666_v20 = vpack.c.bf16 %v549_v25, %v548_v10 }
  0x5c   : > { %4583 = vmatpush3.bf16.msra.mxu0 %v5036_v39  ;;  %v5601_v39 = vpack.c.bf16 %v2014_v26, %v2013_v17  ;;  %v551_v17 = vld [vmem:[#allocation2 + $0x170] sm:$0xff]  ;;  %v1067_v26 = vld [vmem:[#allocation2 + $0x2] sm:$0xff] }
  0x5d   : > { %4584 = vmatprep.subr.bf16.mxu0 %v5038_v43  ;;  %v5678_v40 = vpack.c.bf16 %v551_v17, %v550_v16  ;;  %v2611_v16 = vld [vmem:[#allocation2 + $0xc9] sm:$0xff]  ;;  %v5065_v17 = vld [vmem:[%s5875_s3 + $0x220] sm:$0xff]  }
  0x5e   : > { %4329 = vmatmul.mubr.bf16.gmra.mrb[28].mxu1 %v5537_v44 }
  0x5f   : > { %4553 = vmatmul.mubr.bf16.gmra.mrb[12].mxu0 %v5539_v45  ;;  %4348 = vmatprep.mubr.bf16.mxu1 %v552_v48  ;;  %v2016_v48 = vld [vmem:[#allocation2 + $0x18a] sm:$0xff] }
  0x60   : > { %4556 = vmatprep.mubr.bf16.mxu0 %v5544_v51  ;;  %4585 = vmatpush3.bf16.msra.mxu0 %v5038_v43  ;;  %v2015_v43 = vld [vmem:[#allocation2 + $0x182] sm:$0xff] }
  0x61   : > { %4586 = vmatprep.subr.bf16.mxu0 %v5040_v52  ;;  %v2032_v56 = vpack.c.bf16 %v2016_v48, %v2015_v43  ;;  %v5058_v43 = vld [vmem:[%s5875_s3 + $0x200] sm:$0xff]   ;;  %v5051_v48 = vld [vmem:[%s5875_s3 + $0xc8] sm:$0xff]  }
  0x64   : > { %4587 = vmatpush3.bf16.msra.mxu0 %v5040_v52  ;;  %v537_v52 = vld [vmem:[#allocation2 + $0xc8] sm:$0xff] }
  0x65   : > { %4620 = vmatprep.subr.bf16.mxu0 %v5555_v41  ;;  %v5621_v57 = vpack.c.bf16 %v537_v52, %v536_v36  ;;  %v5056_v36 = vld [vmem:[%s5875_s3 + $0x1f8] sm:$0xff]   ;;  %v5053_v52 = vld [vmem:[%s5875_s3 + $0xd0] sm:$0xff]  }
  0x66   : > { %4349 = vmatmul.mubr.bf16.vlgmr.msra.gmra.mrb[0].mxu1 %v5557_v47 }
  0x67   : > { %4557 = vmatmul.mubr.bf16.gmra.mrb[16].mxu0 %v5559_v49  ;;  %4381 = vmatpush3.bf16.msra.mxu1 %v5459_v11  ;;  %v5583_v11 = vpack.c.bf16 %v2010_v60, %v2009_v58  ;;  %v5048_v58 = vld [vmem:[%s5875_s3 + $0x1d8] sm:$0xff]   ;;  %v547_v60 = vld [vmem:[#allocation2 + $0x140] sm:$0xff] }
  0x68   : > { %4352 = vmatprep.mubr.bf16.mxu1 %v5561_v1  ;;  %4560 = vmatprep.mubr.bf16.mxu0 %v5563_v4 }
  0x69   : > { %4382 = vmatprep.subr.bf16.mxu1 %v5035_v6 }
  0x6b   : > { %4383 = vmatpush3.bf16.msra.mxu1 %v5035_v6  ;;  %v542_v6 = vld [vmem:[#allocation2 + $0x108] sm:$0xff] }
  0x6c   : > { %4384 = vmatprep.subr.bf16.mxu1 %v5037_v55  ;;  %v5650_v50 = vpack.c.bf16 %v543_v7, %v542_v6  ;;  %v2602_v6 = vld [vmem:[#allocation2 + $0x61] sm:$0xff]  ;;  %v2603_v7 = vld [vmem:[#allocation2 + $0x69] sm:$0xff] }
  0x6e   : > { %4353 = vmatmul.mubr.bf16.gmra.mrb[4].mxu1 %v5577_v63 }
  0x6f   : > { %4561 = vmatmul.mubr.bf16.gmra.mrb[20].mxu0 %v5579_v2  ;;  %4356 = vmatprep.mubr.bf16.mxu1 %v5581_v3 }
  0x70   : > { %4564 = vmatprep.mubr.bf16.mxu0 %v5583_v11  ;;  %4385 = vmatpush3.bf16.msra.mxu1 %v5037_v55  ;;  %v5652_v55 = vpack.c.bf16 %v545_v13, %v544_v9  ;;  %v2632_v9 = vpack.c.bf16 %v2603_v7, %v2602_v6  ;;  %v5060_v13 = vld [vmem:[%s5875_s3 + $0x208] sm:$0xff]  }
  0x71   : > { %4386 = vmatprep.subr.bf16.mxu1 %v5039_v19 }
  0x74   : > { %4387 = vmatpush3.bf16.msra.mxu1 %v5039_v19  ;;  %v5050_v19 = vld [vmem:[%s5875_s3 + $0x1e0] sm:$0xff]  }
  0x75   : > { %4388 = vmatprep.subr.bf16.mxu1 %v5041_v27 }
  0x76   : > { %4357 = vmatmul.mubr.bf16.gmra.mrb[8].mxu1 %v5595_v23 }
  0x77   : > { %4565 = vmatmul.mubr.bf16.gmra.mrb[24].mxu0 %v5597_v31  ;;  %4360 = vmatprep.mubr.bf16.mxu1 %v5599_v34 }
  0x78   : > { %4568 = vmatprep.mubr.bf16.mxu0 %v5601_v39  ;;  %4389 = vmatpush3.bf16.msra.mxu1 %v5041_v27  ;;  %v1068_v27 = vld [vmem:[#allocation2 + $0xa] sm:$0xff] }
  0x79   : > { %4390 = vmatprep.subr.bf16.mxu1 %v5043_v28  ;;  %v1099_v35 = vpack.c.bf16 %v1068_v27, %v1067_v26 }
  0x7c   : > { %4391 = vmatpush3.bf16.msra.mxu1 %v5043_v28  ;;  %v5054_v28 = vld [vmem:[%s5875_s3 + $0x1f0] sm:$0xff]  }
  0x7d   : > { %4392 = vmatprep.subr.bf16.mxu1 %v5045_v53 }
  0x7e   : > { %4361 = vmatmul.mubr.bf16.gmra.mrb[12].mxu1 %v5619_v54 }
  0x7f   : > { %4569 = vmatmul.mubr.bf16.gmra.mrb[28].mxu0 %v2032_v56  ;;  %4364 = vmatprep.mubr.bf16.mxu1 %v5621_v57  ;;  %v5057_v56 = vld [vmem:[%s5875_s3 + $0xe0] sm:$0xff]  }
  0x80   : > { %4588 = vmatprep.mubr.bf16.mxu0 %v5561_v1  ;;  %4393 = vmatpush3.bf16.msra.mxu1 %v5045_v53  ;;  %v5055_v53 = vld [vmem:[%s5875_s3 + $0xd8] sm:$0xff]  }
  0x81   : > { %4394 = vmatprep.subr.bf16.mxu1 %v5047_v21 }
  0x84   : > { %4395 = vmatpush3.bf16.msra.mxu1 %v5047_v21 }
  0x85   : > { %4428 = vmatprep.subr.bf16.mxu1 %v5632_v61 }
  0x86   : > { %4365 = vmatmul.mubr.bf16.gmra.mrb[16].mxu1 %v5634_v62 }
  0x87   : > { %4589 = vmatmul.mubr.bf16.vlgmr.msra.gmra.mrb[0].mxu0 %v5577_v63  ;;  %4368 = vmatprep.mubr.bf16.mxu1 %v5636_v37 }
  0x88   : > { %4621 = vmatpush3.bf16.msra.mxu0 %v5555_v41  ;;  %4592 = vmatprep.mubr.bf16.mxu0 %v5581_v3  ;;  %v546_v41 = vld [vmem:[#allocation2 + $0x138] sm:$0xff] }
  0x89   : > { %4622 = vmatprep.subr.bf16.mxu0 %v5044_v5  ;;  %v5664_v14 = vpack.c.bf16 %v547_v60, %v546_v41  ;;  %v2607_v41 = vld [vmem:[#allocation2 + $0x99] sm:$0xff]  ;;  %v5062_v60 = vld [vmem:[%s5875_s3 + $0x210] sm:$0xff]  }
  0x8c   : > { %4623 = vmatpush3.bf16.msra.mxu0 %v5044_v5  ;;  %v2601_v5 = vld [vmem:[#allocation2 + $0x51] sm:$0xff] }
  0x8d   : > { %4624 = vmatprep.subr.bf16.mxu0 %v5046_v15 }
  0x8e   : > { %4369 = vmatmul.mubr.bf16.gmra.mrb[20].mxu1 %v5650_v50 }
  0x8f   : > { %4593 = vmatmul.mubr.bf16.gmra.mrb[4].mxu0 %v5595_v23  ;;  %4372 = vmatprep.mubr.bf16.mxu1 %v5652_v55 }
  0x90   : > { %4596 = vmatprep.mubr.bf16.mxu0 %v5599_v34  ;;  %4625 = vmatpush3.bf16.msra.mxu0 %v5046_v15  ;;  %v2605_v15 = vld [vmem:[#allocation2 + $0x81] sm:$0xff] }
  0x91   : > { %4626 = vmatprep.subr.bf16.mxu0 %v5048_v58 }
  0x94   : > { %4627 = vmatpush3.bf16.msra.mxu0 %v5048_v58  ;;  %v2606_v58 = vld [vmem:[#allocation2 + $0x91] sm:$0xff] }
  0x95   : > { %4628 = vmatprep.subr.bf16.mxu0 %v5050_v19  ;;  %v2634_v25 = vpack.c.bf16 %v2607_v41, %v2606_v58 }
  0x96   : > { %4373 = vmatmul.mubr.bf16.gmra.mrb[24].mxu1 %v5664_v14 }
  0x97   : > { %4597 = vmatmul.mubr.bf16.gmra.mrb[8].mxu0 %v5619_v54  ;;  %4376 = vmatprep.mubr.bf16.mxu1 %v5666_v20 }
  0x98   : > { %4600 = vmatprep.mubr.bf16.mxu0 %v5621_v57  ;;  %4629 = vmatpush3.bf16.msra.mxu0 %v5050_v19  ;;  %v2609_v19 = vld [vmem:[#allocation2 + $0xb1] sm:$0xff] }
  0x99   : > { %4630 = vmatprep.subr.bf16.mxu0 %v5052_v8 }
  0x9c   : > { %4631 = vmatpush3.bf16.msra.mxu0 %v5052_v8  ;;  %v2610_v8 = vld [vmem:[#allocation2 + $0xc1] sm:$0xff] }
  0x9d   : > { %4632 = vmatprep.subr.bf16.mxu0 %v5054_v28  ;;  %v2636_v27 = vpack.c.bf16 %v2611_v16, %v2610_v8  ;;  %v2920_v8 = vld [vmem:[#allocation2 + $0xf2] sm:$0xff] }
  0x9e   : > { %4377 = vmatmul.mubr.bf16.gmra.mrb[28].mxu1 %v5678_v40 }
  0x9f   : > { %4601 = vmatmul.mubr.bf16.gmra.mrb[12].mxu0 %v5634_v62  ;;  %4396 = vmatprep.mubr.bf16.mxu1 %v1099_v35  ;;  %v2614_v35 = vld [vmem:[#allocation2 + $0xf1] sm:$0xff] }
  0xa0   : > { %4604 = vmatprep.mubr.bf16.mxu0 %v5636_v37  ;;  %4633 = vmatpush3.bf16.msra.mxu0 %v5054_v28  ;;  %v2613_v28 = vld [vmem:[#allocation2 + $0xe1] sm:$0xff] }
  0xa1   : > { %4634 = vmatprep.subr.bf16.mxu0 %v5056_v36 }
  0xa4   : > { %4635 = vmatpush3.bf16.msra.mxu0 %v5056_v36  ;;  %v2615_v36 = vld [vmem:[#allocation2 + $0xf9] sm:$0xff] }
  0xa5   : > { %4668 = vmatprep.subr.bf16.mxu0 %v5058_v43 }
  0xa6   : > { %4397 = vmatmul.mubr.bf16.vlgmr.msra.gmra.mrb[0].mxu1 %v5430_v0  ;;  %v2320_v0 = vld [vmem:[#allocation2 + $0x180] sm:$0xff] }
  0xa7   : > { %4605 = vmatmul.mubr.bf16.gmra.mrb[16].mxu0 %v5650_v50  ;;  %4429 = vmatpush3.bf16.msra.mxu1 %v5632_v61  ;;  %v2630_v61 = vpack.c.bf16 %v2599_v24, %v2598_v22  ;;  %v2622_v22 = vld [vmem:[#allocation2 + $0x151] sm:$0xff]  ;;  %v2623_v24 = vld [vmem:[#allocation2 + $0x159] sm:$0xff] }
  0xa8   : > { %4400 = vmatprep.mubr.bf16.mxu1 %v5461_v12  ;;  %4608 = vmatprep.mubr.bf16.mxu0 %v5652_v55  ;;  %v2321_v12 = vld [vmem:[#allocation2 + $0x188] sm:$0xff] }
  0xa9   : > { %4430 = vmatprep.subr.bf16.mxu1 %v5051_v48  ;;  %v5710_v21 = vpack.c.bf16 %v2321_v12, %v2320_v0  ;;  %v2618_v0 = vld [vmem:[#allocation2 + $0x121] sm:$0xff]  ;;  %v2619_v12 = vld [vmem:[#allocation2 + $0x129] sm:$0xff] }
  0xab   : > { %4431 = vmatpush3.bf16.msra.mxu1 %v5051_v48 }
  0xac   : > { %4432 = vmatprep.subr.bf16.mxu1 %v5053_v52 }
  0xae   : > { %4401 = vmatmul.mubr.bf16.gmra.mrb[4].mxu1 %v5468_v18  ;;  %v5059_v18 = vld [vmem:[%s5875_s3 + $0xe8] sm:$0xff]  }
  0xaf   : > { %4609 = vmatmul.mubr.bf16.gmra.mrb[20].mxu0 %v5664_v14  ;;  %4404 = vmatprep.mubr.bf16.mxu1 %v5493_v30  ;;  %v2322_v30 = vld [vmem:[#allocation2 + $0x198] sm:$0xff] }
  0xb0   : > { %4612 = vmatprep.mubr.bf16.mxu0 %v5666_v20  ;;  %4433 = vmatpush3.bf16.msra.mxu1 %v5053_v52  ;;  %v2339_v59 = vpack.c.bf16 %v5541_v46, %v2322_v30  ;;  %v5760_v52 = vpack.c.bf16 %v2615_v36, %v2614_v35  ;;  %v5071_v30 = vld [vmem:[%s5875_s3 + $0x108] sm:$0xff]   ;;  %v2928_v35 = vld [vmem:[#allocation2 + $0x152] sm:$0xff] }
  0xb1   : > { %4434 = vmatprep.subr.bf16.mxu1 %v5055_v53 }
  0xb4   : > { %4435 = vmatpush3.bf16.msra.mxu1 %v5055_v53  ;;  %v2617_v53 = vld [vmem:[#allocation2 + $0x111] sm:$0xff] }
  0xb5   : > { %4436 = vmatprep.subr.bf16.mxu1 %v5057_v56 }
  0xb6   : > { %4405 = vmatmul.mubr.bf16.gmra.mrb[8].mxu1 %v5499_v33  ;;  %v5063_v33 = vld [vmem:[%s5875_s3 + $0xf8] sm:$0xff]  }
  0xb7   : > { %4613 = vmatmul.mubr.bf16.gmra.mrb[24].mxu0 %v5678_v40  ;;  %4408 = vmatprep.mubr.bf16.mxu1 %v5517_v32  ;;  %v2600_v32 = vld [vmem:[#allocation2 + $0x49] sm:$0xff] }
  0xb8   : > { %4616 = vmatprep.mubr.bf16.mxu0 %v5710_v21  ;;  %4437 = vmatpush3.bf16.msra.mxu1 %v5057_v56  ;;  %v2631_v46 = vpack.c.bf16 %v2601_v5, %v2600_v32  ;;  %v2905_v32 = vld [vmem:[#allocation2 + $0x3a] sm:$0xff]  ;;  %v5075_v5 = vld [vmem:[%s5875_s3 + $0x128] sm:$0xff]  }
  0xb9   : > { %4438 = vmatprep.subr.bf16.mxu1 %v5059_v18 }
  0xbc   : > { %4439 = vmatpush3.bf16.msra.mxu1 %v5059_v18  ;;  %v5771_v18 = vpack.c.bf16 %v2619_v12, %v2618_v0  ;;  %v2933_v0 = vld [vmem:[#allocation2 + $0x18a] sm:$0xff] }
  0xbd   : > { %4440 = vmatprep.subr.bf16.mxu1 %v5061_v29 }
  0xbe   : > { %4409 = vmatmul.mubr.bf16.gmra.mrb[12].mxu1 %v5523_v38  ;;  %v5734_v38 = vld [vmem:[%s5875_s3 + $0x100] sm:$0xff]  }
  0xbf   : > { %4617 = vmatmul.mubr.bf16.gmra.mrb[28].mxu0 %v2339_v59  ;;  %4412 = vmatprep.mubr.bf16.mxu1 %v5539_v45  ;;  %v2604_v45 = vld [vmem:[#allocation2 + $0x79] sm:$0xff] }
  0xc0   : > { %4636 = vmatprep.mubr.bf16.mxu0 %v2630_v61  ;;  %4441 = vmatpush3.bf16.msra.mxu1 %v5061_v29  ;;  %v2633_v10 = vpack.c.bf16 %v2605_v15, %v2604_v45  ;;  %v5073_v59 = vld [vmem:[%s5875_s3 + $0x118] sm:$0xff]   ;;  %v5074_v61 = vld [vmem:[%s5875_s3 + $0x120] sm:$0xff]  }
  0xc1   : > { %4442 = vmatprep.subr.bf16.mxu1 %v5063_v33  ;;  %v2912_v45 = vld [vmem:[#allocation2 + $0x92] sm:$0xff]  ;;  %v2913_v15 = vld [vmem:[#allocation2 + $0x9a] sm:$0xff] }
  0xc2   : > { %v2940_v41 = vpack.c.bf16 %v2913_v15, %v2912_v45 }
  0xc4   : > { %4443 = vmatpush3.bf16.msra.mxu1 %v5063_v33  ;;  %v2904_v33 = vld [vmem:[#allocation2 + $0x32] sm:$0xff] }
  0xc5   : > { %4716 = vmatprep.subr.bf16.mxu1 %v5734_v38  ;;  %v2936_v7 = vpack.c.bf16 %v2905_v32, %v2904_v33 }
  0xc6   : > { %4413 = vmatmul.mubr.bf16.gmra.mrb[16].mxu1 %v5544_v51  ;;  %v5064_v51 = vld [vmem:[%s5875_s3 + $0x218] sm:$0xff]  }
  0xc7   : > { %4637 = vmatmul.mubr.bf16.vlgmr.msra.gmra.mrb[0].mxu0 %v2631_v46  ;;  %4416 = vmatprep.mubr.bf16.mxu1 %v5559_v49  ;;  %v2608_v49 = vld [vmem:[#allocation2 + $0xa9] sm:$0xff] }
  0xc8   : > { %4669 = vmatpush3.bf16.msra.mxu0 %v5058_v43  ;;  %4640 = vmatprep.mubr.bf16.mxu0 %v2632_v9  ;;  %v2635_v26 = vpack.c.bf16 %v2609_v19, %v2608_v49  ;;  %v5067_v43 = vld [vmem:[%s5875_s3 + $0x230] sm:$0xff]   ;;  %v5077_v9 = vld [vmem:[%s5875_s3 + $0x138] sm:$0xff]   ;;  %v2919_v19 = vld [vmem:[#allocation2 + $0xe2] sm:$0xff] }
  0xc9   : > { %4670 = vmatprep.subr.bf16.mxu0 %v5060_v13  ;;  %v2909_v46 = vld [vmem:[#allocation2 + $0x6a] sm:$0xff] }
  0xcc   : > { %4671 = vmatpush3.bf16.msra.mxu0 %v5060_v13 }
  0xcd   : > { %4672 = vmatprep.subr.bf16.mxu0 %v5062_v60 }
  0xce   : > { %4417 = vmatmul.mubr.bf16.gmra.mrb[20].mxu1 %v5563_v4  ;;  %v5066_v4 = vld [vmem:[%s5875_s3 + $0x228] sm:$0xff]  }
  0xcf   : > { %4641 = vmatmul.mubr.bf16.gmra.mrb[4].mxu0 %v2633_v10  ;;  %4420 = vmatprep.mubr.bf16.mxu1 %v5579_v2  ;;  %v2612_v2 = vld [vmem:[#allocation2 + $0xd9] sm:$0xff] }
  0xd0   : > { %4644 = vmatprep.mubr.bf16.mxu0 %v2634_v25  ;;  %4673 = vmatpush3.bf16.msra.mxu0 %v5062_v60  ;;  %v5758_v48 = vpack.c.bf16 %v2613_v28, %v2612_v2  ;;  %v2914_v60 = vld [vmem:[#allocation2 + $0xaa] sm:$0xff]  ;;  %v2915_v10 = vld [vmem:[#allocation2 + $0xb2] sm:$0xff]  ;;  %v2916_v25 = vld [vmem:[#allocation2 + $0xc2] sm:$0xff] }
  0xd1   : > { %4674 = vmatprep.subr.bf16.mxu0 %v5064_v51  ;;  %v2927_v28 = vld [vmem:[#allocation2 + $0x142] sm:$0xff] }
  0xd4   : > { %4675 = vmatpush3.bf16.msra.mxu0 %v5064_v51  ;;  %v2941_v51 = vpack.c.bf16 %v2915_v10, %v2914_v60 }
  0xd5   : > { %4676 = vmatprep.subr.bf16.mxu0 %v5065_v17 }
  0xd6   : > { %4421 = vmatmul.mubr.bf16.gmra.mrb[24].mxu1 %v5583_v11  ;;  %v5068_v11 = vld [vmem:[%s5875_s3 + $0x238] sm:$0xff]  }
  0xd7   : > { %4645 = vmatmul.mubr.bf16.gmra.mrb[8].mxu0 %v2635_v26  ;;  %4424 = vmatprep.mubr.bf16.mxu1 %v5597_v31  ;;  %v2616_v31 = vld [vmem:[#allocation2 + $0x109] sm:$0xff]  ;;  %v2923_v26 = vld [vmem:[#allocation2 + $0x112] sm:$0xff] }
  0xd8   : > { %4648 = vmatprep.mubr.bf16.mxu0 %v2636_v27  ;;  %4677 = vmatpush3.bf16.msra.mxu0 %v5065_v17  ;;  %v5769_v56 = vpack.c.bf16 %v2617_v53, %v2616_v31  ;;  %v2924_v27 = vld [vmem:[#allocation2 + $0x122] sm:$0xff] }
  0xd9   : > { %4678 = vmatprep.subr.bf16.mxu0 %v5066_v4  ;;  %v1707_v31 = vld [vmem:[#allocation2 + $0x169] sm:$0xff] }
  0xda   : > { %v2932_v53 = vld [vmem:[#allocation2 + $0x182] sm:$0xff] }
  0xdc   : > { %4679 = vmatpush3.bf16.msra.mxu0 %v5066_v4 }
  0xdd   : > { %4680 = vmatprep.subr.bf16.mxu0 %v5067_v43 }
  0xde   : > { %4425 = vmatmul.mubr.bf16.gmra.mrb[28].mxu1 %v5601_v39  ;;  %v2621_v39 = vld [vmem:[#allocation2 + $0x141] sm:$0xff] }
  0xdf   : > { %4649 = vmatmul.mubr.bf16.gmra.mrb[12].mxu0 %v5758_v48  ;;  %4444 = vmatprep.mubr.bf16.mxu1 %v5557_v47  ;;  %v2620_v47 = vld [vmem:[#allocation2 + $0x139] sm:$0xff] }
  0xe0   : > { %4652 = vmatprep.mubr.bf16.mxu0 %v5760_v52  ;;  %4681 = vmatpush3.bf16.msra.mxu0 %v5067_v43  ;;  %v5781_v29 = vpack.c.bf16 %v2621_v39, %v2620_v47  ;;  %v2950_v47 = vpack.c.bf16 %v2933_v0, %v2932_v53  ;;  %v1709_v39 = vld [vmem:[#allocation2 + $0x181] sm:$0xff] }
  0xe1   : > { %4682 = vmatprep.subr.bf16.mxu0 %v5068_v11 }
  0xe4   : > { %4683 = vmatpush3.bf16.msra.mxu0 %v5068_v11  ;;  %v2931_v11 = vld [vmem:[#allocation2 + $0x172] sm:$0xff] }
  0xe6   : > { %4445 = vmatmul.mubr.bf16.vlgmr.msra.gmra.mrb[0].mxu1 %v5561_v1  ;;  %v5783_v1 = vpack.c.bf16 %v2623_v24, %v2622_v22  ;;  %v2935_v22 = vld [vmem:[#allocation2 + $0x1a2] sm:$0xff] }
  0xe7   : > { %4653 = vmatmul.mubr.bf16.gmra.mrb[16].mxu0 %v5769_v56  ;;  %4724 = vmatpush3.bf16.msra.mxu1 %v5734_v38 }
  0xe8   : > { %4448 = vmatprep.mubr.bf16.mxu1 %v5577_v63  ;;  %4656 = vmatprep.mubr.bf16.mxu0 %v5771_v18  ;;  %v5072_v63 = vld [vmem:[%s5875_s3 + $0x110] sm:$0xff]  }
  0xe9   : > { %4717 = vmatprep.subr.bf16.mxu1 %v5071_v30 }
  0xeb   : > { %4725 = vmatpush3.bf16.msra.mxu1 %v5071_v30  ;;  %v1710_v30 = vld [vmem:[#allocation2 + $0x189] sm:$0xff] }
  0xec   : > { %4718 = vmatprep.subr.bf16.mxu1 %v5072_v63  ;;  %v1726_v24 = vpack.c.bf16 %v1710_v30, %v1709_v39 }
  0xee   : > { %4449 = vmatmul.mubr.bf16.gmra.mrb[4].mxu1 %v5581_v3  ;;  %v2628_v3 = vld [vmem:[#allocation2 + $0x199] sm:$0xff] }
  0xef   : > { %4657 = vmatmul.mubr.bf16.gmra.mrb[20].mxu0 %v5781_v29  ;;  %4452 = vmatprep.mubr.bf16.mxu1 %v5595_v23  ;;  %v2629_v23 = vld [vmem:[#allocation2 + $0x1a1] sm:$0xff] }
  0xf0   : > { %4660 = vmatprep.mubr.bf16.mxu0 %v5783_v1  ;;  %4726 = vmatpush3.bf16.msra.mxu1 %v5072_v63  ;;  %v2645_v6 = vpack.c.bf16 %v2629_v23, %v2628_v3 }
  0xf1   : > { %4719 = vmatprep.subr.bf16.mxu1 %v5073_v59 }
  0xf4   : > { %4727 = vmatpush3.bf16.msra.mxu1 %v5073_v59 }
  0xf5   : > { %4720 = vmatprep.subr.bf16.mxu1 %v5074_v61 }
  0xf6   : > { %4453 = vmatmul.mubr.bf16.gmra.mrb[8].mxu1 %v5599_v34  ;;  %v2906_v34 = vld [vmem:[#allocation2 + $0x4a] sm:$0xff] }
  0xf7   : > { %4661 = vmatmul.mubr.bf16.gmra.mrb[24].mxu0 %v5537_v44  ;;  %4456 = vmatprep.mubr.bf16.mxu1 %v5619_v54  ;;  %v5076_v44 = vld [vmem:[%s5875_s3 + $0x130] sm:$0xff]   ;;  %v2908_v54 = vld [vmem:[#allocation2 + $0x62] sm:$0xff] }
  0xf8   : > { %4664 = vmatprep.mubr.bf16.mxu0 %v5613_v42  ;;  %4728 = vmatpush3.bf16.msra.mxu1 %v5074_v61  ;;  %v2907_v42 = vld [vmem:[#allocation2 + $0x52] sm:$0xff]  ;;  %v2938_v38 = vpack.c.bf16 %v2909_v46, %v2908_v54 }
  0xf9   : > { %4721 = vmatprep.subr.bf16.mxu1 %v5075_v5  ;;  %v2937_v13 = vpack.c.bf16 %v2907_v42, %v2906_v34 }
  0xfc   : > { %4729 = vmatpush3.bf16.msra.mxu1 %v5075_v5 }
  0xfd   : > { %4722 = vmatprep.subr.bf16.mxu1 %v5076_v44 }
  0xfe   : > { %4457 = vmatmul.mubr.bf16.gmra.mrb[12].mxu1 %v5621_v57  ;;  %v2910_v57 = vld [vmem:[#allocation2 + $0x7a] sm:$0xff] }
  0xff   : > { %4665 = vmatmul.mubr.bf16.gmra.mrb[28].mxu0 %v2645_v6  ;;  %4460 = vmatprep.mubr.bf16.mxu1 %v5634_v62  ;;  %v2911_v62 = vld [vmem:[#allocation2 + $0x82] sm:$0xff] }
 0x100   : > { %4684 = vmatprep.mubr.bf16.mxu0 %v2936_v7  ;;  %4730 = vmatpush3.bf16.msra.mxu1 %v5076_v44  ;;  %v2939_v58 = vpack.c.bf16 %v2911_v62, %v2910_v57 }
 0x101   : > { %4723 = vmatprep.subr.bf16.mxu1 %v5077_v9 }
 0x104   : > { %4731 = vmatpush3.bf16.msra.mxu1 %v5077_v9 }
 0x106   : > { %4461 = vmatmul.mubr.bf16.gmra.mrb[16].mxu1 %v5636_v37  ;;  %v2917_v37 = vld [vmem:[#allocation2 + $0xca] sm:$0xff] }
 0x107   : > { %4685 = vmatmul.mubr.bf16.vlgmr.msra.gmra.mrb[0].mxu0 %v2937_v13  ;;  %4464 = vmatprep.mubr.bf16.mxu1 %v5650_v50  ;;  %v2942_v49 = vpack.c.bf16 %v2917_v37, %v2916_v25  ;;  %v2918_v50 = vld [vmem:[#allocation2 + $0xda] sm:$0xff] }
 0x108   : > { %4688 = vmatprep.mubr.bf16.mxu0 %v2938_v38  ;;  %v2943_v16 = vpack.c.bf16 %v2919_v19, %v2918_v50 }
 0x10e   : > { %4465 = vmatmul.mubr.bf16.gmra.mrb[20].mxu1 %v5652_v55  ;;  %v2921_v55 = vld [vmem:[#allocation2 + $0xfa] sm:$0xff] }
 0x10f   : > { %4689 = vmatmul.mubr.bf16.gmra.mrb[4].mxu0 %v2939_v58  ;;  %4468 = vmatprep.mubr.bf16.mxu1 %v5664_v14  ;;  %v2944_v17 = vpack.c.bf16 %v2921_v55, %v2920_v8  ;;  %v2922_v14 = vld [vmem:[#allocation2 + $0x10a] sm:$0xff] }
 0x110   : > { %4692 = vmatprep.mubr.bf16.mxu0 %v2940_v41  ;;  %v2945_v4 = vpack.c.bf16 %v2923_v26, %v2922_v14 }
 0x116   : > { %4469 = vmatmul.mubr.bf16.gmra.mrb[24].mxu1 %v5666_v20  ;;  %v2925_v20 = vld [vmem:[#allocation2 + $0x12a] sm:$0xff] }
 0x117   : > { %4693 = vmatmul.mubr.bf16.gmra.mrb[8].mxu0 %v2941_v51  ;;  %4472 = vmatprep.mubr.bf16.mxu1 %v5678_v40  ;;  %v2946_v2 = vpack.c.bf16 %v2925_v20, %v2924_v27  ;;  %v2926_v40 = vld [vmem:[#allocation2 + $0x13a] sm:$0xff] }
 0x118   : > { %4696 = vmatprep.mubr.bf16.mxu0 %v2942_v49  ;;  %v2947_v36 = vpack.c.bf16 %v2927_v28, %v2926_v40 }
 0x11e   : > { %4473 = vmatmul.mubr.bf16.gmra.mrb[28].mxu1 %v5710_v21  ;;  %v2929_v21 = vld [vmem:[#allocation2 + $0x15a] sm:$0xff] }
 0x11f   : > { %4697 = vmatmul.mubr.bf16.gmra.mrb[12].mxu0 %v2943_v16  ;;  %4508 = vmatprep.mubr.bf16.mxu1 %v5758_v48  ;;  %v2948_v43 = vpack.c.bf16 %v2929_v21, %v2928_v35  ;;  %v2930_v48 = vld [vmem:[#allocation2 + $0x16a] sm:$0xff] }
 0x120   : > { %4700 = vmatprep.mubr.bf16.mxu0 %v2944_v17  ;;  %v2949_v12 = vpack.c.bf16 %v2931_v11, %v2930_v48 }
 0x126   : > { %4509 = vmatmul.mubr.bf16.vlgmr.msra.gmra.mrb[16].mxu1 %v5760_v52  ;;  %v1708_v52 = vld [vmem:[#allocation2 + $0x171] sm:$0xff] }
 0x127   : > { %4701 = vmatmul.mubr.bf16.gmra.mrb[16].mxu0 %v2945_v4  ;;  %4512 = vmatprep.mubr.bf16.mxu1 %v5769_v56  ;;  %v1725_v56 = vpack.c.bf16 %v1708_v52, %v1707_v31 }
 0x128   : > { %4704 = vmatprep.mubr.bf16.mxu0 %v2946_v2 }
 0x12e   : > { %4513 = vmatmul.mubr.bf16.gmra.mrb[20].mxu1 %v5771_v18  ;;  %v2934_v18 = vld [vmem:[#allocation2 + $0x19a] sm:$0xff] }
 0x12f   : > { %4705 = vmatmul.mubr.bf16.gmra.mrb[20].mxu0 %v2947_v36  ;;  %4516 = vmatprep.mubr.bf16.mxu1 %v5781_v29  ;;  %v2951_v29 = vpack.c.bf16 %v2935_v22, %v2934_v18 }
 0x130   : > { %4708 = vmatprep.mubr.bf16.mxu0 %v2948_v43 }
 0x136   : > { %4517 = vmatmul.mubr.bf16.gmra.mrb[24].mxu1 %v5783_v1 }
 0x137   : > { %4709 = vmatmul.mubr.bf16.gmra.mrb[24].mxu0 %v2949_v12  ;;  %4520 = vmatprep.mubr.bf16.mxu1 %v1725_v56 }
 0x138   : > { %4712 = vmatprep.mubr.bf16.mxu0 %v2950_v47 }
 0x13e   : > { %4521 = vmatmul.mubr.bf16.gmra.mrb[28].mxu1 %v1726_v24 }
 0x13f   : > { %4713 = vmatmul.mubr.bf16.gmra.mrb[28].mxu0 %v2951_v29 }
 0x1b9   : > { %v4446_v63 = vpop.f32.mrb[0].mxu1 }
 0x1ba   : > { %v1520_v59 = vpop.f32.mrb[1].mxu1 }
 0x1bb   : > { %v4447_v61 = vpop.f32.mrb[2].mxu1 }
 0x1bc   : > { %v1523_v3 = vpop.f32.mrb[3].mxu1 }
 0x1c1   : > { %v4450_v23 = vpop.f32.mrb[4].mxu1 }
 0x1c2   : > { %v1536_v33 = vpop.f32.mrb[5].mxu1 }
 0x1c3   : > { %v4451_v32 = vpop.f32.mrb[6].mxu1 }
 0x1c4   : > { %v1539_v5 = vpop.f32.mrb[7].mxu1 }
 0x1c9   : > { %v4454_v1 = vpop.f32.mrb[8].mxu1 }
 0x1ca   : > { %v1552_v6 = vpop.f32.mrb[9].mxu1 }
 0x1cb   : > { %v4455_v7 = vpop.f32.mrb[10].mxu1 }
 0x1cc   : > { %v1555_v44 = vpop.f32.mrb[11].mxu1 }
 0x1d1   : > { %v5826_v34 = vpop.f32.mrb[12].mxu1 }
 0x1d2   : > { %v5828_v42 = vpop.f32.mrb[13].mxu1 }
 0x1d3   : > { %v5830_v54 = vpop.f32.mrb[14].mxu1 }
 0x1d4   : > { %v5832_v46 = vpop.f32.mrb[15].mxu1 }
 0x1da   : > { %v4686_v9 = vpop.f32.mrb[0].mxu0 }
 0x1db   : > { %v4732_v13 = vadd.f32 %v4686_v9, %v4446_v63  ;;  %v3051_v38 = vpop.f32.mrb[1].mxu0 }
 0x1dc   : > { %v4733_v57 = vadd.f32 %v3051_v38, %v1520_v59  ;;  %v4687_v62 = vpop.f32.mrb[2].mxu0 }
 0x1dd   : > { %v4734_v45 = vadd.f32 %v4687_v62, %v4447_v61  ;;  %v3054_v15 = vpop.f32.mrb[3].mxu0 }
 0x1de   : > { %v4735_v58 = vadd.f32 %v3054_v15, %v1523_v3 }
 0x1df   : > { %v3211_v41 = vpack.c.bf16 %v4734_v45, %v4732_v13 }
 0x1e0   : > { %v3210_v60 = vpack.c.bf16 %v4735_v58, %v4733_v57 }
 0x1e1   : > { %4053 = vst [vmem:[%s5839_s26 + $0x8] sm:$0xff] %v3211_v41   ;;  %v3372_v10 = vunpack.c.l.bf16 %v3211_v41  ;;  %v3373_v49 = vunpack.c.h.bf16 %v3211_v41 }
 0x1e2   : > { %3962 = vst [vmem:[%s5839_s26] sm:$0xff] %v3210_v60   ;;  %v3370_v25 = vunpack.c.l.bf16 %v3210_v60  ;;  %v3371_v37 = vunpack.c.h.bf16 %v3210_v60  ;;  %v4690_v51 = vpop.f32.mrb[4].mxu0 }
 0x1e3   : > { %v4736_v50 = vadd.f32 %v4690_v51, %v4450_v23  ;;  %v3067_v19 = vpop.f32.mrb[5].mxu0  ;;  %v3442_v20 = vmul.f32 %v3372_v10, %v3372_v10  ;;  %v3443_v35 = vmul.f32 %v3373_v49, %v3373_v49 }
 0x1e4   : > { %v3402_v8 = vadd.f32 %v3371_v37, %v3370_v25  ;;  %v3440_v55 = vmul.f32 %v3370_v25, %v3370_v25  ;;  %v3441_v16 = vmul.f32 %v3371_v37, %v3371_v37  ;;  %v4737_v17 = vadd.f32 %v3067_v19, %v1536_v33  ;;  %v4691_v14 = vpop.f32.mrb[6].mxu0 }
 0x1e5   : > { %v4738_v26 = vadd.f32 %v4691_v14, %v4451_v32  ;;  %v3070_v27 = vpop.f32.mrb[7].mxu0 }
 0x1e6   : > { %v3403_v4 = vadd.f32 %v3402_v8, %v3372_v10  ;;  %v3472_v2 = vadd.f32 %v3441_v16, %v3440_v55  ;;  %v4739_v40 = vadd.f32 %v3070_v27, %v1539_v5 }
 0x1e7   : > { %v3213_v28 = vpack.c.bf16 %v4738_v26, %v4736_v50 }
 0x1e8   : > { %v3473_v21 = vadd.f32 %v3472_v2, %v3442_v20  ;;  %v3212_v36 = vpack.c.bf16 %v4739_v40, %v4737_v17  ;;  %v3404_v43 = vadd.f32 %v3403_v4, %v3373_v49 }
 0x1e9   : > { %4055 = vst [vmem:[%s5839_s26 + $0x18] sm:$0xff] %v3213_v28   ;;  %v3376_v12 = vunpack.c.l.bf16 %v3213_v28  ;;  %v3377_v18 = vunpack.c.h.bf16 %v3213_v28 }
 0x1ea   : > { %4054 = vst [vmem:[%s5839_s26 + $0x10] sm:$0xff] %v3212_v36   ;;  %v3374_v48 = vunpack.c.l.bf16 %v3212_v36  ;;  %v3375_v11 = vunpack.c.h.bf16 %v3212_v36  ;;  %v3474_v31 = vadd.f32 %v3473_v21, %v3443_v35  ;;  %v4694_v52 = vpop.f32.mrb[8].mxu0 }
 0x1eb   : > { %v4740_v53 = vadd.f32 %v4694_v52, %v4454_v1  ;;  %v3083_v0 = vpop.f32.mrb[9].mxu0  ;;  %v3446_v23 = vmul.f32 %v3376_v12, %v3376_v12  ;;  %v3447_v1 = vmul.f32 %v3377_v18, %v3377_v18 }
 0x1ec   : > { %v3405_v56 = vadd.f32 %v3404_v43, %v3374_v48  ;;  %v3444_v47 = vmul.f32 %v3374_v48, %v3374_v48  ;;  %v4741_v39 = vadd.f32 %v3083_v0, %v1552_v6  ;;  %v4695_v30 = vpop.f32.mrb[10].mxu0  ;;  %v3445_v63 = vmul.f32 %v3375_v11, %v3375_v11 }
 0x1ed   : > { %v4742_v22 = vadd.f32 %v4695_v30, %v4455_v7  ;;  %v3086_v24 = vpop.f32.mrb[11].mxu0 }
 0x1ee   : > { %v3406_v29 = vadd.f32 %v3405_v56, %v3375_v11  ;;  %v3475_v59 = vadd.f32 %v3474_v31, %v3444_v47  ;;  %v4743_v61 = vadd.f32 %v3086_v24, %v1555_v44 }
 0x1ef   : > { %v3215_v3 = vpack.c.bf16 %v4742_v22, %v4740_v53 }
 0x1f0   : > { %v3407_v33 = vadd.f32 %v3406_v29, %v3376_v12  ;;  %v3476_v32 = vadd.f32 %v3475_v59, %v3445_v63  ;;  %v3214_v5 = vpack.c.bf16 %v4743_v61, %v4741_v39 }
 0x1f1   : > { %4057 = vst [vmem:[%s5839_s26 + $0x28] sm:$0xff] %v3215_v3   ;;  %v3380_v45 = vunpack.c.l.bf16 %v3215_v3  ;;  %v3381_v60 = vunpack.c.h.bf16 %v3215_v3 }
 0x1f2   : > { %v3477_v9 = vadd.f32 %v3476_v32, %v3446_v23  ;;  %4056 = vst [vmem:[%s5839_s26 + $0x20] sm:$0xff] %v3214_v5   ;;  %v3378_v13 = vunpack.c.l.bf16 %v3214_v5  ;;  %v3379_v6 = vunpack.c.h.bf16 %v3214_v5  ;;  %v3408_v38 = vadd.f32 %v3407_v33, %v3377_v18  ;;  %v4698_v57 = vpop.f32.mrb[12].mxu0 }
 0x1f3   : > { %v4744_v7 = vadd.f32 %v4698_v57, %v5826_v34  ;;  %v3099_v62 = vpop.f32.mrb[13].mxu0  ;;  %v3450_v8 = vmul.f32 %v3380_v45, %v3380_v45  ;;  %v3451_v14 = vmul.f32 %v3381_v60, %v3381_v60 }
 0x1f4   : > { %v3409_v15 = vadd.f32 %v3408_v38, %v3378_v13  ;;  %v3448_v58 = vmul.f32 %v3378_v13, %v3378_v13  ;;  %v3478_v44 = vadd.f32 %v3477_v9, %v3447_v1  ;;  %v4699_v41 = vpop.f32.mrb[14].mxu0  ;;  %v4745_v10 = vadd.f32 %v3099_v62, %v5828_v42 }
 0x1f5   : > { %v4746_v25 = vadd.f32 %v4699_v41, %v5830_v54  ;;  %v3102_v37 = vpop.f32.mrb[15].mxu0  ;;  %v3449_v49 = vmul.f32 %v3379_v6, %v3379_v6 }
 0x1f6   : > { %v3410_v51 = vadd.f32 %v3409_v15, %v3379_v6  ;;  %v3479_v50 = vadd.f32 %v3478_v44, %v3448_v58  ;;  %v4747_v19 = vadd.f32 %v3102_v37, %v5832_v46 }
 0x1f7   : > { %v3217_v34 = vpack.c.bf16 %v4746_v25, %v4744_v7 }
 0x1f8   : > { %v3411_v55 = vadd.f32 %v3410_v51, %v3380_v45  ;;  %v3480_v16 = vadd.f32 %v3479_v50, %v3449_v49  ;;  %v3216_v17 = vpack.c.bf16 %v4747_v19, %v4745_v10 }
 0x1f9   : > { %4059 = vst [vmem:[%s5839_s26 + $0x38] sm:$0xff] %v3217_v34   ;;  %v4510_v26 = vpop.f32.mrb[16].mxu1  ;;  %v3384_v21 = vunpack.c.l.bf16 %v3217_v34  ;;  %v3385_v31 = vunpack.c.h.bf16 %v3217_v34 }
 0x1fa   : > { %v3481_v27 = vadd.f32 %v3480_v16, %v3450_v8  ;;  %4058 = vst [vmem:[%s5839_s26 + $0x30] sm:$0xff] %v3216_v17   ;;  %v3382_v42 = vunpack.c.l.bf16 %v3216_v17  ;;  %v3383_v20 = vunpack.c.h.bf16 %v3216_v17  ;;  %v3412_v4 = vadd.f32 %v3411_v55, %v3381_v60  ;;  %v4702_v54 = vpop.f32.mrb[16].mxu0  ;;  %v1890_v2 = vpop.f32.mrb[17].mxu1 }
 0x1fb   : > { %v4748_v40 = vadd.f32 %v4702_v54, %v4510_v26  ;;  %v3115_v28 = vpop.f32.mrb[17].mxu0  ;;  %v4511_v35 = vpop.f32.mrb[18].mxu1  ;;  %v3454_v18 = vmul.f32 %v3384_v21, %v3384_v21  ;;  %v3455_v63 = vmul.f32 %v3385_v31, %v3385_v31 }
 0x1fc   : > { %v3413_v46 = vadd.f32 %v3412_v4, %v3382_v42  ;;  %v3452_v36 = vmul.f32 %v3382_v42, %v3382_v42  ;;  %v3482_v43 = vadd.f32 %v3481_v27, %v3451_v14  ;;  %v4703_v48 = vpop.f32.mrb[18].mxu0  ;;  %v1893_v11 = vpop.f32.mrb[19].mxu1  ;;  %v4749_v52 = vadd.f32 %v3115_v28, %v1890_v2 }
 0x1fd   : > { %v4750_v53 = vadd.f32 %v4703_v48, %v4511_v35  ;;  %v3118_v0 = vpop.f32.mrb[19].mxu0  ;;  %v3453_v56 = vmul.f32 %v3383_v20, %v3383_v20 }
 0x1fe   : > { %v3414_v12 = vadd.f32 %v3413_v46, %v3383_v20  ;;  %v3483_v47 = vadd.f32 %v3482_v43, %v3452_v36  ;;  %v4751_v39 = vadd.f32 %v3118_v0, %v1893_v11 }
 0x1ff   : > { %v3219_v30 = vpack.c.bf16 %v4750_v53, %v4748_v40 }
 0x200   : > { %v3415_v22 = vadd.f32 %v3414_v12, %v3384_v21  ;;  %v3484_v24 = vadd.f32 %v3483_v47, %v3453_v56  ;;  %v3218_v29 = vpack.c.bf16 %v4751_v39, %v4749_v52 }
 0x201   : > { %4061 = vst [vmem:[%s5839_s26 + $0x48] sm:$0xff] %v3219_v30   ;;  %v4514_v59 = vpop.f32.mrb[20].mxu1  ;;  %v3388_v6 = vunpack.c.l.bf16 %v3219_v30  ;;  %v3389_v15 = vunpack.c.h.bf16 %v3219_v30 }
 0x202   : > { %v3485_v61 = vadd.f32 %v3484_v24, %v3454_v18  ;;  %4060 = vst [vmem:[%s5839_s26 + $0x40] sm:$0xff] %v3218_v29   ;;  %v3386_v3 = vunpack.c.l.bf16 %v3218_v29  ;;  %v3387_v23 = vunpack.c.h.bf16 %v3218_v29  ;;  %v3416_v33 = vadd.f32 %v3415_v22, %v3385_v31  ;;  %v4706_v32 = vpop.f32.mrb[20].mxu0  ;;  %v1906_v5 = vpop.f32.mrb[21].mxu1 }
 0x203   : > { %v4752_v1 = vadd.f32 %v4706_v32, %v4514_v59  ;;  %v3131_v9 = vpop.f32.mrb[21].mxu0  ;;  %v4515_v13 = vpop.f32.mrb[22].mxu1  ;;  %v3458_v49 = vmul.f32 %v3388_v6, %v3388_v6  ;;  %v3459_v8 = vmul.f32 %v3389_v15, %v3389_v15 }
 0x204   : > { %v3417_v38 = vadd.f32 %v3416_v33, %v3386_v3  ;;  %v3456_v57 = vmul.f32 %v3386_v3, %v3386_v3  ;;  %v3486_v7 = vadd.f32 %v3485_v61, %v3455_v63  ;;  %v4707_v62 = vpop.f32.mrb[22].mxu0  ;;  %v1909_v45 = vpop.f32.mrb[23].mxu1  ;;  %v4753_v58 = vadd.f32 %v3131_v9, %v1906_v5 }
 0x205   : > { %v4754_v44 = vadd.f32 %v4707_v62, %v4515_v13  ;;  %v3134_v41 = vpop.f32.mrb[23].mxu0  ;;  %v3457_v10 = vmul.f32 %v3387_v23, %v3387_v23 }
 0x206   : > { %v3418_v60 = vadd.f32 %v3417_v38, %v3387_v23  ;;  %v3487_v25 = vadd.f32 %v3486_v7, %v3456_v57  ;;  %v4755_v37 = vadd.f32 %v3134_v41, %v1909_v45 }
 0x207   : > { %v3221_v51 = vpack.c.bf16 %v4754_v44, %v4752_v1 }
 0x208   : > { %v3419_v50 = vadd.f32 %v3418_v60, %v3388_v6  ;;  %v3488_v19 = vadd.f32 %v3487_v25, %v3457_v10  ;;  %v3220_v34 = vpack.c.bf16 %v4755_v37, %v4753_v58 }
 0x209   : > { %4063 = vst [vmem:[%s5839_s26 + $0x58] sm:$0xff] %v3221_v51   ;;  %v4518_v55 = vpop.f32.mrb[24].mxu1  ;;  %v3392_v2 = vunpack.c.l.bf16 %v3221_v51  ;;  %v3393_v36 = vunpack.c.h.bf16 %v3221_v51 }
 0x20a   : > { %v3489_v16 = vadd.f32 %v3488_v19, %v3458_v49  ;;  %4062 = vst [vmem:[%s5839_s26 + $0x50] sm:$0xff] %v3220_v34   ;;  %v3390_v17 = vunpack.c.l.bf16 %v3220_v34  ;;  %v3391_v14 = vunpack.c.h.bf16 %v3220_v34  ;;  %v3420_v26 = vadd.f32 %v3419_v50, %v3389_v15  ;;  %v4710_v27 = vpop.f32.mrb[24].mxu0  ;;  %v1922_v42 = vpop.f32.mrb[25].mxu1 }
 0x20b   : > { %v4756_v20 = vadd.f32 %v4710_v27, %v4518_v55  ;;  %v3147_v4 = vpop.f32.mrb[25].mxu0  ;;  %v4519_v54 = vpop.f32.mrb[26].mxu1  ;;  %v3462_v56 = vmul.f32 %v3392_v2, %v3392_v2  ;;  %v3463_v18 = vmul.f32 %v3393_v36, %v3393_v36 }
 0x20c   : > { %v3421_v40 = vadd.f32 %v3420_v26, %v3390_v17  ;;  %v3460_v28 = vmul.f32 %v3390_v17, %v3390_v17  ;;  %v3490_v35 = vadd.f32 %v3489_v16, %v3459_v8  ;;  %v4711_v21 = vpop.f32.mrb[26].mxu0  ;;  %v1925_v46 = vpop.f32.mrb[27].mxu1  ;;  %v4757_v43 = vadd.f32 %v3147_v4, %v1922_v42 }
 0x20d   : > { %v4758_v48 = vadd.f32 %v4711_v21, %v4519_v54  ;;  %v3150_v11 = vpop.f32.mrb[27].mxu0  ;;  %v3461_v52 = vmul.f32 %v3391_v14, %v3391_v14 }
 0x20e   : > { %v3422_v31 = vadd.f32 %v3421_v40, %v3391_v14  ;;  %v3491_v53 = vadd.f32 %v3490_v35, %v3460_v28  ;;  %v4759_v0 = vadd.f32 %v3150_v11, %v1925_v46 }
 0x20f   : > { %v3223_v12 = vpack.c.bf16 %v4758_v48, %v4756_v20 }
 0x210   : > { %v3423_v47 = vadd.f32 %v3422_v31, %v3392_v2  ;;  %v3492_v39 = vadd.f32 %v3491_v53, %v3461_v52  ;;  %v3222_v30 = vpack.c.bf16 %v4759_v0, %v4757_v43 }
 0x211   : > { %4065 = vst [vmem:[%s5839_s26 + $0x68] sm:$0xff] %v3223_v12   ;;  %v4522_v22 = vpop.f32.mrb[28].mxu1  ;;  %v3396_v5 = vunpack.c.l.bf16 %v3223_v12  ;;  %v3397_v57 = vunpack.c.h.bf16 %v3223_v12 }
 0x212   : > { %v3493_v24 = vadd.f32 %v3492_v39, %v3462_v56  ;;  %4064 = vst [vmem:[%s5839_s26 + $0x60] sm:$0xff] %v3222_v30   ;;  %v3394_v29 = vunpack.c.l.bf16 %v3222_v30  ;;  %v3395_v63 = vunpack.c.h.bf16 %v3222_v30  ;;  %v3424_v59 = vadd.f32 %v3423_v47, %v3393_v36  ;;  %v4714_v61 = vpop.f32.mrb[28].mxu0  ;;  %v1938_v3 = vpop.f32.mrb[29].mxu1 }
 0x213   : > { %v4760_v23 = vadd.f32 %v4714_v61, %v4522_v22  ;;  %v3163_v33 = vpop.f32.mrb[29].mxu0  ;;  %v4523_v32 = vpop.f32.mrb[30].mxu1  ;;  %v3466_v10 = vmul.f32 %v3396_v5, %v3396_v5  ;;  %v3467_v49 = vmul.f32 %v3397_v57, %v3397_v57 }
 0x214   : > { %v3425_v1 = vadd.f32 %v3424_v59, %v3394_v29  ;;  %v3464_v9 = vmul.f32 %v3394_v29, %v3394_v29  ;;  %v3494_v13 = vadd.f32 %v3493_v24, %v3463_v18  ;;  %v4715_v6 = vpop.f32.mrb[30].mxu0  ;;  %v1941_v38 = vpop.f32.mrb[31].mxu1  ;;  %v4761_v7 = vadd.f32 %v3163_v33, %v1938_v3 }
 0x215   : > { %v4762_v62 = vadd.f32 %v4715_v6, %v4523_v32  ;;  %v3166_v45 = vpop.f32.mrb[31].mxu0  ;;  %v3465_v58 = vmul.f32 %v3395_v63, %v3395_v63 }
 0x216   : > { %v3426_v15 = vadd.f32 %v3425_v1, %v3395_v63  ;;  %v3495_v44 = vadd.f32 %v3494_v13, %v3464_v9  ;;  %v4763_v41 = vadd.f32 %v3166_v45, %v1941_v38 }
 0x217   : > { %v3225_v60 = vpack.c.bf16 %v4762_v62, %v4760_v23 }
 0x218   : > { %v3427_v25 = vadd.f32 %v3426_v15, %v3396_v5  ;;  %v3496_v37 = vadd.f32 %v3495_v44, %v3465_v58  ;;  %v3224_v51 = vpack.c.bf16 %v4763_v41, %v4761_v7 }
 0x219   : > { %4067 = vst [vmem:[%s5839_s26 + $0x78] sm:$0xff] %v3225_v60   ;;  %v3400_v55 = vunpack.c.l.bf16 %v3225_v60  ;;  %v3401_v26 = vunpack.c.h.bf16 %v3225_v60 }
 0x21a   : > { %v3497_v50 = vadd.f32 %v3496_v37, %v3466_v10  ;;  %4066 = vst [vmem:[%s5839_s26 + $0x70] sm:$0xff] %v3224_v51   ;;  %v3398_v19 = vunpack.c.l.bf16 %v3224_v51  ;;  %v3399_v34 = vunpack.c.h.bf16 %v3224_v51  ;;  %v3428_v8 = vadd.f32 %v3427_v25, %v3397_v57 }
 0x21b   : > { %v3470_v4 = vmul.f32 %v3400_v55, %v3400_v55  ;;  %v3471_v40 = vmul.f32 %v3401_v26, %v3401_v26 }
 0x21c   : > { %v3429_v16 = vadd.f32 %v3428_v8, %v3398_v19  ;;  %v3468_v17 = vmul.f32 %v3398_v19, %v3398_v19  ;;  %v3498_v14 = vadd.f32 %v3497_v50, %v3467_v49  ;;  %v3469_v42 = vmul.f32 %v3399_v34, %v3399_v34 }
 0x21e   : > { %v3430_v27 = vadd.f32 %v3429_v16, %v3399_v34  ;;  %v3499_v20 = vadd.f32 %v3498_v14, %v3468_v17 }
 0x220   : > { %v3431_v54 = vadd.f32 %v3430_v27, %v3400_v55  ;;  %v3500_v2 = vadd.f32 %v3499_v20, %v3469_v42 }
 0x222   : > { %v3432_v28 = vadd.f32 %v3431_v54, %v3401_v26  ;;  %v3501_v35 = vadd.f32 %v3500_v2, %v3470_v4 }
 0x224   : > { %v3433_v21 = vrot.slane %v3432_v28, 4  ;;  %v3502_v46 = vadd.f32 %v3501_v35, %v3471_v40 }
 0x226   : > { %v3434_v36 = vadd.f32 %v3433_v21, %v3432_v28  ;;  %v3503_v43 = vrot.slane %v3502_v46, 4 }
 0x228   : > { %v3435_v48 = vrot.slane %v3434_v36, 2  ;;  %v3504_v11 = vadd.f32 %v3503_v43, %v3502_v46 }
 0x22a   : > { %v3436_v31 = vadd.f32 %v3435_v48, %v3434_v36  ;;  %v3505_v52 = vrot.slane %v3504_v11, 2 }
 0x22c   : > { %v3437_v53 = vrot.slane %v3436_v31, 1  ;;  %v3506_v0 = vadd.f32 %v3505_v52, %v3504_v11 }
 0x22e   : > { %v3438_v12 = vadd.f32 %v3437_v53, %v3436_v31  ;;  %v3507_v56 = vrot.slane %v3506_v0, 1 }
 0x230   : > { %3439 = vst [vmem:[%s265_s28] sm:$0x1] %v3438_v12  ;;  %v3508_v47 = vadd.f32 %v3507_v56, %v3506_v0 }
 0x232   : > { %3509 = vst [vmem:[%s268_s7] sm:$0x1] %v3508_v47 }
 0x233 PF: > { %s17_s21 = sadd.s32 1, %s5084_s21  }
 0x234   : > { %p14_p4 = scmp.ge.s32.totalorder %s17_s21, 4  }
 0x236   :  { %16 = sbr.rel (!%p14_p4) target bundleno = 1 (0x1), region = 101 }

// kernel: basic_block_forward.3
= control target key start
LH: loop header
LB: loop body
LE: loop exit
PB: predicated region body
PF: predicated region fallthrough
CT: control target
= control target key end

     0   :  { %s4847_s15 = smov 0   ;;  %s5400_s0 = inlined_call_operand.vmem [shape: f32[2,16,16,4], index: 0, kind: input, shape index: {}]   ;;  %s5401_s1 = inlined_call_operand.vmem [shape: bf16[9,128,128], index: 1, kind: input, shape index: {}]   ;;  %s5402_s2 = inlined_call_operand.vmem [shape: bf16[2,256,128], index: 2, kind: output, shape index: {0}]   ;;  %s5403_s3 = inlined_call_operand.vmem [shape: f32[2,1,128], index: 3, kind: output, shape index: {1}]   ;;  %s5404_s4 = inlined_call_operand.vmem [shape: f32[2,1,128], index: 4, kind: output, shape index: {2}]  }
   0x1 LB: > { %s3431_s16 = sadd.s32 4294967295, %s4818_s15   ;;  %p3435_p0 = scmp.ge.s32.totalorder %s4818_s15, 1  ;;  %s4818_s15 = sphi %s4847_s15, %s15_s15  }
   0x2   : > { %p167_p1 = scmp.lt.s32.totalorder %s4818_s15, 3 }
   0x4   : > { %p168_p2 = pnand %p3435_p0, %p167_p1 }
   0x5   : > { %v4732_v0 = vld [vmem:[%s5401_s1 + $0x40] sm:$0xff] (!%p168_p2)   ;;  %v4820_v2 = vmov (!%p168_p2), 0.0   ;;  %v4734_v3 = vld [vmem:[%s5401_s1 + $0x48] sm:$0xff] (!%p168_p2)   ;;  %p199_p3 = scmp.lt.s32.totalorder (!%p168_p2), %s3431_s16, 1  ;;  %v4736_v5 = vld [vmem:[%s5401_s1 + $0x50] sm:$0xff] (!%p168_p2)   ;;  %vm303_vm0 = vcmask (!%p168_p2), 31744  }
   0x6   : > { %171 = sbr.rel (%p168_p2) target bundleno = 568 (0x238), region = 28  ;;  %v4733_v1 = vld [vmem:[%s5401_s1 + $0x100] sm:$0xff] (!%p168_p2)   ;;  %216 = vst [vmem:[#allocation2] sm:$0xff] (!%p168_p2), %v4820_v2  ;;  %217 = vst [vmem:[#allocation2 + $0x8] sm:$0xff] (!%p168_p2), %v4820_v2  ;;  %4019 = vmatprep.subr.bf16.mxu1 (!%p168_p2), %v4732_v0  ;;  %v4735_v4 = vld [vmem:[%s5401_s1 + $0x108] sm:$0xff] (!%p168_p2)  }
   0x7   : > { %218 = vst [vmem:[#allocation2 + $0x10] sm:$0x3] (!%p168_p2), %v4820_v2  ;;  %219 = vst [vmem:[#allocation2 + $0x18] sm:$0xff] (!%p168_p2), %v4820_v2  ;;  %4211 = vmatprep.subr.bf16.mxu0 (!%p168_p2), %v4733_v1  ;;  %4020 = vmatpush3.bf16.msra.mxu1 (!%p168_p2), %v4732_v0  ;;  %v4737_v6 = vld [vmem:[%s5401_s1 + $0x110] sm:$0xff] (!%p168_p2)   ;;  %v4738_v7 = vld [vmem:[%s5401_s1 + $0x58] sm:$0xff] (!%p168_p2)  }
   0x8   : > { %220 = vst [vmem:[#allocation2 + $0x20] sm:$0xff] (!%p168_p2), %v4820_v2  ;;  %221 = vst [vmem:[#allocation2 + $0x28] sm:$0x3] (!%p168_p2), %v4820_v2  ;;  %4212 = vmatpush3.bf16.msra.mxu0 (!%p168_p2), %v4733_v1  ;;  %4021 = vmatprep.subr.bf16.mxu1 (!%p168_p2), %v4734_v3  ;;  %v4739_v8 = vld [vmem:[%s5401_s1 + $0x118] sm:$0xff] (!%p168_p2)   ;;  %v4740_v9 = vld [vmem:[%s5401_s1 + $0x60] sm:$0xff] (!%p168_p2)  }
   0x9   : > { %222 = vst [vmem:[#allocation2 + $0x30] sm:$0xff] (!%p168_p2), %v4820_v2  ;;  %223 = vst [vmem:[#allocation2 + $0x38] sm:$0xff] (!%p168_p2), %v4820_v2  ;;  %4213 = vmatprep.subr.bf16.mxu0 (!%p168_p2), %v4735_v4  ;;  %v4741_v10 = vld [vmem:[%s5401_s1 + $0x120] sm:$0xff] (!%p168_p2)   ;;  %v4742_v11 = vld [vmem:[%s5401_s1 + $0x68] sm:$0xff] (!%p168_p2)  }
   0xa   : > { %224 = vst [vmem:[#allocation2 + $0x40] sm:$0x3] (!%p168_p2), %v4820_v2  ;;  %225 = vst [vmem:[#allocation2 + $0x48] sm:$0xff] (!%p168_p2), %v4820_v2  ;;  %v4743_v12 = vld [vmem:[%s5401_s1 + $0x128] sm:$0xff] (!%p168_p2)   ;;  %v4744_v20 = vld [vmem:[%s5401_s1 + $0x70] sm:$0xff] (!%p168_p2)  }
   0xb   : > { %226 = vst [vmem:[#allocation2 + $0x50] sm:$0xff] (!%p168_p2), %v4820_v2  ;;  %227 = vst [vmem:[#allocation2 + $0x58] sm:$0x3] (!%p168_p2), %v4820_v2  ;;  %4022 = vmatpush3.bf16.msra.mxu1 (!%p168_p2), %v4734_v3  ;;  %v4745_v21 = vld [vmem:[%s5401_s1 + $0x130] sm:$0xff] (!%p168_p2)   ;;  %v4746_v26 = vld [vmem:[%s5401_s1 + $0x78] sm:$0xff] (!%p168_p2)  }
   0xc   : > { %228 = vst [vmem:[#allocation2 + $0x60] sm:$0xff] (!%p168_p2), %v4820_v2  ;;  %229 = vst [vmem:[#allocation2 + $0x68] sm:$0xff] (!%p168_p2), %v4820_v2  ;;  %4214 = vmatpush3.bf16.msra.mxu0 (!%p168_p2), %v4735_v4  ;;  %4023 = vmatprep.subr.bf16.mxu1 (!%p168_p2), %v4736_v5  ;;  %v4747_v28 = vld [vmem:[%s5401_s1 + $0x138] sm:$0xff] (!%p168_p2)   ;;  %v4748_v31 = vld [vmem:[%s5401_s1] sm:$0xff] (!%p168_p2)  }
   0xd   : > { %230 = vst [vmem:[#allocation2 + $0x70] sm:$0x3] %v4820_v2  ;;  %231 = vst [vmem:[#allocation2 + $0x78] sm:$0xff] %v4820_v2  ;;  %s5406_s16 = smov (!%p199_p3, %s3431_s16), 1  ;;  %4215 = vmatprep.subr.bf16.mxu0 %v4737_v6  ;;  %v400_v13 = vld [vmem:[#allocation2 + $0x1] sm:$0xff]  ;;  %v4752_v49 = vld [vmem:[%s5401_s1 + $0x150] sm:$0xff]  }
   0xe   : > { %232 = vst [vmem:[#allocation2 + $0x80] sm:$0xff] %v4820_v2  ;;  %233 = vst [vmem:[#allocation2 + $0x88] sm:$0x3] %v4820_v2  ;;  %s3674_s7 = sshll.u32 %s5406_s16, 8  ;;  %v401_v14 = vld [vmem:[#allocation2 + $0x9] sm:$0xff]  ;;  %v4749_v38 = vld [vmem:[%s5401_s1 + $0x140] sm:$0xff]   ;;  %s211_s21 = scalar_lea.vmem %s5403_s3, %s5406_s16 }
   0xf   : > { %234 = vst [vmem:[#allocation2 + $0x90] sm:$0xff] %v4820_v2  ;;  %235 = vst [vmem:[#allocation2 + $0x98] sm:$0xff] %v4820_v2  ;;  %4024 = vmatpush3.bf16.msra.mxu1 %v4736_v5  ;;  %s4895_s14 = scalar_lea.vmem %s5400_s0, %s3674_s7  ;;  %v432_v16 = vpack.c.bf16 %v401_v14, %v400_v13  ;;  %v4750_v44 = vld [vmem:[%s5401_s1 + $0x148] sm:$0xff]   ;;  %v4754_v50 = vld [vmem:[%s5401_s1 + $0x10] sm:$0xff]   ;;  %s3675_s12 = sshll.u32 %s5406_s16, 7 }
  0x10   : > { %236 = vst [vmem:[#allocation2 + $0xa0] sm:$0x3] %v4820_v2  ;;  %237 = vst [vmem:[#allocation2 + $0xa8] sm:$0xff] %v4820_v2  ;;  %4216 = vmatpush3.bf16.msra.mxu0 %v4737_v6  ;;  %4025 = vmatprep.subr.bf16.mxu1 %v4738_v7  ;;  %v270_v15 = vld [vmem:[%s4895_s14] sm:$0xff]  ;;  %v271_v17 = vld [vmem:[%s4895_s14 + $0x8] sm:$0xff]  ;;  %s5367_s18 = scalar_lea.vmem %s5402_s2, %s3675_s12  ;;  %s214_s24 = scalar_lea.vmem %s5404_s4, %s5406_s16 }
  0x11   : > { %238 = vst [vmem:[#allocation2 + $0xb0] sm:$0xff] %v4820_v2  ;;  %239 = vst [vmem:[#allocation2 + $0xb8] sm:$0x3] %v4820_v2  ;;  %4217 = vmatprep.subr.bf16.mxu0 %v4739_v8  ;;  %v272_v18 = vld [vmem:[%s4895_s14 + $0x10] sm:$0xff]  ;;  %v273_v19 = vld [vmem:[%s4895_s14 + $0x18] sm:$0xff]  ;;  %4035 = vmatprep.mubr.bf16.mxu1 %v432_v16 }
  0x12   : > { %240 = vst [vmem:[#allocation2 + $0xc0] sm:$0xff] %v4820_v2  ;;  %241 = vst [vmem:[#allocation2 + $0xc8] sm:$0xff] %v4820_v2  ;;  %v274_v22 = vld [vmem:[%s4895_s14 + $0x20] sm:$0xff]  ;;  %v275_v23 = vld [vmem:[%s4895_s14 + $0x28] sm:$0xff] }
  0x13   : > { %242 = vst [vmem:[#allocation2 + $0xd0] sm:$0x3] %v4820_v2  ;;  %243 = vst [vmem:[#allocation2 + $0xd8] sm:$0xff] %v4820_v2  ;;  %4026 = vmatpush3.bf16.msra.mxu1 %v4738_v7  ;;  %v276_v24 = vld [vmem:[%s4895_s14 + $0x30] sm:$0xff]  ;;  %v277_v25 = vld [vmem:[%s4895_s14 + $0x38] sm:$0xff] }
  0x14   : > { %244 = vst [vmem:[#allocation2 + $0xe0] sm:$0xff] %v4820_v2  ;;  %245 = vst [vmem:[#allocation2 + $0xe8] sm:$0x3] %v4820_v2  ;;  %4218 = vmatpush3.bf16.msra.mxu0 %v4739_v8  ;;  %4027 = vmatprep.subr.bf16.mxu1 %v4740_v9  ;;  %v278_v33 = vld [vmem:[%s4895_s14 + $0x40] sm:$0xff]  ;;  %v279_v34 = vld [vmem:[%s4895_s14 + $0x48] sm:$0xff] }
  0x15   : > { %246 = vst [vmem:[#allocation2 + $0xf0] sm:$0xff] %v4820_v2  ;;  %247 = vst [vmem:[#allocation2 + $0xf8] sm:$0xff] %v4820_v2  ;;  %4219 = vmatprep.subr.bf16.mxu0 %v4741_v10  ;;  %v280_v36 = vld [vmem:[%s4895_s14 + $0x50] sm:$0xff]  ;;  %v281_v37 = vld [vmem:[%s4895_s14 + $0x58] sm:$0xff] }
  0x16   : > { %248 = vst [vmem:[#allocation2 + $0x100] sm:$0x3] %v4820_v2  ;;  %249 = vst [vmem:[#allocation2 + $0x108] sm:$0xff] %v4820_v2  ;;  %v282_v42 = vld [vmem:[%s4895_s14 + $0x60] sm:$0xff]  ;;  %v283_v43 = vld [vmem:[%s4895_s14 + $0x68] sm:$0xff] }
  0x17   : > { %250 = vst [vmem:[#allocation2 + $0x110] sm:$0xff] %v4820_v2  ;;  %251 = vst [vmem:[#allocation2 + $0x118] sm:$0x3] %v4820_v2  ;;  %4028 = vmatpush3.bf16.msra.mxu1 %v4740_v9  ;;  %v4751_v46 = vld [vmem:[%s5401_s1 + $0x8] sm:$0xff]   ;;  %v284_v47 = vld [vmem:[%s4895_s14 + $0x70] sm:$0xff] }
  0x18   : > { %252 = vst [vmem:[#allocation2 + $0x120] sm:$0xff] %v4820_v2  ;;  %253 = vst [vmem:[#allocation2 + $0x128] sm:$0xff] %v4820_v2  ;;  %4220 = vmatpush3.bf16.msra.mxu0 %v4741_v10  ;;  %4029 = vmatprep.subr.bf16.mxu1 %v4742_v11  ;;  %v285_v48 = vld [vmem:[%s4895_s14 + $0x78] sm:$0xff]  ;;  %v286_v55 = vld [vmem:[%s4895_s14 + $0x80] sm:$0xff] }
  0x19   : > { %254 = vst [vmem:[#allocation2 + $0x130] sm:$0x3] %v4820_v2  ;;  %255 = vst [vmem:[#allocation2 + $0x138] sm:$0xff] %v4820_v2  ;;  %4221 = vmatprep.subr.bf16.mxu0 %v4743_v12  ;;  %v287_v57 = vld [vmem:[%s4895_s14 + $0x88] sm:$0xff]  ;;  %v4753_v59 = vld [vmem:[%s5401_s1 + $0x158] sm:$0xff]  }
  0x1a   : > { %256 = vst [vmem:[#allocation2 + $0x140] sm:$0xff] %v4820_v2  ;;  %257 = vst [vmem:[#allocation2 + $0x148] sm:$0x3] %v4820_v2  ;;  %v4757_v61 = vld [vmem:[%s5401_s1 + $0x18] sm:$0xff]   ;;  %v4755_v63 = vld [vmem:[%s5401_s1 + $0x160] sm:$0xff]  }
  0x1b   : > { %258 = vst [vmem:[#allocation2 + $0x150] sm:$0xff] %v4820_v2  ;;  %259 = vst [vmem:[#allocation2 + $0x158] sm:$0xff] %v4820_v2  ;;  %4030 = vmatpush3.bf16.msra.mxu1 %v4742_v11  ;;  %v288_v0 = vld [vmem:[%s4895_s14 + $0x90] sm:$0xff]  ;;  %v289_v1 = vld [vmem:[%s4895_s14 + $0x98] sm:$0xff] }
  0x1c   : > { %260 = vst [vmem:[#allocation2 + $0x160] sm:$0x3] %v4820_v2  ;;  %261 = vst [vmem:[#allocation2 + $0x168] sm:$0xff] %v4820_v2  ;;  %4222 = vmatpush3.bf16.msra.mxu0 %v4743_v12  ;;  %4031 = vmatprep.subr.bf16.mxu1 %v4744_v20  ;;  %v290_v4 = vld [vmem:[%s4895_s14 + $0xa0] sm:$0xff]  ;;  %v291_v5 = vld [vmem:[%s4895_s14 + $0xa8] sm:$0xff] }
  0x1d   : > { %262 = vst [vmem:[#allocation2 + $0x170] sm:$0xff] %v4820_v2  ;;  %263 = vst [vmem:[#allocation2 + $0x178] sm:$0x3] %v4820_v2  ;;  %4223 = vmatprep.subr.bf16.mxu0 %v4745_v21  ;;  %v4760_v6 = vld [vmem:[%s5401_s1 + $0x20] sm:$0xff]   ;;  %v292_v9 = vld [vmem:[%s4895_s14 + $0xb0] sm:$0xff] }
  0x1e   : > { %264 = vst [vmem:[#allocation2 + $0x180] sm:$0xff] %v4820_v2  ;;  %265 = vst [vmem:[#allocation2 + $0x188] sm:$0xff] %v4820_v2  ;;  %v4756_v10 = vld [vmem:[%s5401_s1 + $0x168] sm:$0xff]   ;;  %v293_v12 = vld [vmem:[%s4895_s14 + $0xb8] sm:$0xff] }
  0x1f   : > { %266 = vst [vmem:[#allocation2 + $0x190] sm:$0x3] %v4820_v2  ;;  %267 = vst [vmem:[#allocation2 + $0x198] sm:$0xff] %v4820_v2  ;;  %4032 = vmatpush3.bf16.msra.mxu1 %v4744_v20  ;;  %v4762_v11 = vld [vmem:[%s5401_s1 + $0x28] sm:$0xff]   ;;  %v294_v13 = vld [vmem:[%s4895_s14 + $0xc0] sm:$0xff] }
  0x20   : > { %268 = vst [vmem:[#allocation2 + $0x1a0] sm:$0xff] %v4820_v2  ;;  %269 = vst [vmem:[#allocation2 + $0x1a8] sm:$0x3] %v4820_v2  ;;  %4224 = vmatpush3.bf16.msra.mxu0 %v4745_v21  ;;  %4033 = vmatprep.subr.bf16.mxu1 %v4746_v26  ;;  %v295_v14 = vld [vmem:[%s4895_s14 + $0xc8] sm:$0xff]  ;;  %v4764_v20 = vld [vmem:[%s5401_s1 + $0x30] sm:$0xff]  }
  0x21   : > { %304 = vst.msk [vmem:[#allocation2 + $0x19] sm:$0xff] %vm303_vm0, %v270_v15  ;;  %305 = vst.msk [vmem:[#allocation2 + $0x21] sm:$0xff] %vm303_vm0, %v271_v17  ;;  %4225 = vmatprep.subr.bf16.mxu0 %v4747_v28  ;;  %v4758_v17 = vld [vmem:[%s5401_s1 + $0x170] sm:$0xff]  }
  0x22   : > { %306 = vst.msk [vmem:[#allocation2 + $0x31] sm:$0xff] %vm303_vm0, %v272_v18  ;;  %307 = vst.msk [vmem:[#allocation2 + $0x39] sm:$0xff] %vm303_vm0, %v273_v19  ;;  %v296_v21 = vld [vmem:[%s4895_s14 + $0xd0] sm:$0xff] }
  0x23   : > { %308 = vst.msk [vmem:[#allocation2 + $0x49] sm:$0xff] %vm303_vm0, %v274_v22  ;;  %309 = vst.msk [vmem:[#allocation2 + $0x51] sm:$0xff] %vm303_vm0, %v275_v23  ;;  %4034 = vmatpush3.bf16.msra.mxu1 %v4746_v26  ;;  %v297_v23 = vld [vmem:[%s4895_s14 + $0xd8] sm:$0xff]  ;;  %v299_v26 = vld [vmem:[%s4895_s14 + $0xe8] sm:$0xff] }
  0x24   : > { %310 = vst.msk [vmem:[#allocation2 + $0x61] sm:$0xff] %vm303_vm0, %v276_v24  ;;  %311 = vst.msk [vmem:[#allocation2 + $0x69] sm:$0xff] %vm303_vm0, %v277_v25  ;;  %4226 = vmatpush3.bf16.msra.mxu0 %v4747_v28  ;;  %4067 = vmatprep.subr.bf16.mxu1 %v4748_v31  ;;  %v298_v25 = vld [vmem:[%s4895_s14 + $0xe0] sm:$0xff] }
  0x25   : > { %312 = vst.msk [vmem:[#allocation2 + $0x79] sm:$0xff] %vm303_vm0, %v278_v33  ;;  %313 = vst.msk [vmem:[#allocation2 + $0x81] sm:$0xff] %vm303_vm0, %v279_v34  ;;  %4259 = vmatprep.subr.bf16.mxu0 %v4749_v38 }
  0x26   : > { %314 = vst.msk [vmem:[#allocation2 + $0x91] sm:$0xff] %vm303_vm0, %v280_v36  ;;  %315 = vst.msk [vmem:[#allocation2 + $0x99] sm:$0xff] %vm303_vm0, %v281_v37 }
  0x27   : > { %316 = vst.msk [vmem:[#allocation2 + $0xa9] sm:$0xff] %vm303_vm0, %v282_v42  ;;  %317 = vst.msk [vmem:[#allocation2 + $0xb1] sm:$0xff] %vm303_vm0, %v283_v43  ;;  %v4763_v43 = vld [vmem:[%s5401_s1 + $0x188] sm:$0xff]  }
  0x28   : > { %v1495_v27 = vld [vmem:[#allocation2 + $0x19] sm:$0xff]  ;;  %v1496_v29 = vld [vmem:[#allocation2 + $0x21] sm:$0xff]  ;;  %318 = vst.msk [vmem:[#allocation2 + $0xc1] sm:$0xff] %vm303_vm0, %v284_v47  ;;  %319 = vst.msk [vmem:[#allocation2 + $0xc9] sm:$0xff] %vm303_vm0, %v285_v48 }
  0x29   : > { %v1527_v30 = vpack.c.bf16 %v1496_v29, %v1495_v27  ;;  %v1497_v32 = vld [vmem:[#allocation2 + $0x31] sm:$0xff]  ;;  %v1498_v35 = vld [vmem:[#allocation2 + $0x39] sm:$0xff]  ;;  %320 = vst.msk [vmem:[#allocation2 + $0xd9] sm:$0xff] %vm303_vm0, %v286_v55  ;;  %321 = vst.msk [vmem:[#allocation2 + $0xe1] sm:$0xff] %vm303_vm0, %v287_v57 }
  0x2a   : > { %v1499_v39 = vld [vmem:[#allocation2 + $0x49] sm:$0xff]  ;;  %v1500_v40 = vld [vmem:[#allocation2 + $0x51] sm:$0xff]  ;;  %v1528_v41 = vpack.c.bf16 %v1498_v35, %v1497_v32  ;;  %322 = vst.msk [vmem:[#allocation2 + $0xf1] sm:$0xff] %vm303_vm0, %v288_v0  ;;  %323 = vst.msk [vmem:[#allocation2 + $0xf9] sm:$0xff] %vm303_vm0, %v289_v1 }
  0x2b   : > { %4227 = vmatprep.mubr.bf16.mxu0 %v1527_v30  ;;  %v1529_v45 = vpack.c.bf16 %v1500_v40, %v1499_v39  ;;  %4036 = vmatmul.mubr.bf16.vlgmr.msra.gmra.mrb[0].mxu1 %v1527_v30  ;;  %v1501_v51 = vld [vmem:[#allocation2 + $0x61] sm:$0xff]  ;;  %v1502_v52 = vld [vmem:[#allocation2 + $0x69] sm:$0xff]  ;;  %324 = vst.msk [vmem:[#allocation2 + $0x109] sm:$0xff] %vm303_vm0, %v290_v4  ;;  %325 = vst.msk [vmem:[#allocation2 + $0x111] sm:$0xff] %vm303_vm0, %v291_v5 }
  0x2c   : > { %4228 = vmatmul.mubr.bf16.vlgmr.msra.gmra.mrb[0].mxu0 %v1528_v41  ;;  %4068 = vmatpush3.bf16.msra.mxu1 %v4748_v31  ;;  %v1503_v53 = vld [vmem:[#allocation2 + $0x79] sm:$0xff]  ;;  %v1504_v54 = vld [vmem:[#allocation2 + $0x81] sm:$0xff]  ;;  %v1530_v56 = vpack.c.bf16 %v1502_v52, %v1501_v51  ;;  %326 = vst.msk [vmem:[#allocation2 + $0x121] sm:$0xff] %vm303_vm0, %v292_v9  ;;  %327 = vst.msk [vmem:[#allocation2 + $0x129] sm:$0xff] %vm303_vm0, %v293_v12 }
  0x2d   : > { %4260 = vmatpush3.bf16.msra.mxu0 %v4749_v38  ;;  %4039 = vmatprep.mubr.bf16.mxu1 %v1528_v41  ;;  %v1531_v58 = vpack.c.bf16 %v1504_v54, %v1503_v53  ;;  %v1505_v60 = vld [vmem:[#allocation2 + $0x91] sm:$0xff]  ;;  %v1506_v62 = vld [vmem:[#allocation2 + $0x99] sm:$0xff]  ;;  %328 = vst.msk [vmem:[#allocation2 + $0x139] sm:$0xff] %vm303_vm0, %v294_v13  ;;  %329 = vst.msk [vmem:[#allocation2 + $0x141] sm:$0xff] %vm303_vm0, %v295_v14 }
  0x2e   : > { %4261 = vmatprep.subr.bf16.mxu0 %v4750_v44  ;;  %4231 = vmatprep.mubr.bf16.mxu0 %v1529_v45  ;;  %v1507_v2 = vld [vmem:[#allocation2 + $0xa9] sm:$0xff]  ;;  %v1508_v3 = vld [vmem:[#allocation2 + $0xb1] sm:$0xff]  ;;  %v1532_v7 = vpack.c.bf16 %v1506_v62, %v1505_v60  ;;  %v1801_v18 = vld [vmem:[#allocation2 + $0x1a] sm:$0xff]  ;;  %330 = vst.msk [vmem:[#allocation2 + $0x151] sm:$0xff] %vm303_vm0, %v296_v21 }
  0x2f   : > { %4069 = vmatprep.subr.bf16.mxu1 %v4751_v46  ;;  %v1533_v8 = vpack.c.bf16 %v1508_v3, %v1507_v2  ;;  %v1509_v15 = vld [vmem:[#allocation2 + $0xc1] sm:$0xff]  ;;  %v1510_v16 = vld [vmem:[#allocation2 + $0xc9] sm:$0xff]  ;;  %331 = vst.msk [vmem:[#allocation2 + $0x159] sm:$0xff] %vm303_vm0, %v297_v23  ;;  %v4759_v27 = vld [vmem:[%s5401_s1 + $0x178] sm:$0xff]  }
  0x30   : > { %4070 = vmatpush3.bf16.msra.mxu1 %v4751_v46  ;;  %v1802_v19 = vld [vmem:[#allocation2 + $0x22] sm:$0xff]  ;;  %v1534_v22 = vpack.c.bf16 %v1510_v16, %v1509_v15  ;;  %332 = vst.msk [vmem:[#allocation2 + $0x169] sm:$0xff] %vm303_vm0, %v298_v25  ;;  %333 = vst.msk [vmem:[#allocation2 + $0x171] sm:$0xff] %vm303_vm0, %v299_v26  ;;  %v1803_v28 = vld [vmem:[#allocation2 + $0x32] sm:$0xff]  ;;  %v4821_v26 = vmov 0.0|0.0  }
  0x31   : > { %4262 = vmatpush3.bf16.msra.mxu0 %v4750_v44  ;;  %4071 = vmatprep.subr.bf16.mxu1 %v4754_v50  ;;  %v5012_v24 = vpack.c.bf16 %v1802_v19, %v1801_v18  ;;  %v1804_v29 = vld [vmem:[#allocation2 + $0x3a] sm:$0xff]  ;;  %v420_v33 = vld [vmem:[#allocation2 + $0xf1] sm:$0xff]  ;;  %v1807_v44 = vld [vmem:[#allocation2 + $0x62] sm:$0xff] }
  0x32   : > { %4263 = vmatprep.subr.bf16.mxu0 %v4752_v49  ;;  %v4766_v30 = vld [vmem:[%s5401_s1 + $0x38] sm:$0xff]   ;;  %v419_v32 = vld [vmem:[#allocation2 + $0xe1] sm:$0xff]  ;;  %v1805_v36 = vld [vmem:[#allocation2 + $0x4a] sm:$0xff]  ;;  %v5029_v39 = vpack.c.bf16 %v1804_v29, %v1803_v28 }
  0x33   : > { %4040 = vmatmul.mubr.bf16.gmra.mrb[4].mxu1 %v1529_v45  ;;  %v418_v31 = vld [vmem:[#allocation2 + $0xd9] sm:$0xff]  ;;  %v1808_v45 = vld [vmem:[#allocation2 + $0x6a] sm:$0xff]  ;;  %v424_v48 = vld [vmem:[#allocation2 + $0x121] sm:$0xff] }
  0x34   : > { %4232 = vmatmul.mubr.bf16.gmra.mrb[4].mxu0 %v1530_v56  ;;  %4043 = vmatprep.mubr.bf16.mxu1 %v1530_v56  ;;  %v421_v34 = vld [vmem:[#allocation2 + $0xf9] sm:$0xff]  ;;  %v441_v38 = vpack.c.bf16 %v419_v32, %v418_v31  ;;  %v422_v46 = vld [vmem:[#allocation2 + $0x109] sm:$0xff]  ;;  %v423_v47 = vld [vmem:[#allocation2 + $0x111] sm:$0xff]  ;;  %v5047_v54 = vpack.c.bf16 %v1808_v45, %v1807_v44 }
  0x35   : > { %4264 = vmatpush3.bf16.msra.mxu0 %v4752_v49  ;;  %4235 = vmatprep.mubr.bf16.mxu0 %v1531_v58  ;;  %v4761_v35 = vld [vmem:[%s5401_s1 + $0x180] sm:$0xff]   ;;  %v1806_v37 = vld [vmem:[#allocation2 + $0x52] sm:$0xff]  ;;  %v442_v40 = vpack.c.bf16 %v421_v34, %v420_v33  ;;  %v443_v53 = vpack.c.bf16 %v423_v47, %v422_v46  ;;  %v1813_v62 = vld [vmem:[#allocation2 + $0xaa] sm:$0xff] }
  0x36   : > { %4265 = vmatprep.subr.bf16.mxu0 %v4753_v59  ;;  %4072 = vmatpush3.bf16.msra.mxu1 %v4754_v50  ;;  %v5034_v41 = vld [vmem:[%s5401_s1 + $0x80] sm:$0xff]   ;;  %v5036_v42 = vpack.c.bf16 %v1806_v37, %v1805_v36  ;;  %v425_v50 = vld [vmem:[#allocation2 + $0x129] sm:$0xff]  ;;  %v4767_v57 = vld [vmem:[%s5401_s1 + $0x198] sm:$0xff]  }
  0x37   : > { %4073 = vmatprep.subr.bf16.mxu1 %v4757_v61  ;;  %v1809_v49 = vld [vmem:[#allocation2 + $0x7a] sm:$0xff]  ;;  %v1810_v51 = vld [vmem:[#allocation2 + $0x82] sm:$0xff]  ;;  %v4765_v52 = vld [vmem:[%s5401_s1 + $0x190] sm:$0xff]   ;;  %v5049_v55 = vpack.c.bf16 %v425_v50, %v424_v48 }
  0x38   : > { %v5051_v56 = vpack.c.bf16 %v1810_v51, %v1809_v49  ;;  %v426_v60 = vld [vmem:[#allocation2 + $0x139] sm:$0xff]  ;;  %v300_v4 = vld [vmem:[%s4895_s14 + $0xf0] sm:$0xff]  ;;  %v4771_v9 = vld [vmem:[%s5401_s1 + $0x1a8] sm:$0xff]  }
  0x39   : > { %4266 = vmatpush3.bf16.msra.mxu0 %v4753_v59  ;;  %v1812_v59 = vld [vmem:[#allocation2 + $0x9a] sm:$0xff]  ;;  %v1814_v1 = vld [vmem:[#allocation2 + $0xb2] sm:$0xff]  ;;  %334 = vst.msk [vmem:[#allocation2 + $0x181] sm:$0xff] %vm303_vm0, %v300_v4  ;;  %v1816_v13 = vld [vmem:[#allocation2 + $0xca] sm:$0xff] }
  0x3a   : > { %4267 = vmatprep.subr.bf16.mxu0 %v4755_v63  ;;  %4074 = vmatpush3.bf16.msra.mxu1 %v4757_v61  ;;  %v427_v61 = vld [vmem:[#allocation2 + $0x141] sm:$0xff]  ;;  %v429_v0 = vld [vmem:[#allocation2 + $0x159] sm:$0xff]  ;;  %v431_v12 = vld [vmem:[#allocation2 + $0x171] sm:$0xff] }
  0x3b   : > { %4044 = vmatmul.mubr.bf16.gmra.mrb[8].mxu1 %v1531_v58  ;;  %4075 = vmatprep.subr.bf16.mxu1 %v4760_v6  ;;  %v1811_v58 = vld [vmem:[#allocation2 + $0x92] sm:$0xff]  ;;  %v4769_v2 = vld [vmem:[%s5401_s1 + $0x1a0] sm:$0xff]   ;;  %v5062_v3 = vpack.c.bf16 %v427_v61, %v426_v60  ;;  %v1821_v29 = vld [vmem:[#allocation2 + $0x10a] sm:$0xff] }
  0x3c   : > { %4236 = vmatmul.mubr.bf16.gmra.mrb[8].mxu0 %v1532_v7  ;;  %4047 = vmatprep.mubr.bf16.mxu1 %v1532_v7  ;;  %v301_v5 = vld [vmem:[%s4895_s14 + $0xf8] sm:$0xff]  ;;  %v1818_v15 = vld [vmem:[#allocation2 + $0xe2] sm:$0xff]  ;;  %v4773_v16 = vld [vmem:[%s5401_s1 + $0x1b0] sm:$0xff]  }
  0x3d   : > { %4268 = vmatpush3.bf16.msra.mxu0 %v4755_v63  ;;  %4239 = vmatprep.mubr.bf16.mxu0 %v1533_v8  ;;  %v428_v63 = vld [vmem:[#allocation2 + $0x151] sm:$0xff]  ;;  %335 = vst.msk [vmem:[#allocation2 + $0x189] sm:$0xff] %vm303_vm0, %v301_v5  ;;  %v1817_v14 = vld [vmem:[#allocation2 + $0xda] sm:$0xff]  ;;  %v342_v36 = vld [vmem:[#allocation2 + $0x48] sm:$0xff] }
  0x3e   : > { %4269 = vmatprep.subr.bf16.mxu0 %v4756_v10  ;;  %4076 = vmatpush3.bf16.msra.mxu1 %v4760_v6  ;;  %v5066_v6 = vpack.c.bf16 %v1812_v59, %v1811_v58  ;;  %v5068_v7 = vpack.c.bf16 %v429_v0, %v428_v63  ;;  %v5088_v19 = vpack.c.bf16 %v1818_v15, %v1817_v14  ;;  %v339_v21 = vld [vmem:[#allocation2 + $0x20] sm:$0xff]  ;;  %v1819_v23 = vld [vmem:[#allocation2 + $0xf2] sm:$0xff]  ;;  %v345_v45 = vld [vmem:[#allocation2 + $0x68] sm:$0xff] }
  0x3f   : > { %4077 = vmatprep.subr.bf16.mxu1 %v4762_v11  ;;  %v1820_v25 = vld [vmem:[#allocation2 + $0xfa] sm:$0xff]  ;;  %v343_v37 = vld [vmem:[#allocation2 + $0x50] sm:$0xff]  ;;  %v1826_v48 = vld [vmem:[#allocation2 + $0x142] sm:$0xff] }
  0x40   : > { %v341_v28 = vld [vmem:[#allocation2 + $0x38] sm:$0xff]  ;;  %v5100_v31 = vld [vmem:[%s5401_s1 + $0x1c0] sm:$0xff]   ;;  %v5104_v33 = vpack.c.bf16 %v1820_v25, %v1819_v23  ;;  %v4772_v47 = vld [vmem:[%s5401_s1 + $0x90] sm:$0xff]   ;;  %v5122_v49 = vpack.c.bf16 %v343_v37, %v342_v36 }
  0x41   : > { %4270 = vmatpush3.bf16.msra.mxu0 %v4756_v10  ;;  %v1815_v10 = vld [vmem:[#allocation2 + $0xc2] sm:$0xff]  ;;  %v1825_v46 = vld [vmem:[#allocation2 + $0x13a] sm:$0xff]  ;;  %v1827_v58 = vld [vmem:[#allocation2 + $0x152] sm:$0xff] }
  0x42   : > { %4271 = vmatprep.subr.bf16.mxu0 %v4758_v17  ;;  %4078 = vmatpush3.bf16.msra.mxu1 %v4762_v11  ;;  %v430_v11 = vld [vmem:[#allocation2 + $0x169] sm:$0xff]  ;;  %v5086_v18 = vpack.c.bf16 %v1816_v13, %v1815_v10  ;;  %v344_v44 = vld [vmem:[#allocation2 + $0x60] sm:$0xff]  ;;  %v349_v61 = vld [vmem:[#allocation2 + $0x98] sm:$0xff] }
  0x43   : > { %4048 = vmatmul.mubr.bf16.gmra.mrb[12].mxu1 %v1533_v8  ;;  %4079 = vmatprep.subr.bf16.mxu1 %v4764_v20  ;;  %v5072_v8 = vpack.c.bf16 %v1814_v1, %v1813_v62  ;;  %v5126_v51 = vpack.c.bf16 %v345_v45, %v344_v44  ;;  %v1828_v59 = vld [vmem:[#allocation2 + $0x15a] sm:$0xff]  ;;  %v348_v60 = vld [vmem:[#allocation2 + $0x90] sm:$0xff]  ;;  %v4778_v10 = vld [vmem:[%s5401_s1 + $0xa8] sm:$0xff]  }
  0x44   : > { %4240 = vmatmul.mubr.bf16.gmra.mrb[12].mxu0 %v1534_v22  ;;  %4051 = vmatprep.mubr.bf16.mxu1 %v1534_v22  ;;  %v4775_v22 = vld [vmem:[%s5401_s1 + $0x1b8] sm:$0xff]   ;;  %v1829_v62 = vld [vmem:[#allocation2 + $0x16a] sm:$0xff]  ;;  %v4776_v0 = vld [vmem:[%s5401_s1 + $0xa0] sm:$0xff]   ;;  %v5144_v4 = vpack.c.bf16 %v349_v61, %v348_v60 }
  0x45   : > { %4272 = vmatpush3.bf16.msra.mxu0 %v4758_v17  ;;  %4275 = vmatprep.mubr.bf16.mxu0 %v5012_v24  ;;  %v5084_v17 = vpack.c.bf16 %v431_v12, %v430_v11  ;;  %v1830_v63 = vld [vmem:[#allocation2 + $0x172] sm:$0xff]  ;;  %v352_v12 = vld [vmem:[#allocation2 + $0xc0] sm:$0xff]  ;;  %v353_v13 = vld [vmem:[#allocation2 + $0xc8] sm:$0xff] }
  0x46   : > { %4273 = vmatprep.subr.bf16.mxu0 %v4759_v27  ;;  %4080 = vmatpush3.bf16.msra.mxu1 %v4764_v20  ;;  %v338_v20 = vld [vmem:[#allocation2 + $0x18] sm:$0xff]  ;;  %v5146_v5 = vpack.c.bf16 %v1830_v63, %v1829_v62  ;;  %v351_v11 = vld [vmem:[#allocation2 + $0xb0] sm:$0xff]  ;;  %v1831_v14 = vld [vmem:[#allocation2 + $0x182] sm:$0xff] }
  0x47   : > { %4081 = vmatprep.subr.bf16.mxu1 %v4766_v30  ;;  %v5102_v32 = vpack.c.bf16 %v339_v21, %v338_v20  ;;  %v1832_v15 = vld [vmem:[#allocation2 + $0x18a] sm:$0xff]  ;;  %v4782_v23 = vld [vmem:[%s5401_s1 + $0xb8] sm:$0xff]   ;;  %v360_v44 = vld [vmem:[#allocation2 + $0x120] sm:$0xff] }
  0x48   : > { %v1848_v21 = vpack.c.bf16 %v1832_v15, %v1831_v14  ;;  %v354_v25 = vld [vmem:[#allocation2 + $0xd8] sm:$0xff]  ;;  %v361_v45 = vld [vmem:[#allocation2 + $0x128] sm:$0xff]  ;;  %v4793_v15 = vld [vmem:[%s5401_s1 + $0x200] sm:$0xff]  }
  0x49   : > { %4274 = vmatpush3.bf16.msra.mxu0 %v4759_v27  ;;  %v340_v27 = vld [vmem:[#allocation2 + $0x30] sm:$0xff]  ;;  %v4787_v62 = vld [vmem:[%s5401_s1 + $0x1e8] sm:$0xff]   ;;  %v4791_v14 = vld [vmem:[%s5401_s1 + $0x1f8] sm:$0xff]  }
  0x4a   : > { %4307 = vmatprep.subr.bf16.mxu0 %v4761_v35  ;;  %4082 = vmatpush3.bf16.msra.mxu1 %v4766_v30  ;;  %v1822_v30 = vld [vmem:[#allocation2 + $0x112] sm:$0xff]  ;;  %v5106_v34 = vpack.c.bf16 %v341_v28, %v340_v27  ;;  %v355_v27 = vld [vmem:[#allocation2 + $0xe0] sm:$0xff]  ;;  %v366_v63 = vld [vmem:[#allocation2 + $0x168] sm:$0xff] }
  0x4b   : > { %4052 = vmatmul.mubr.bf16.gmra.mrb[16].mxu1 %v441_v38  ;;  %4115 = vmatprep.subr.bf16.mxu1 %v5034_v41  ;;  %v4770_v38 = vld [vmem:[%s5401_s1 + $0x88] sm:$0xff]   ;;  %v356_v28 = vld [vmem:[#allocation2 + $0xf0] sm:$0xff]  ;;  %v5173_v36 = vpack.c.bf16 %v355_v27, %v354_v25  ;;  %v4792_v25 = vld [vmem:[%s5401_s1 + $0xe0] sm:$0xff]  }
  0x4c   : > { %4276 = vmatmul.mubr.bf16.vlgmr.msra.gmra.mrb[0].mxu0 %v5029_v39  ;;  %4055 = vmatprep.mubr.bf16.mxu1 %v442_v40  ;;  %v1823_v40 = vld [vmem:[#allocation2 + $0x122] sm:$0xff] }
  0x4d   : > { %4308 = vmatpush3.bf16.msra.mxu0 %v4761_v35  ;;  %4279 = vmatprep.mubr.bf16.mxu0 %v5036_v42  ;;  %v5108_v35 = vpack.c.bf16 %v1822_v30, %v1821_v29  ;;  %v357_v29 = vld [vmem:[#allocation2 + $0xf8] sm:$0xff]  ;;  %v5171_v30 = vld [vmem:[%s5401_s1 + $0xc0] sm:$0xff]  }
  0x4e   : > { %4309 = vmatprep.subr.bf16.mxu0 %v4763_v43  ;;  %v5175_v37 = vpack.c.bf16 %v357_v29, %v356_v28  ;;  %v2415_v28 = vld [vmem:[#allocation2 + $0x39] sm:$0xff]  ;;  %v4796_v29 = vld [vmem:[%s5401_s1 + $0xf0] sm:$0xff]  }
  0x51   : > { %4310 = vmatpush3.bf16.msra.mxu0 %v4763_v43  ;;  %v1824_v43 = vld [vmem:[#allocation2 + $0x12a] sm:$0xff] }
  0x52   : > { %4311 = vmatprep.subr.bf16.mxu0 %v4765_v52  ;;  %v5124_v50 = vpack.c.bf16 %v1824_v43, %v1823_v40  ;;  %v358_v40 = vld [vmem:[#allocation2 + $0x108] sm:$0xff]  ;;  %v359_v43 = vld [vmem:[#allocation2 + $0x110] sm:$0xff] }
  0x53   : > { %4056 = vmatmul.mubr.bf16.gmra.mrb[20].mxu1 %v443_v53  ;;  %v347_v53 = vld [vmem:[#allocation2 + $0x80] sm:$0xff] }
  0x54   : > { %4280 = vmatmul.mubr.bf16.gmra.mrb[4].mxu0 %v5047_v54  ;;  %4059 = vmatprep.mubr.bf16.mxu1 %v5049_v55 }
  0x55   : > { %4283 = vmatprep.mubr.bf16.mxu0 %v5051_v56  ;;  %4312 = vmatpush3.bf16.msra.mxu0 %v4765_v52  ;;  %v346_v52 = vld [vmem:[#allocation2 + $0x78] sm:$0xff] }
  0x56   : > { %4313 = vmatprep.subr.bf16.mxu0 %v4767_v57  ;;  %v5140_v1 = vpack.c.bf16 %v347_v53, %v346_v52  ;;  %v4783_v52 = vld [vmem:[%s5401_s1 + $0x1d8] sm:$0xff]   ;;  %v363_v53 = vld [vmem:[#allocation2 + $0x140] sm:$0xff] }
  0x59   : > { %4314 = vmatpush3.bf16.msra.mxu0 %v4767_v57  ;;  %v4774_v57 = vld [vmem:[%s5401_s1 + $0x98] sm:$0xff]  }
  0x5a   : > { %4315 = vmatprep.subr.bf16.mxu0 %v4769_v2 }
  0x5b   : > { %4060 = vmatmul.mubr.bf16.gmra.mrb[24].mxu1 %v5062_v3 }
  0x5c   : > { %4284 = vmatmul.mubr.bf16.gmra.mrb[8].mxu0 %v5066_v6  ;;  %4063 = vmatprep.mubr.bf16.mxu1 %v5068_v7 }
  0x5d   : > { %4287 = vmatprep.mubr.bf16.mxu0 %v5072_v8  ;;  %4316 = vmatpush3.bf16.msra.mxu0 %v4769_v2  ;;  %v5142_v2 = vpack.c.bf16 %v1828_v59, %v1827_v58  ;;  %v365_v58 = vld [vmem:[#allocation2 + $0x158] sm:$0xff]  ;;  %v4785_v59 = vld [vmem:[%s5401_s1 + $0x1e0] sm:$0xff]  }
  0x5e   : > { %4317 = vmatprep.subr.bf16.mxu0 %v4771_v9 }
  0x61   : > { %4318 = vmatpush3.bf16.msra.mxu0 %v4771_v9  ;;  %v350_v9 = vld [vmem:[#allocation2 + $0xa8] sm:$0xff] }
  0x62   : > { %4319 = vmatprep.subr.bf16.mxu0 %v4773_v16  ;;  %v5158_v20 = vpack.c.bf16 %v351_v11, %v350_v9  ;;  %v883_v9 = vld [vmem:[#allocation2 + $0x2] sm:$0xff]  ;;  %v4789_v11 = vld [vmem:[%s5401_s1 + $0x1f0] sm:$0xff]  }
  0x63   : > { %4064 = vmatmul.mubr.bf16.gmra.mrb[28].mxu1 %v5084_v17 }
  0x64   : > { %4288 = vmatmul.mubr.bf16.gmra.mrb[12].mxu0 %v5086_v18  ;;  %4083 = vmatprep.mubr.bf16.mxu1 %v4821_v26 }
  0x65   : > { %4291 = vmatprep.mubr.bf16.mxu0 %v5088_v19  ;;  %4320 = vmatpush3.bf16.msra.mxu0 %v4773_v16  ;;  %v4780_v16 = vld [vmem:[%s5401_s1 + $0xb0] sm:$0xff]  }
  0x66   : > { %4321 = vmatprep.subr.bf16.mxu0 %v4775_v22 }
  0x69   : > { %4322 = vmatpush3.bf16.msra.mxu0 %v4775_v22  ;;  %v5160_v22 = vpack.c.bf16 %v353_v13, %v352_v12 }
  0x6a   : > { %4355 = vmatprep.subr.bf16.mxu0 %v5100_v31 }
  0x6b   : > { %4084 = vmatmul.mubr.bf16.vlgmr.msra.gmra.mrb[0].mxu1 %v5102_v32 }
  0x6c   : > { %4292 = vmatmul.mubr.bf16.gmra.mrb[16].mxu0 %v5104_v33  ;;  %4116 = vmatpush3.bf16.msra.mxu1 %v5034_v41  ;;  %v5128_v41 = vpack.c.bf16 %v1826_v48, %v1825_v46  ;;  %v4781_v46 = vld [vmem:[%s5401_s1 + $0x1d0] sm:$0xff]   ;;  %v5191_v48 = vpack.c.bf16 %v361_v45, %v360_v44 }
  0x6d   : > { %4087 = vmatprep.mubr.bf16.mxu1 %v5106_v34  ;;  %4295 = vmatprep.mubr.bf16.mxu0 %v5108_v35 }
  0x6e   : > { %4117 = vmatprep.subr.bf16.mxu1 %v4770_v38 }
  0x70   : > { %4118 = vmatpush3.bf16.msra.mxu1 %v4770_v38  ;;  %v4779_v38 = vld [vmem:[%s5401_s1 + $0x1c8] sm:$0xff]  }
  0x71   : > { %4119 = vmatprep.subr.bf16.mxu1 %v4772_v47 }
  0x73   : > { %4088 = vmatmul.mubr.bf16.gmra.mrb[4].mxu1 %v5122_v49 }
  0x74   : > { %4296 = vmatmul.mubr.bf16.gmra.mrb[20].mxu0 %v5124_v50  ;;  %4091 = vmatprep.mubr.bf16.mxu1 %v5126_v51 }
  0x75   : > { %4299 = vmatprep.mubr.bf16.mxu0 %v5128_v41  ;;  %4120 = vmatpush3.bf16.msra.mxu1 %v4772_v47  ;;  %v5189_v47 = vpack.c.bf16 %v359_v43, %v358_v40  ;;  %v2418_v40 = vld [vmem:[#allocation2 + $0x61] sm:$0xff]  ;;  %v2419_v43 = vld [vmem:[#allocation2 + $0x69] sm:$0xff] }
  0x76   : > { %4121 = vmatprep.subr.bf16.mxu1 %v4774_v57  ;;  %v2448_v45 = vpack.c.bf16 %v2419_v43, %v2418_v40  ;;  %v2728_v40 = vld [vmem:[#allocation2 + $0x92] sm:$0xff]  ;;  %v2729_v43 = vld [vmem:[#allocation2 + $0x9a] sm:$0xff] }
  0x79   : > { %4122 = vmatpush3.bf16.msra.mxu1 %v4774_v57  ;;  %v364_v57 = vld [vmem:[#allocation2 + $0x150] sm:$0xff] }
  0x7a   : > { %4123 = vmatprep.subr.bf16.mxu1 %v4776_v0  ;;  %v5205_v61 = vpack.c.bf16 %v365_v58, %v364_v57 }
  0x7b   : > { %4092 = vmatmul.mubr.bf16.gmra.mrb[8].mxu1 %v5140_v1 }
  0x7c   : > { %4300 = vmatmul.mubr.bf16.gmra.mrb[24].mxu0 %v5142_v2  ;;  %4095 = vmatprep.mubr.bf16.mxu1 %v5144_v4 }
  0x7d   : > { %4303 = vmatprep.mubr.bf16.mxu0 %v5146_v5  ;;  %4124 = vmatpush3.bf16.msra.mxu1 %v4776_v0  ;;  %v367_v0 = vld [vmem:[#allocation2 + $0x170] sm:$0xff] }
  0x7e   : > { %4125 = vmatprep.subr.bf16.mxu1 %v4778_v10  ;;  %v5217_v12 = vpack.c.bf16 %v367_v0, %v366_v63  ;;  %v2427_v63 = vld [vmem:[#allocation2 + $0xc9] sm:$0xff]  ;;  %v4800_v0 = vld [vmem:[%s5401_s1 + $0x220] sm:$0xff]  }
  0x81   : > { %4126 = vmatpush3.bf16.msra.mxu1 %v4778_v10  ;;  %v884_v10 = vld [vmem:[#allocation2 + $0xa] sm:$0xff] }
  0x82   : > { %4127 = vmatprep.subr.bf16.mxu1 %v4780_v16  ;;  %v915_v13 = vpack.c.bf16 %v884_v10, %v883_v9 }
  0x83   : > { %4096 = vmatmul.mubr.bf16.gmra.mrb[12].mxu1 %v5158_v20 }
  0x84   : > { %4304 = vmatmul.mubr.bf16.gmra.mrb[28].mxu0 %v1848_v21  ;;  %4099 = vmatprep.mubr.bf16.mxu1 %v5160_v22  ;;  %v4788_v21 = vld [vmem:[%s5401_s1 + $0xd0] sm:$0xff]  }
  0x85   : > { %4323 = vmatprep.mubr.bf16.mxu0 %v5106_v34  ;;  %4128 = vmatpush3.bf16.msra.mxu1 %v4780_v16  ;;  %v4786_v16 = vld [vmem:[%s5401_s1 + $0xc8] sm:$0xff]  }
  0x86   : > { %4129 = vmatprep.subr.bf16.mxu1 %v4782_v23 }
  0x89   : > { %4130 = vmatpush3.bf16.msra.mxu1 %v4782_v23  ;;  %v4790_v23 = vld [vmem:[%s5401_s1 + $0xd8] sm:$0xff]  }
  0x8a   : > { %4163 = vmatprep.subr.bf16.mxu1 %v5171_v30 }
  0x8b   : > { %4100 = vmatmul.mubr.bf16.gmra.mrb[16].mxu1 %v5173_v36 }
  0x8c   : > { %4324 = vmatmul.mubr.bf16.vlgmr.msra.gmra.mrb[0].mxu0 %v5122_v49  ;;  %4103 = vmatprep.mubr.bf16.mxu1 %v5175_v37 }
  0x8d   : > { %4356 = vmatpush3.bf16.msra.mxu0 %v5100_v31  ;;  %4327 = vmatprep.mubr.bf16.mxu0 %v5126_v51  ;;  %v362_v31 = vld [vmem:[#allocation2 + $0x138] sm:$0xff] }
  0x8e   : > { %4357 = vmatprep.subr.bf16.mxu0 %v4779_v38  ;;  %v5203_v60 = vpack.c.bf16 %v363_v53, %v362_v31  ;;  %v2423_v31 = vld [vmem:[#allocation2 + $0x99] sm:$0xff]  ;;  %v4797_v53 = vld [vmem:[%s5401_s1 + $0x210] sm:$0xff]  }
  0x91   : > { %4358 = vmatpush3.bf16.msra.mxu0 %v4779_v38  ;;  %v2417_v38 = vld [vmem:[#allocation2 + $0x51] sm:$0xff] }
  0x92   : > { %4359 = vmatprep.subr.bf16.mxu0 %v4781_v46 }
  0x93   : > { %4104 = vmatmul.mubr.bf16.gmra.mrb[20].mxu1 %v5189_v47 }
  0x94   : > { %4328 = vmatmul.mubr.bf16.gmra.mrb[4].mxu0 %v5140_v1  ;;  %4107 = vmatprep.mubr.bf16.mxu1 %v5191_v48 }
  0x95   : > { %4331 = vmatprep.mubr.bf16.mxu0 %v5144_v4  ;;  %4360 = vmatpush3.bf16.msra.mxu0 %v4781_v46  ;;  %v4795_v46 = vld [vmem:[%s5401_s1 + $0x208] sm:$0xff]  }
  0x96   : > { %4361 = vmatprep.subr.bf16.mxu0 %v4783_v52 }
  0x99   : > { %4362 = vmatpush3.bf16.msra.mxu0 %v4783_v52  ;;  %v2422_v52 = vld [vmem:[#allocation2 + $0x91] sm:$0xff] }
  0x9a   : > { %4363 = vmatprep.subr.bf16.mxu0 %v4785_v59  ;;  %v2450_v58 = vpack.c.bf16 %v2423_v31, %v2422_v52  ;;  %v2735_v31 = vld [vmem:[#allocation2 + $0xe2] sm:$0xff] }
  0x9b   : > { %4108 = vmatmul.mubr.bf16.gmra.mrb[24].mxu1 %v5203_v60 }
  0x9c   : > { %4332 = vmatmul.mubr.bf16.gmra.mrb[8].mxu0 %v5158_v20  ;;  %4111 = vmatprep.mubr.bf16.mxu1 %v5205_v61 }
  0x9d   : > { %4335 = vmatprep.mubr.bf16.mxu0 %v5160_v22  ;;  %4364 = vmatpush3.bf16.msra.mxu0 %v4785_v59  ;;  %v2425_v59 = vld [vmem:[#allocation2 + $0xb1] sm:$0xff] }
  0x9e   : > { %4365 = vmatprep.subr.bf16.mxu0 %v4787_v62 }
  0xa1   : > { %4366 = vmatpush3.bf16.msra.mxu0 %v4787_v62  ;;  %v2426_v62 = vld [vmem:[#allocation2 + $0xc1] sm:$0xff] }
  0xa2   : > { %4367 = vmatprep.subr.bf16.mxu0 %v4789_v11  ;;  %v2452_v10 = vpack.c.bf16 %v2427_v63, %v2426_v62  ;;  %v1518_v63 = vld [vmem:[#allocation2 + $0x129] sm:$0xff] }
  0xa3   : > { %4112 = vmatmul.mubr.bf16.gmra.mrb[28].mxu1 %v5217_v12 }
  0xa4   : > { %4336 = vmatmul.mubr.bf16.gmra.mrb[12].mxu0 %v5173_v36  ;;  %4131 = vmatprep.mubr.bf16.mxu1 %v915_v13  ;;  %v2430_v13 = vld [vmem:[#allocation2 + $0xf1] sm:$0xff] }
  0xa5   : > { %4339 = vmatprep.mubr.bf16.mxu0 %v5175_v37  ;;  %4368 = vmatpush3.bf16.msra.mxu0 %v4789_v11  ;;  %v2429_v11 = vld [vmem:[#allocation2 + $0xe1] sm:$0xff] }
  0xa6   : > { %4369 = vmatprep.subr.bf16.mxu0 %v4791_v14 }
  0xa9   : > { %4370 = vmatpush3.bf16.msra.mxu0 %v4791_v14  ;;  %v2431_v14 = vld [vmem:[#allocation2 + $0xf9] sm:$0xff] }
  0xaa   : > { %4403 = vmatprep.subr.bf16.mxu0 %v4793_v15 }
  0xab   : > { %4132 = vmatmul.mubr.bf16.vlgmr.msra.gmra.mrb[0].mxu1 %v5012_v24  ;;  %v2136_v24 = vld [vmem:[#allocation2 + $0x180] sm:$0xff] }
  0xac   : > { %4340 = vmatmul.mubr.bf16.gmra.mrb[16].mxu0 %v5189_v47  ;;  %4164 = vmatpush3.bf16.msra.mxu1 %v5171_v30 }
  0xad   : > { %4135 = vmatprep.mubr.bf16.mxu1 %v5029_v39  ;;  %4343 = vmatprep.mubr.bf16.mxu0 %v5191_v48  ;;  %v2137_v39 = vld [vmem:[#allocation2 + $0x188] sm:$0xff] }
  0xae   : > { %4165 = vmatprep.subr.bf16.mxu1 %v4786_v16  ;;  %v5249_v27 = vpack.c.bf16 %v2137_v39, %v2136_v24 }
  0xb0   : > { %4166 = vmatpush3.bf16.msra.mxu1 %v4786_v16 }
  0xb1   : > { %4167 = vmatprep.subr.bf16.mxu1 %v4788_v21 }
  0xb3   : > { %4136 = vmatmul.mubr.bf16.gmra.mrb[4].mxu1 %v5036_v42  ;;  %v4794_v42 = vld [vmem:[%s5401_s1 + $0xe8] sm:$0xff]  }
  0xb4   : > { %4344 = vmatmul.mubr.bf16.gmra.mrb[20].mxu0 %v5203_v60  ;;  %4139 = vmatprep.mubr.bf16.mxu1 %v5047_v54  ;;  %v2414_v54 = vld [vmem:[#allocation2 + $0x31] sm:$0xff] }
  0xb5   : > { %4347 = vmatprep.mubr.bf16.mxu0 %v5205_v61  ;;  %4168 = vmatpush3.bf16.msra.mxu1 %v4788_v21  ;;  %v2446_v30 = vpack.c.bf16 %v2415_v28, %v2414_v54  ;;  %v5296_v21 = vpack.c.bf16 %v2431_v14, %v2430_v13 }
  0xb6   : > { %4169 = vmatprep.subr.bf16.mxu1 %v4790_v23 }
  0xb9   : > { %4170 = vmatpush3.bf16.msra.mxu1 %v4790_v23  ;;  %v2433_v23 = vld [vmem:[#allocation2 + $0x111] sm:$0xff] }
  0xba   : > { %4171 = vmatprep.subr.bf16.mxu1 %v4792_v25 }
  0xbb   : > { %4140 = vmatmul.mubr.bf16.gmra.mrb[8].mxu1 %v5051_v56  ;;  %v4798_v56 = vld [vmem:[%s5401_s1 + $0xf8] sm:$0xff]  }
  0xbc   : > { %4348 = vmatmul.mubr.bf16.gmra.mrb[24].mxu0 %v5217_v12  ;;  %4143 = vmatprep.mubr.bf16.mxu1 %v5066_v6  ;;  %v2416_v6 = vld [vmem:[#allocation2 + $0x49] sm:$0xff] }
  0xbd   : > { %4351 = vmatprep.mubr.bf16.mxu0 %v5249_v27  ;;  %4172 = vmatpush3.bf16.msra.mxu1 %v4792_v25  ;;  %v2447_v44 = vpack.c.bf16 %v2417_v38, %v2416_v6  ;;  %v2721_v25 = vld [vmem:[#allocation2 + $0x3a] sm:$0xff] }
  0xbe   : > { %4173 = vmatprep.subr.bf16.mxu1 %v4794_v42 }
  0xc1   : > { %4174 = vmatpush3.bf16.msra.mxu1 %v4794_v42  ;;  %v4809_v42 = vld [vmem:[%s5401_s1 + $0x128] sm:$0xff]  }
  0xc2   : > { %4175 = vmatprep.subr.bf16.mxu1 %v4796_v29 }
  0xc3   : > { %4144 = vmatmul.mubr.bf16.gmra.mrb[12].mxu1 %v5072_v8  ;;  %v4804_v8 = vld [vmem:[%s5401_s1 + $0x100] sm:$0xff]  }
  0xc4   : > { %4352 = vmatmul.mubr.bf16.gmra.mrb[28].mxu0 %v4821_v26  ;;  %4147 = vmatprep.mubr.bf16.mxu1 %v5086_v18  ;;  %v2420_v18 = vld [vmem:[#allocation2 + $0x79] sm:$0xff]  ;;  %v2421_v26 = vld [vmem:[#allocation2 + $0x81] sm:$0xff] }
  0xc5   : > { %4371 = vmatprep.mubr.bf16.mxu0 %v2446_v30  ;;  %4176 = vmatpush3.bf16.msra.mxu1 %v4796_v29  ;;  %v2449_v57 = vpack.c.bf16 %v2421_v26, %v2420_v18  ;;  %v2724_v29 = vld [vmem:[#allocation2 + $0x62] sm:$0xff]  ;;  %v2725_v30 = vld [vmem:[#allocation2 + $0x6a] sm:$0xff] }
  0xc6   : > { %4177 = vmatprep.subr.bf16.mxu1 %v4798_v56  ;;  %v2754_v38 = vpack.c.bf16 %v2725_v30, %v2724_v29  ;;  %v2732_v18 = vld [vmem:[#allocation2 + $0xc2] sm:$0xff] }
  0xc9   : > { %4178 = vmatpush3.bf16.msra.mxu1 %v4798_v56  ;;  %v4811_v56 = vld [vmem:[%s5401_s1 + $0x138] sm:$0xff]  }
  0xca   : > { %4451 = vmatprep.subr.bf16.mxu1 %v4804_v8 }
  0xcb   : > { %4148 = vmatmul.mubr.bf16.gmra.mrb[16].mxu1 %v5088_v19  ;;  %v4799_v19 = vld [vmem:[%s5401_s1 + $0x218] sm:$0xff]  }
  0xcc   : > { %4372 = vmatmul.mubr.bf16.vlgmr.msra.gmra.mrb[0].mxu0 %v2447_v44  ;;  %4151 = vmatprep.mubr.bf16.mxu1 %v5104_v33  ;;  %v2424_v33 = vld [vmem:[#allocation2 + $0xa9] sm:$0xff] }
  0xcd   : > { %4404 = vmatpush3.bf16.msra.mxu0 %v4793_v15  ;;  %4375 = vmatprep.mubr.bf16.mxu0 %v2448_v45  ;;  %v2451_v9 = vpack.c.bf16 %v2425_v59, %v2424_v33  ;;  %v4802_v15 = vld [vmem:[%s5401_s1 + $0x230] sm:$0xff]   ;;  %v2756_v45 = vpack.c.bf16 %v2729_v43, %v2728_v40  ;;  %v2740_v33 = vld [vmem:[#allocation2 + $0x122] sm:$0xff] }
  0xce   : > { %4405 = vmatprep.subr.bf16.mxu0 %v4795_v46 }
  0xd1   : > { %4406 = vmatpush3.bf16.msra.mxu0 %v4795_v46  ;;  %v2730_v46 = vld [vmem:[#allocation2 + $0xaa] sm:$0xff] }
  0xd2   : > { %4407 = vmatprep.subr.bf16.mxu0 %v4797_v53 }
  0xd3   : > { %4152 = vmatmul.mubr.bf16.gmra.mrb[20].mxu1 %v5108_v35  ;;  %v4801_v35 = vld [vmem:[%s5401_s1 + $0x228] sm:$0xff]  }
  0xd4   : > { %4376 = vmatmul.mubr.bf16.gmra.mrb[4].mxu0 %v2449_v57  ;;  %4155 = vmatprep.mubr.bf16.mxu1 %v5124_v50  ;;  %v2428_v50 = vld [vmem:[#allocation2 + $0xd9] sm:$0xff] }
  0xd5   : > { %4379 = vmatprep.mubr.bf16.mxu0 %v2450_v58  ;;  %4408 = vmatpush3.bf16.msra.mxu0 %v4797_v53  ;;  %v5294_v16 = vpack.c.bf16 %v2429_v11, %v2428_v50  ;;  %v2736_v53 = vld [vmem:[#allocation2 + $0xf2] sm:$0xff]  ;;  %v2745_v50 = vld [vmem:[#allocation2 + $0x15a] sm:$0xff] }
  0xd6   : > { %4409 = vmatprep.subr.bf16.mxu0 %v4799_v19 }
  0xd9   : > { %4410 = vmatpush3.bf16.msra.mxu0 %v4799_v19  ;;  %v2739_v19 = vld [vmem:[#allocation2 + $0x112] sm:$0xff] }
  0xda   : > { %4411 = vmatprep.subr.bf16.mxu0 %v4800_v0 }
  0xdb   : > { %4156 = vmatmul.mubr.bf16.gmra.mrb[24].mxu1 %v5128_v41  ;;  %v4803_v41 = vld [vmem:[%s5401_s1 + $0x238] sm:$0xff]  }
  0xdc   : > { %4380 = vmatmul.mubr.bf16.gmra.mrb[8].mxu0 %v2451_v9  ;;  %4159 = vmatprep.mubr.bf16.mxu1 %v5142_v2  ;;  %v2432_v2 = vld [vmem:[#allocation2 + $0x109] sm:$0xff]  ;;  %v1519_v9 = vld [vmem:[#allocation2 + $0x139] sm:$0xff] }
  0xdd   : > { %4383 = vmatprep.mubr.bf16.mxu0 %v2452_v10  ;;  %4412 = vmatpush3.bf16.msra.mxu0 %v4800_v0  ;;  %v5305_v24 = vpack.c.bf16 %v2433_v23, %v2432_v2  ;;  %v2742_v0 = vld [vmem:[#allocation2 + $0x13a] sm:$0xff]  ;;  %v2747_v2 = vld [vmem:[#allocation2 + $0x172] sm:$0xff]  ;;  %v1523_v23 = vld [vmem:[#allocation2 + $0x169] sm:$0xff] }
  0xde   : > { %4413 = vmatprep.subr.bf16.mxu0 %v4801_v35  ;;  %v1520_v10 = vld [vmem:[#allocation2 + $0x141] sm:$0xff] }
  0xdf   : > { %v1539_v14 = vpack.c.bf16 %v1520_v10, %v1519_v9 }
  0xe1   : > { %4414 = vmatpush3.bf16.msra.mxu0 %v4801_v35  ;;  %v2744_v35 = vld [vmem:[#allocation2 + $0x152] sm:$0xff] }
  0xe2   : > { %4415 = vmatprep.subr.bf16.mxu0 %v4802_v15 }
  0xe3   : > { %4160 = vmatmul.mubr.bf16.gmra.mrb[28].mxu1 %v5146_v5  ;;  %v4806_v5 = vld [vmem:[%s5401_s1 + $0x110] sm:$0xff]  }
  0xe4   : > { %4384 = vmatmul.mubr.bf16.gmra.mrb[12].mxu0 %v5294_v16  ;;  %4179 = vmatprep.mubr.bf16.mxu1 %v5102_v32  ;;  %v4805_v32 = vld [vmem:[%s5401_s1 + $0x108] sm:$0xff]  }
  0xe5   : > { %4387 = vmatprep.mubr.bf16.mxu0 %v5296_v21  ;;  %4416 = vmatpush3.bf16.msra.mxu0 %v4802_v15  ;;  %v2764_v15 = vpack.c.bf16 %v2745_v50, %v2744_v35 }
  0xe6   : > { %4417 = vmatprep.subr.bf16.mxu0 %v4803_v41 }
  0xe9   : > { %4418 = vmatpush3.bf16.msra.mxu0 %v4803_v41  ;;  %v2746_v41 = vld [vmem:[#allocation2 + $0x16a] sm:$0xff] }
  0xeb   : > { %4180 = vmatmul.mubr.bf16.vlgmr.msra.gmra.mrb[0].mxu1 %v5106_v34  ;;  %v2443_v34 = vld [vmem:[#allocation2 + $0x189] sm:$0xff] }
  0xec   : > { %4388 = vmatmul.mubr.bf16.gmra.mrb[16].mxu0 %v5305_v24  ;;  %4459 = vmatpush3.bf16.msra.mxu1 %v4804_v8  ;;  %v2731_v8 = vld [vmem:[#allocation2 + $0xb2] sm:$0xff] }
  0xed   : > { %4183 = vmatprep.mubr.bf16.mxu1 %v5122_v49  ;;  %4391 = vmatprep.mubr.bf16.mxu0 %v5049_v55  ;;  %v2442_v55 = vld [vmem:[#allocation2 + $0x181] sm:$0xff]  ;;  %v4807_v49 = vld [vmem:[%s5401_s1 + $0x118] sm:$0xff]   ;;  %v2757_v26 = vpack.c.bf16 %v2731_v8, %v2730_v46 }
  0xee   : > { %4452 = vmatprep.subr.bf16.mxu1 %v4805_v32  ;;  %v5324_v39 = vpack.c.bf16 %v2443_v34, %v2442_v55  ;;  %v2765_v34 = vpack.c.bf16 %v2747_v2, %v2746_v41 }
  0xf0   : > { %4460 = vmatpush3.bf16.msra.mxu1 %v4805_v32  ;;  %v2748_v32 = vld [vmem:[#allocation2 + $0x182] sm:$0xff] }
  0xf1   : > { %4453 = vmatprep.subr.bf16.mxu1 %v4806_v5 }
  0xf3   : > { %4184 = vmatmul.mubr.bf16.gmra.mrb[4].mxu1 %v5126_v51  ;;  %v4808_v51 = vld [vmem:[%s5401_s1 + $0x120] sm:$0xff]  }
  0xf4   : > { %4392 = vmatmul.mubr.bf16.gmra.mrb[20].mxu0 %v5062_v3  ;;  %4187 = vmatprep.mubr.bf16.mxu1 %v5140_v1  ;;  %v2444_v3 = vld [vmem:[#allocation2 + $0x199] sm:$0xff] }
  0xf5   : > { %4395 = vmatprep.mubr.bf16.mxu0 %v5068_v7  ;;  %4461 = vmatpush3.bf16.msra.mxu1 %v4806_v5  ;;  %v2445_v7 = vld [vmem:[#allocation2 + $0x1a1] sm:$0xff]  ;;  %v2720_v1 = vld [vmem:[#allocation2 + $0x32] sm:$0xff]  ;;  %v2749_v5 = vld [vmem:[#allocation2 + $0x18a] sm:$0xff] }
  0xf6   : > { %4454 = vmatprep.subr.bf16.mxu1 %v4807_v49  ;;  %v2461_v54 = vpack.c.bf16 %v2445_v7, %v2444_v3  ;;  %v2752_v28 = vpack.c.bf16 %v2721_v25, %v2720_v1  ;;  %v2750_v3 = vld [vmem:[#allocation2 + $0x19a] sm:$0xff]  ;;  %v2751_v7 = vld [vmem:[#allocation2 + $0x1a2] sm:$0xff] }
  0xf7   : > { %v2767_v1 = vpack.c.bf16 %v2751_v7, %v2750_v3 }
  0xf9   : > { %4462 = vmatpush3.bf16.msra.mxu1 %v4807_v49 }
  0xfa   : > { %4455 = vmatprep.subr.bf16.mxu1 %v4808_v51 }
  0xfb   : > { %4188 = vmatmul.mubr.bf16.gmra.mrb[8].mxu1 %v5144_v4  ;;  %v2722_v4 = vld [vmem:[#allocation2 + $0x4a] sm:$0xff] }
  0xfc   : > { %4396 = vmatmul.mubr.bf16.gmra.mrb[24].mxu0 %v5084_v17  ;;  %4191 = vmatprep.mubr.bf16.mxu1 %v5158_v20  ;;  %v4810_v17 = vld [vmem:[%s5401_s1 + $0x130] sm:$0xff]  }
  0xfd   : > { %4399 = vmatprep.mubr.bf16.mxu0 %v5324_v39  ;;  %4463 = vmatpush3.bf16.msra.mxu1 %v4808_v51  ;;  %v2723_v20 = vld [vmem:[#allocation2 + $0x52] sm:$0xff]  ;;  %v2766_v51 = vpack.c.bf16 %v2749_v5, %v2748_v32 }
  0xfe   : > { %4456 = vmatprep.subr.bf16.mxu1 %v4809_v42  ;;  %v2753_v6 = vpack.c.bf16 %v2723_v20, %v2722_v4 }
 0x101   : > { %4464 = vmatpush3.bf16.msra.mxu1 %v4809_v42 }
 0x102   : > { %4457 = vmatprep.subr.bf16.mxu1 %v4810_v17 }
 0x103   : > { %4192 = vmatmul.mubr.bf16.gmra.mrb[12].mxu1 %v5160_v22  ;;  %v2726_v22 = vld [vmem:[#allocation2 + $0x7a] sm:$0xff] }
 0x104   : > { %4400 = vmatmul.mubr.bf16.gmra.mrb[28].mxu0 %v2461_v54  ;;  %4195 = vmatprep.mubr.bf16.mxu1 %v5173_v36  ;;  %v2727_v36 = vld [vmem:[#allocation2 + $0x82] sm:$0xff] }
 0x105   : > { %4419 = vmatprep.mubr.bf16.mxu0 %v2752_v28  ;;  %4465 = vmatpush3.bf16.msra.mxu1 %v4810_v17  ;;  %v2755_v44 = vpack.c.bf16 %v2727_v36, %v2726_v22 }
 0x106   : > { %4458 = vmatprep.subr.bf16.mxu1 %v4811_v56 }
 0x109   : > { %4466 = vmatpush3.bf16.msra.mxu1 %v4811_v56 }
 0x10b   : > { %4196 = vmatmul.mubr.bf16.gmra.mrb[16].mxu1 %v5175_v37  ;;  %v2733_v37 = vld [vmem:[#allocation2 + $0xca] sm:$0xff] }
 0x10c   : > { %4420 = vmatmul.mubr.bf16.vlgmr.msra.gmra.mrb[0].mxu0 %v2753_v6  ;;  %4199 = vmatprep.mubr.bf16.mxu1 %v5189_v47  ;;  %v2758_v52 = vpack.c.bf16 %v2733_v37, %v2732_v18  ;;  %v2734_v47 = vld [vmem:[#allocation2 + $0xda] sm:$0xff] }
 0x10d   : > { %4423 = vmatprep.mubr.bf16.mxu0 %v2754_v38  ;;  %v2759_v57 = vpack.c.bf16 %v2735_v31, %v2734_v47 }
 0x113   : > { %4200 = vmatmul.mubr.bf16.gmra.mrb[20].mxu1 %v5191_v48  ;;  %v2737_v48 = vld [vmem:[#allocation2 + $0xfa] sm:$0xff] }
 0x114   : > { %4424 = vmatmul.mubr.bf16.gmra.mrb[4].mxu0 %v2755_v44  ;;  %4203 = vmatprep.mubr.bf16.mxu1 %v5203_v60  ;;  %v2760_v58 = vpack.c.bf16 %v2737_v48, %v2736_v53  ;;  %v2738_v60 = vld [vmem:[#allocation2 + $0x10a] sm:$0xff] }
 0x115   : > { %4427 = vmatprep.mubr.bf16.mxu0 %v2756_v45  ;;  %v2761_v59 = vpack.c.bf16 %v2739_v19, %v2738_v60 }
 0x11b   : > { %4204 = vmatmul.mubr.bf16.gmra.mrb[24].mxu1 %v5205_v61  ;;  %v2741_v61 = vld [vmem:[#allocation2 + $0x12a] sm:$0xff] }
 0x11c   : > { %4428 = vmatmul.mubr.bf16.gmra.mrb[8].mxu0 %v2757_v26  ;;  %4207 = vmatprep.mubr.bf16.mxu1 %v5217_v12  ;;  %v2762_v62 = vpack.c.bf16 %v2741_v61, %v2740_v33  ;;  %v1517_v12 = vld [vmem:[#allocation2 + $0x121] sm:$0xff] }
 0x11d   : > { %4431 = vmatprep.mubr.bf16.mxu0 %v2758_v52  ;;  %v1538_v11 = vpack.c.bf16 %v1518_v63, %v1517_v12 }
 0x123   : > { %4208 = vmatmul.mubr.bf16.gmra.mrb[28].mxu1 %v5249_v27  ;;  %v2743_v27 = vld [vmem:[#allocation2 + $0x142] sm:$0xff] }
 0x124   : > { %4432 = vmatmul.mubr.bf16.gmra.mrb[12].mxu0 %v2759_v57  ;;  %4243 = vmatprep.mubr.bf16.mxu1 %v5294_v16  ;;  %v2763_v13 = vpack.c.bf16 %v2743_v27, %v2742_v0  ;;  %v1521_v16 = vld [vmem:[#allocation2 + $0x151] sm:$0xff] }
 0x125   : > { %4435 = vmatprep.mubr.bf16.mxu0 %v2760_v58 }
 0x12b   : > { %4244 = vmatmul.mubr.bf16.vlgmr.msra.gmra.mrb[16].mxu1 %v5296_v21  ;;  %v1522_v21 = vld [vmem:[#allocation2 + $0x159] sm:$0xff] }
 0x12c   : > { %4436 = vmatmul.mubr.bf16.gmra.mrb[16].mxu0 %v2761_v59  ;;  %4247 = vmatprep.mubr.bf16.mxu1 %v5305_v24  ;;  %v1524_v24 = vld [vmem:[#allocation2 + $0x171] sm:$0xff]  ;;  %v1540_v55 = vpack.c.bf16 %v1522_v21, %v1521_v16 }
 0x12d   : > { %4439 = vmatprep.mubr.bf16.mxu0 %v2762_v62  ;;  %v1541_v49 = vpack.c.bf16 %v1524_v24, %v1523_v23 }
 0x133   : > { %4248 = vmatmul.mubr.bf16.gmra.mrb[20].mxu1 %v1538_v11 }
 0x134   : > { %4440 = vmatmul.mubr.bf16.gmra.mrb[20].mxu0 %v2763_v13  ;;  %4251 = vmatprep.mubr.bf16.mxu1 %v1539_v14 }
 0x135   : > { %4443 = vmatprep.mubr.bf16.mxu0 %v2764_v15 }
 0x13b   : > { %4252 = vmatmul.mubr.bf16.gmra.mrb[24].mxu1 %v1540_v55 }
 0x13c   : > { %4444 = vmatmul.mubr.bf16.gmra.mrb[24].mxu0 %v2765_v34  ;;  %4255 = vmatprep.mubr.bf16.mxu1 %v1541_v49 }
 0x13d   : > { %4447 = vmatprep.mubr.bf16.mxu0 %v2766_v51 }
 0x143   : > { %4256 = vmatmul.mubr.bf16.gmra.mrb[28].mxu1 %v5324_v39 }
 0x144   : > { %4448 = vmatmul.mubr.bf16.gmra.mrb[28].mxu0 %v2767_v1 }
 0x1be   : > { %v4181_v25 = vpop.f32.mrb[0].mxu1 }
 0x1bf   : > { %v1336_v42 = vpop.f32.mrb[1].mxu1 }
 0x1c0   : > { %v4182_v54 = vpop.f32.mrb[2].mxu1 }
 0x1c1   : > { %v1339_v28 = vpop.f32.mrb[3].mxu1 }
 0x1c6   : > { %v4185_v17 = vpop.f32.mrb[4].mxu1 }
 0x1c7   : > { %v1352_v4 = vpop.f32.mrb[5].mxu1 }
 0x1c8   : > { %v4186_v20 = vpop.f32.mrb[6].mxu1 }
 0x1c9   : > { %v1355_v29 = vpop.f32.mrb[7].mxu1 }
 0x1ce   : > { %v4189_v30 = vpop.f32.mrb[8].mxu1 }
 0x1cf   : > { %v1368_v56 = vpop.f32.mrb[9].mxu1 }
 0x1d0   : > { %v4190_v6 = vpop.f32.mrb[10].mxu1 }
 0x1d1   : > { %v1371_v38 = vpop.f32.mrb[11].mxu1 }
 0x1d6   : > { %v5355_v22 = vpop.f32.mrb[12].mxu1 }
 0x1d7   : > { %v5357_v36 = vpop.f32.mrb[13].mxu1 }
 0x1d8   : > { %v5359_v40 = vpop.f32.mrb[14].mxu1 }
 0x1d9   : > { %v5361_v39 = vpop.f32.mrb[15].mxu1 }
 0x1df   : > { %v4421_v43 = vpop.f32.mrb[0].mxu0 }
 0x1e0   : > { %v4467_v44 = vadd.f32 %v4421_v43, %v4181_v25  ;;  %v2867_v45 = vpop.f32.mrb[1].mxu0 }
 0x1e1   : > { %v4468_v46 = vadd.f32 %v2867_v45, %v1336_v42  ;;  %v4422_v8 = vpop.f32.mrb[2].mxu0 }
 0x1e2   : > { %v4469_v18 = vadd.f32 %v4422_v8, %v4182_v54  ;;  %v2870_v37 = vpop.f32.mrb[3].mxu0 }
 0x1e3   : > { %v4470_v26 = vadd.f32 %v2870_v37, %v1339_v28 }
 0x1e4   : > { %v3027_v52 = vpack.c.bf16 %v4469_v18, %v4467_v44 }
 0x1e5   : > { %v3026_v47 = vpack.c.bf16 %v4470_v26, %v4468_v46 }
 0x1e6   : > { %3788 = vst [vmem:[%s5367_s18 + $0x8] sm:$0xff] %v3027_v52   ;;  %v3188_v31 = vunpack.c.l.bf16 %v3027_v52  ;;  %v3189_v58 = vunpack.c.h.bf16 %v3027_v52 }
 0x1e7   : > { %3712 = vst [vmem:[%s5367_s18] sm:$0xff] %v3026_v47   ;;  %v3186_v53 = vunpack.c.l.bf16 %v3026_v47  ;;  %v3187_v48 = vunpack.c.h.bf16 %v3026_v47  ;;  %v4425_v57 = vpop.f32.mrb[4].mxu0 }
 0x1e8   : > { %v4471_v60 = vadd.f32 %v4425_v57, %v4185_v17  ;;  %v2883_v19 = vpop.f32.mrb[5].mxu0  ;;  %v3258_v27 = vmul.f32 %v3188_v31, %v3188_v31  ;;  %v3259_v11 = vmul.f32 %v3189_v58, %v3189_v58 }
 0x1e9   : > { %v3218_v33 = vadd.f32 %v3187_v48, %v3186_v53  ;;  %v3256_v61 = vmul.f32 %v3186_v53, %v3186_v53  ;;  %v3257_v59 = vmul.f32 %v3187_v48, %v3187_v48  ;;  %v4472_v62 = vadd.f32 %v2883_v19, %v1352_v4  ;;  %v4426_v12 = vpop.f32.mrb[6].mxu0 }
 0x1ea   : > { %v4473_v63 = vadd.f32 %v4426_v12, %v4186_v20  ;;  %v2886_v0 = vpop.f32.mrb[7].mxu0 }
 0x1eb   : > { %v3219_v9 = vadd.f32 %v3218_v33, %v3188_v31  ;;  %v3288_v10 = vadd.f32 %v3257_v59, %v3256_v61  ;;  %v4474_v35 = vadd.f32 %v2886_v0, %v1355_v29 }
 0x1ec   : > { %v3029_v50 = vpack.c.bf16 %v4473_v63, %v4471_v60 }
 0x1ed   : > { %v3289_v13 = vadd.f32 %v3288_v10, %v3258_v27  ;;  %v3028_v14 = vpack.c.bf16 %v4474_v35, %v4472_v62  ;;  %v3220_v15 = vadd.f32 %v3219_v9, %v3189_v58 }
 0x1ee   : > { %3790 = vst [vmem:[%s5367_s18 + $0x18] sm:$0xff] %v3029_v50   ;;  %v3192_v32 = vunpack.c.l.bf16 %v3029_v50  ;;  %v3193_v51 = vunpack.c.h.bf16 %v3029_v50 }
 0x1ef   : > { %3789 = vst [vmem:[%s5367_s18 + $0x10] sm:$0xff] %v3028_v14   ;;  %v3190_v16 = vunpack.c.l.bf16 %v3028_v14  ;;  %v3191_v21 = vunpack.c.h.bf16 %v3028_v14  ;;  %v3290_v41 = vadd.f32 %v3289_v13, %v3259_v11  ;;  %v4429_v2 = vpop.f32.mrb[8].mxu0 }
 0x1f0   : > { %v4475_v23 = vadd.f32 %v4429_v2, %v4189_v30  ;;  %v2899_v24 = vpop.f32.mrb[9].mxu0  ;;  %v3262_v17 = vmul.f32 %v3192_v32, %v3192_v32  ;;  %v3263_v30 = vmul.f32 %v3193_v51, %v3193_v51 }
 0x1f1   : > { %v3221_v5 = vadd.f32 %v3220_v15, %v3190_v16  ;;  %v3260_v55 = vmul.f32 %v3190_v16, %v3190_v16  ;;  %v4476_v34 = vadd.f32 %v2899_v24, %v1368_v56  ;;  %v4430_v49 = vpop.f32.mrb[10].mxu0  ;;  %v3261_v25 = vmul.f32 %v3191_v21, %v3191_v21 }
 0x1f2   : > { %v4477_v3 = vadd.f32 %v4430_v49, %v4190_v6  ;;  %v2902_v7 = vpop.f32.mrb[11].mxu0 }
 0x1f3   : > { %v3222_v1 = vadd.f32 %v3221_v5, %v3191_v21  ;;  %v3291_v42 = vadd.f32 %v3290_v41, %v3260_v55  ;;  %v4478_v54 = vadd.f32 %v2902_v7, %v1371_v38 }
 0x1f4   : > { %v3031_v28 = vpack.c.bf16 %v4477_v3, %v4475_v23 }
 0x1f5   : > { %v3223_v4 = vadd.f32 %v3222_v1, %v3192_v32  ;;  %v3292_v20 = vadd.f32 %v3291_v42, %v3261_v25  ;;  %v3030_v29 = vpack.c.bf16 %v4478_v54, %v4476_v34 }
 0x1f6   : > { %3792 = vst [vmem:[%s5367_s18 + $0x28] sm:$0xff] %v3031_v28   ;;  %v3196_v18 = vunpack.c.l.bf16 %v3031_v28  ;;  %v3197_v47 = vunpack.c.h.bf16 %v3031_v28 }
 0x1f7   : > { %v3293_v43 = vadd.f32 %v3292_v20, %v3262_v17  ;;  %3791 = vst [vmem:[%s5367_s18 + $0x20] sm:$0xff] %v3030_v29   ;;  %v3194_v44 = vunpack.c.l.bf16 %v3030_v29  ;;  %v3195_v56 = vunpack.c.h.bf16 %v3030_v29  ;;  %v3224_v45 = vadd.f32 %v3223_v4, %v3193_v51  ;;  %v4433_v46 = vpop.f32.mrb[12].mxu0 }
 0x1f8   : > { %v4479_v6 = vadd.f32 %v4433_v46, %v5355_v22  ;;  %v2915_v8 = vpop.f32.mrb[13].mxu0  ;;  %v3266_v33 = vmul.f32 %v3196_v18, %v3196_v18  ;;  %v3267_v12 = vmul.f32 %v3197_v47, %v3197_v47 }
 0x1f9   : > { %v3225_v37 = vadd.f32 %v3224_v45, %v3194_v44  ;;  %v3264_v26 = vmul.f32 %v3194_v44, %v3194_v44  ;;  %v3294_v38 = vadd.f32 %v3293_v43, %v3263_v30  ;;  %v4434_v52 = vpop.f32.mrb[14].mxu0  ;;  %v4480_v31 = vadd.f32 %v2915_v8, %v5357_v36 }
 0x1fa   : > { %v4481_v53 = vadd.f32 %v4434_v52, %v5359_v40  ;;  %v2918_v48 = vpop.f32.mrb[15].mxu0  ;;  %v3265_v58 = vmul.f32 %v3195_v56, %v3195_v56 }
 0x1fb   : > { %v3226_v57 = vadd.f32 %v3225_v37, %v3195_v56  ;;  %v3295_v60 = vadd.f32 %v3294_v38, %v3264_v26  ;;  %v4482_v19 = vadd.f32 %v2918_v48, %v5361_v39 }
 0x1fc   : > { %v3033_v22 = vpack.c.bf16 %v4481_v53, %v4479_v6 }
 0x1fd   : > { %v3227_v61 = vadd.f32 %v3226_v57, %v3196_v18  ;;  %v3296_v59 = vadd.f32 %v3295_v60, %v3265_v58  ;;  %v3032_v62 = vpack.c.bf16 %v4482_v19, %v4480_v31 }
 0x1fe   : > { %3794 = vst [vmem:[%s5367_s18 + $0x38] sm:$0xff] %v3033_v22   ;;  %v4245_v63 = vpop.f32.mrb[16].mxu1  ;;  %v3200_v13 = vunpack.c.l.bf16 %v3033_v22  ;;  %v3201_v41 = vunpack.c.h.bf16 %v3033_v22 }
 0x1ff   : > { %v3297_v0 = vadd.f32 %v3296_v59, %v3266_v33  ;;  %3793 = vst [vmem:[%s5367_s18 + $0x30] sm:$0xff] %v3032_v62   ;;  %v3198_v36 = vunpack.c.l.bf16 %v3032_v62  ;;  %v3199_v27 = vunpack.c.h.bf16 %v3032_v62  ;;  %v3228_v9 = vadd.f32 %v3227_v61, %v3197_v47  ;;  %v4437_v40 = vpop.f32.mrb[16].mxu0  ;;  %v1706_v10 = vpop.f32.mrb[17].mxu1 }
 0x200   : > { %v4483_v35 = vadd.f32 %v4437_v40, %v4245_v63  ;;  %v2931_v50 = vpop.f32.mrb[17].mxu0  ;;  %v4246_v11 = vpop.f32.mrb[18].mxu1  ;;  %v3270_v51 = vmul.f32 %v3200_v13, %v3200_v13  ;;  %v3271_v25 = vmul.f32 %v3201_v41, %v3201_v41 }
 0x201   : > { %v3229_v39 = vadd.f32 %v3228_v9, %v3198_v36  ;;  %v3268_v14 = vmul.f32 %v3198_v36, %v3198_v36  ;;  %v3298_v15 = vadd.f32 %v3297_v0, %v3267_v12  ;;  %v4438_v16 = vpop.f32.mrb[18].mxu0  ;;  %v1709_v21 = vpop.f32.mrb[19].mxu1  ;;  %v4484_v2 = vadd.f32 %v2931_v50, %v1706_v10 }
 0x202   : > { %v4485_v23 = vadd.f32 %v4438_v16, %v4246_v11  ;;  %v2934_v24 = vpop.f32.mrb[19].mxu0  ;;  %v3269_v5 = vmul.f32 %v3199_v27, %v3199_v27 }
 0x203   : > { %v3230_v32 = vadd.f32 %v3229_v39, %v3199_v27  ;;  %v3299_v55 = vadd.f32 %v3298_v15, %v3268_v14  ;;  %v4486_v34 = vadd.f32 %v2934_v24, %v1709_v21 }
 0x204   : > { %v3035_v49 = vpack.c.bf16 %v4485_v23, %v4483_v35 }
 0x205   : > { %v3231_v3 = vadd.f32 %v3230_v32, %v3200_v13  ;;  %v3300_v7 = vadd.f32 %v3299_v55, %v3269_v5  ;;  %v3034_v1 = vpack.c.bf16 %v4486_v34, %v4484_v2 }
 0x206   : > { %3796 = vst [vmem:[%s5367_s18 + $0x48] sm:$0xff] %v3035_v49   ;;  %v4249_v42 = vpop.f32.mrb[20].mxu1  ;;  %v3204_v56 = vunpack.c.l.bf16 %v3035_v49  ;;  %v3205_v37 = vunpack.c.h.bf16 %v3035_v49 }
 0x207   : > { %v3301_v54 = vadd.f32 %v3300_v7, %v3270_v51  ;;  %3795 = vst [vmem:[%s5367_s18 + $0x40] sm:$0xff] %v3034_v1   ;;  %v3202_v28 = vunpack.c.l.bf16 %v3034_v1  ;;  %v3203_v17 = vunpack.c.h.bf16 %v3034_v1  ;;  %v3232_v4 = vadd.f32 %v3231_v3, %v3201_v41  ;;  %v4441_v20 = vpop.f32.mrb[20].mxu0  ;;  %v1722_v29 = vpop.f32.mrb[21].mxu1 }
 0x208   : > { %v4487_v30 = vadd.f32 %v4441_v20, %v4249_v42  ;;  %v2947_v43 = vpop.f32.mrb[21].mxu0  ;;  %v4250_v44 = vpop.f32.mrb[22].mxu1  ;;  %v3274_v58 = vmul.f32 %v3204_v56, %v3204_v56  ;;  %v3275_v33 = vmul.f32 %v3205_v37, %v3205_v37 }
 0x209   : > { %v3233_v45 = vadd.f32 %v3232_v4, %v3202_v28  ;;  %v3272_v46 = vmul.f32 %v3202_v28, %v3202_v28  ;;  %v3302_v6 = vadd.f32 %v3301_v54, %v3271_v25  ;;  %v4442_v8 = vpop.f32.mrb[22].mxu0  ;;  %v1725_v18 = vpop.f32.mrb[23].mxu1  ;;  %v4488_v26 = vadd.f32 %v2947_v43, %v1722_v29 }
 0x20a   : > { %v4489_v38 = vadd.f32 %v4442_v8, %v4250_v44  ;;  %v2950_v52 = vpop.f32.mrb[23].mxu0  ;;  %v3273_v31 = vmul.f32 %v3203_v17, %v3203_v17 }
 0x20b   : > { %v3234_v47 = vadd.f32 %v3233_v45, %v3203_v17  ;;  %v3303_v53 = vadd.f32 %v3302_v6, %v3272_v46  ;;  %v4490_v48 = vadd.f32 %v2950_v52, %v1725_v18 }
 0x20c   : > { %v3037_v57 = vpack.c.bf16 %v4489_v38, %v4487_v30 }
 0x20d   : > { %v3235_v60 = vadd.f32 %v3234_v47, %v3204_v56  ;;  %v3304_v19 = vadd.f32 %v3303_v53, %v3273_v31  ;;  %v3036_v22 = vpack.c.bf16 %v4490_v48, %v4488_v26 }
 0x20e   : > { %3798 = vst [vmem:[%s5367_s18 + $0x58] sm:$0xff] %v3037_v57   ;;  %v4253_v61 = vpop.f32.mrb[24].mxu1  ;;  %v3208_v10 = vunpack.c.l.bf16 %v3037_v57  ;;  %v3209_v14 = vunpack.c.h.bf16 %v3037_v57 }
 0x20f   : > { %v3305_v59 = vadd.f32 %v3304_v19, %v3274_v58  ;;  %3797 = vst [vmem:[%s5367_s18 + $0x50] sm:$0xff] %v3036_v22   ;;  %v3206_v62 = vunpack.c.l.bf16 %v3036_v22  ;;  %v3207_v12 = vunpack.c.h.bf16 %v3036_v22  ;;  %v3236_v63 = vadd.f32 %v3235_v60, %v3205_v37  ;;  %v4445_v0 = vpop.f32.mrb[24].mxu0  ;;  %v1738_v36 = vpop.f32.mrb[25].mxu1 }
 0x210   : > { %v4491_v27 = vadd.f32 %v4445_v0, %v4253_v61  ;;  %v2963_v9 = vpop.f32.mrb[25].mxu0  ;;  %v4254_v40 = vpop.f32.mrb[26].mxu1  ;;  %v3278_v5 = vmul.f32 %v3208_v10, %v3208_v10  ;;  %v3279_v51 = vmul.f32 %v3209_v14, %v3209_v14 }
 0x211   : > { %v3237_v35 = vadd.f32 %v3236_v63, %v3206_v62  ;;  %v3276_v50 = vmul.f32 %v3206_v62, %v3206_v62  ;;  %v3306_v11 = vadd.f32 %v3305_v59, %v3275_v33  ;;  %v4446_v13 = vpop.f32.mrb[26].mxu0  ;;  %v1741_v39 = vpop.f32.mrb[27].mxu1  ;;  %v4492_v15 = vadd.f32 %v2963_v9, %v1738_v36 }
 0x212   : > { %v4493_v16 = vadd.f32 %v4446_v13, %v4254_v40  ;;  %v2966_v21 = vpop.f32.mrb[27].mxu0  ;;  %v3277_v2 = vmul.f32 %v3207_v12, %v3207_v12 }
 0x213   : > { %v3238_v41 = vadd.f32 %v3237_v35, %v3207_v12  ;;  %v3307_v23 = vadd.f32 %v3306_v11, %v3276_v50  ;;  %v4494_v24 = vadd.f32 %v2966_v21, %v1741_v39 }
 0x214   : > { %v3039_v32 = vpack.c.bf16 %v4493_v16, %v4491_v27 }
 0x215   : > { %v3239_v55 = vadd.f32 %v3238_v41, %v3208_v10  ;;  %v3308_v34 = vadd.f32 %v3307_v23, %v3277_v2  ;;  %v3038_v49 = vpack.c.bf16 %v4494_v24, %v4492_v15 }
 0x216   : > { %3800 = vst [vmem:[%s5367_s18 + $0x68] sm:$0xff] %v3039_v32   ;;  %v4257_v3 = vpop.f32.mrb[28].mxu1  ;;  %v3212_v29 = vunpack.c.l.bf16 %v3039_v32  ;;  %v3213_v46 = vunpack.c.h.bf16 %v3039_v32 }
 0x217   : > { %v3309_v7 = vadd.f32 %v3308_v34, %v3278_v5  ;;  %3799 = vst [vmem:[%s5367_s18 + $0x60] sm:$0xff] %v3038_v49   ;;  %v3210_v1 = vunpack.c.l.bf16 %v3038_v49  ;;  %v3211_v25 = vunpack.c.h.bf16 %v3038_v49  ;;  %v3240_v42 = vadd.f32 %v3239_v55, %v3209_v14  ;;  %v4449_v54 = vpop.f32.mrb[28].mxu0  ;;  %v1754_v28 = vpop.f32.mrb[29].mxu1 }
 0x218   : > { %v4495_v17 = vadd.f32 %v4449_v54, %v4257_v3  ;;  %v2979_v4 = vpop.f32.mrb[29].mxu0  ;;  %v4258_v20 = vpop.f32.mrb[30].mxu1  ;;  %v3282_v31 = vmul.f32 %v3212_v29, %v3212_v29  ;;  %v3283_v58 = vmul.f32 %v3213_v46, %v3213_v46 }
 0x219   : > { %v3241_v30 = vadd.f32 %v3240_v42, %v3210_v1  ;;  %v3280_v43 = vmul.f32 %v3210_v1, %v3210_v1  ;;  %v3310_v44 = vadd.f32 %v3309_v7, %v3279_v51  ;;  %v4450_v56 = vpop.f32.mrb[30].mxu0  ;;  %v1757_v45 = vpop.f32.mrb[31].mxu1  ;;  %v4496_v6 = vadd.f32 %v2979_v4, %v1754_v28 }
 0x21a   : > { %v4497_v8 = vadd.f32 %v4450_v56, %v4258_v20  ;;  %v2982_v18 = vpop.f32.mrb[31].mxu0  ;;  %v3281_v26 = vmul.f32 %v3211_v25, %v3211_v25 }
 0x21b   : > { %v3242_v37 = vadd.f32 %v3241_v30, %v3211_v25  ;;  %v3311_v38 = vadd.f32 %v3310_v44, %v3280_v43  ;;  %v4498_v52 = vadd.f32 %v2982_v18, %v1757_v45 }
 0x21c   : > { %v3041_v47 = vpack.c.bf16 %v4497_v8, %v4495_v17 }
 0x21d   : > { %v3243_v53 = vadd.f32 %v3242_v37, %v3212_v29  ;;  %v3312_v48 = vadd.f32 %v3311_v38, %v3281_v26  ;;  %v3040_v57 = vpack.c.bf16 %v4498_v52, %v4496_v6 }
 0x21e   : > { %3802 = vst [vmem:[%s5367_s18 + $0x78] sm:$0xff] %v3041_v47   ;;  %v3216_v61 = vunpack.c.l.bf16 %v3041_v47  ;;  %v3217_v63 = vunpack.c.h.bf16 %v3041_v47 }
 0x21f   : > { %v3313_v60 = vadd.f32 %v3312_v48, %v3282_v31  ;;  %3801 = vst [vmem:[%s5367_s18 + $0x70] sm:$0xff] %v3040_v57   ;;  %v3214_v19 = vunpack.c.l.bf16 %v3040_v57  ;;  %v3215_v22 = vunpack.c.h.bf16 %v3040_v57  ;;  %v3244_v33 = vadd.f32 %v3243_v53, %v3213_v46 }
 0x220   : > { %v3286_v9 = vmul.f32 %v3216_v61, %v3216_v61  ;;  %v3287_v35 = vmul.f32 %v3217_v63, %v3217_v63 }
 0x221   : > { %v3245_v59 = vadd.f32 %v3244_v33, %v3214_v19  ;;  %v3284_v62 = vmul.f32 %v3214_v19, %v3214_v19  ;;  %v3314_v12 = vadd.f32 %v3313_v60, %v3283_v58  ;;  %v3285_v36 = vmul.f32 %v3215_v22, %v3215_v22 }
 0x223   : > { %v3246_v0 = vadd.f32 %v3245_v59, %v3215_v22  ;;  %v3315_v27 = vadd.f32 %v3314_v12, %v3284_v62 }
 0x225   : > { %v3247_v40 = vadd.f32 %v3246_v0, %v3216_v61  ;;  %v3316_v10 = vadd.f32 %v3315_v27, %v3285_v36 }
 0x227   : > { %v3248_v50 = vadd.f32 %v3247_v40, %v3217_v63  ;;  %v3317_v11 = vadd.f32 %v3316_v10, %v3286_v9 }
 0x229   : > { %v3249_v13 = vrot.slane %v3248_v50, 4  ;;  %v3318_v39 = vadd.f32 %v3317_v11, %v3287_v35 }
 0x22b   : > { %v3250_v14 = vadd.f32 %v3249_v13, %v3248_v50  ;;  %v3319_v15 = vrot.slane %v3318_v39, 4 }
 0x22d   : > { %v3251_v16 = vrot.slane %v3250_v14, 2  ;;  %v3320_v21 = vadd.f32 %v3319_v15, %v3318_v39 }
 0x22f   : > { %v3252_v41 = vadd.f32 %v3251_v16, %v3250_v14  ;;  %v3321_v2 = vrot.slane %v3320_v21, 2 }
 0x231   : > { %v3253_v23 = vrot.slane %v3252_v41, 1  ;;  %v3322_v24 = vadd.f32 %v3321_v2, %v3320_v21 }
 0x233   : > { %v3254_v32 = vadd.f32 %v3253_v23, %v3252_v41  ;;  %v3323_v5 = vrot.slane %v3322_v24, 1 }
 0x235   : > { %3255 = vst [vmem:[%s211_s21] sm:$0x1] %v3254_v32  ;;  %v3324_v55 = vadd.f32 %v3323_v5, %v3322_v24 }
 0x237   : > { %3325 = vst [vmem:[%s214_s24] sm:$0x1] %v3324_v55 }
 0x238 PF: > { %s15_s15 = sadd.s32 1, %s4818_s15  }
 0x239   : > { %p12_p4 = scmp.ge.s32.totalorder %s15_s15, 4  }
 0x23b   :  { %14 = sbr.rel (!%p12_p4) target bundleno = 1 (0x1), region = 92 }

</bundles_post_ra>
